<compile_context>
chip_gen: v7x
topology: tpu7x:2x2x1
jax: 0.10.0
libtpu: 0.0.40
codegen_flags: <defaults>
</compile_context>

<pallas_src>
import functools

import jax
import jax.numpy as jnp
from jax.experimental import pallas as pl
from jax.experimental.pallas import tpu as pltpu

LANES = 128


def _default_num_shards():
    """2 shards only on 2-TensorCore chips; 1 elsewhere (v5e / v6e)."""
    try:
        kind = jax.devices()[0].device_kind.lower()
    except Exception:
        return 1
    if "v7" in kind or "v4" in kind or "v5p" in kind or "v5 p" in kind:
        return 2
    return 1


def _pick_tile_rows(rows, num_shards, max_tile):
    """Largest tile <= max_tile; prefer one that factors rows exactly across
    shards x blocks (no ragged block, no dead block, no in-kernel mask)."""
    max_tile = max(8, min(max_tile // 8 * 8, pl.cdiv(rows, 8) * 8))
    exact = None
    for t in range(max_tile, 7, -8):
        if rows % t == 0 and (rows // t) % num_shards == 0:
            exact = t
            break
    # Only take the exact factorization if it is not drastically smaller than
    # the requested tile (tiny tiles would pay per-step overhead instead).
    if exact is not None and exact * 4 >= max_tile:
        return exact
    return max_tile


def _focal_sums_kernel(pred_ref, gt_ref, loss_ref, pos_ref, *,
                       tile_rows, rows, blocks_per_shard,
                       has_ragged, has_dead, gt_in_unit_interval):
    """Accumulates per-shard (8,128) partials of (pos_loss+neg_loss) and num_pos."""
    c = pl.program_id(0)        # shard (megacore "parallel" axis)
    i = pl.program_id(1)        # row-block within shard ("arbitrary" reduction axis)
    blk = c * blocks_per_shard + i

    @pl.when(i == 0)
    def _():
        loss_ref[...] = jnp.zeros_like(loss_ref)
        pos_ref[...] = jnp.zeros_like(pos_ref)

    def compute(mask_rows):
        # Stream native dtype over HBM, compute in f32 on-chip.
        pred = pred_ref[...].astype(jnp.float32)
        gt = gt_ref[...].astype(jnp.float32)

        pos = gt == 1.0
        pos_f = pos.astype(jnp.float32)

        one_minus_pred = 1.0 - pred
        one_minus_gt = 1.0 - gt
        sq = one_minus_gt * one_minus_gt
        neg_w = sq * sq                              # (1 - gt)^4, two muls

        # Single EUP log per element: select the operand BEFORE the log so the
        # log(0) -> -inf corner cases match the PyTorch reference exactly.
        x = jnp.where(pos, pred, one_minus_pred)
        lx = jnp.log(x)

        w_neg = pred * pred * neg_w
        if not gt_in_unit_interval:
            # Reference multiplies the negative term by gt.lt(1): lanes with
            # gt > 1 must contribute exactly 0.
            w_neg = jnp.where(gt < 1.0, w_neg, 0.0)

        # Fused select: one weight, one multiply.
        w = jnp.where(pos, one_minus_pred * one_minus_pred, w_neg)
        elem = lx * w                                # pos_loss + neg_loss per element

        if mask_rows:
            # Only the ragged block pays this.  jnp.where discards the
            # unselected lanes entirely, so NaN/Inf in the out-of-bounds rows
            # cannot leak in (never turn this into a 0/1 multiply: 0*NaN=NaN).
            local_row = jax.lax.broadcasted_iota(jnp.int32, elem.shape, 0)
            valid = blk * tile_rows + local_row < rows
            elem = jnp.where(valid, elem, 0.0)
            pos_f = jnp.where(valid, pos_f, 0.0)

        # VPU-only accumulation into the resident (8,128) output accumulators;
        # the cross-lane reduce happens once, in JAX, on the tiny partials.
        loss_ref[...] += elem.reshape(tile_rows // 8, 8, LANES).sum(axis=0)
        pos_ref[...] += pos_f.reshape(tile_rows // 8, 8, LANES).sum(axis=0)

    if not (has_ragged or has_dead):
        # Exact factorization: every block is full, no branching at all.
        compute(False)
    else:
        is_full = (blk + 1) * tile_rows <= rows                  # fully in-bounds
        is_ragged = jnp.logical_and(jnp.logical_not(is_full),
                                    blk * tile_rows < rows)       # straddles `rows`
        # Dead (clamped) blocks match neither branch → skip compute entirely.
        pl.when(is_full)(lambda: compute(False))
        pl.when(is_ragged)(lambda: compute(True))


def planes_focal_loss(pred, gt, *, tile_rows=2048, num_shards=None,
                      gt_in_unit_interval=True):
    """Pallas implementation of _planes_neg_loss(pred, gt).

    Precondition when gt_in_unit_interval=True (the default, true for CornerNet
    heatmaps): gt values lie in [0, 1].  Pass gt_in_unit_interval=False to
    reproduce the reference's exact handling of gt > 1 lanes.
    """
    assert pred.shape == gt.shape
    if num_shards is None:
        num_shards = _default_num_shards()
    num_shards = max(1, int(num_shards))

    pred_f = pred.reshape(-1)
    gt_f = gt.reshape(-1)
    n = pred_f.shape[0]

    if n % LANES != 0:
        # Rare fallback (real heatmaps have 96*320 = 240*128 elements per map):
        # pad only up to the next lane boundary with (pred=0, gt=0), which
        # contributes exactly 0 to both sums.
        pad = LANES - n % LANES
        pred_f = jnp.concatenate([pred_f, jnp.zeros((pad,), pred_f.dtype)])
        gt_f = jnp.concatenate([gt_f, jnp.zeros((pad,), gt_f.dtype)])

    rows = pred_f.shape[0] // LANES
    pred2d = pred_f.reshape(rows, LANES)      # zero-copy lane-dense slab
    gt2d = gt_f.reshape(rows, LANES)

    tile_rows = _pick_tile_rows(rows, num_shards, tile_rows)
    blocks_total = pl.cdiv(rows, tile_rows)
    num_shards = max(1, min(num_shards, blocks_total))
    blocks_per_shard = pl.cdiv(blocks_total, num_shards)

    has_ragged = rows % tile_rows != 0
    has_dead = num_shards * blocks_per_shard != blocks_total

    if has_dead:
        def in_idx(c, i):
            # Clamp dead blocks of the last shard onto the last real block;
            # their compute is skipped in-kernel.
            return (jnp.minimum(c * blocks_per_shard + i, blocks_total - 1), 0)
    else:
        def in_idx(c, i):
            return (c * blocks_per_shard + i, 0)

    kernel = functools.partial(
        _focal_sums_kernel,
        tile_rows=tile_rows,
        rows=rows,
        blocks_per_shard=blocks_per_shard,
        has_ragged=has_ragged,
        has_dead=has_dead,
        gt_in_unit_interval=gt_in_unit_interval,
    )

    total = rows * LANES
    in_bytes = total * (pred2d.dtype.itemsize + gt2d.dtype.itemsize)
    cost = pl.CostEstimate(
        flops=11 * total,
        transcendentals=total,
        bytes_accessed=in_bytes + 2 * num_shards * 8 * LANES * 4,
    )

    loss_parts, pos_parts = pl.pallas_call(
        kernel,
        out_shape=(
            jax.ShapeDtypeStruct((num_shards * 8, LANES), jnp.float32),
            jax.ShapeDtypeStruct((num_shards * 8, LANES), jnp.float32),
        ),
        grid=(num_shards, blocks_per_shard),
        in_specs=[
            pl.BlockSpec((tile_rows, LANES), in_idx),
            pl.BlockSpec((tile_rows, LANES), in_idx),
        ],
        out_specs=(
            pl.BlockSpec((8, LANES), lambda c, i: (c, 0)),
            pl.BlockSpec((8, LANES), lambda c, i: (c, 0)),
        ),
        compiler_params=pltpu.CompilerParams(
            dimension_semantics=("parallel", "arbitrary")),
        cost_estimate=cost,
    )(pred2d, gt2d)

    loss_sum = jnp.sum(loss_parts)
    num_pos = jnp.sum(pos_parts)
    # When num_pos == 0 every pos_loss term is 0, so -loss_sum == -neg_loss_sum:
    # the reference if/else collapses to this single expression.
    return -loss_sum / jnp.maximum(num_pos, 1.0)


def _reference_loss(pred, gt):
    """Pure-JAX reference mirroring the PyTorch _planes_neg_loss."""
    pred = pred.astype(jnp.float32)
    gt = gt.astype(jnp.float32)
    pos_inds = (gt == 1.0).astype(jnp.float32)
    neg_inds = (gt < 1.0).astype(jnp.float32)
    neg_weights = (1.0 - gt) ** 4
    pos_loss = jnp.log(pred) * (1.0 - pred) ** 2 * pos_inds
    neg_loss = jnp.log(1.0 - pred) * pred ** 2 * neg_weights * neg_inds
    num_pos = pos_inds.sum()
    pos_loss = pos_loss.sum()
    neg_loss = neg_loss.sum()
    return jnp.where(
        num_pos == 0.0,
        -neg_loss,
        -(pos_loss + neg_loss) / jnp.maximum(num_pos, 1.0),
    )


if __name__ == "__main__":
    key = jax.random.PRNGKey(0)
    k1, k2, k3 = jax.random.split(key, 3)

    # Small analogue of the documented [B, 6, 4, 96, 320] heatmap shape.
    shape = (2, 6, 4, 16, 128)

    # Predictions in (0, 1) (the module expects post-sigmoid heatmaps).
    pred = jax.nn.sigmoid(jax.random.normal(k1, shape, jnp.float32))
    # Ground-truth heatmap in [0, 1) with a sparse set of exact-1 peaks.
    gt = jax.random.uniform(k2, shape, jnp.float32, 0.0, 0.99)
    peak_mask = jax.random.uniform(k3, shape, jnp.float32) < 0.01
    gt = jnp.where(peak_mask, 1.0, gt)

    loss = planes_focal_loss(pred, gt)
    loss = jax.block_until_ready(loss)

    ref = jax.block_until_ready(_reference_loss(pred, gt))
    assert jnp.isfinite(loss), "kernel produced non-finite loss"
    assert abs(float(loss) - float(ref)) <= 1e-3 * (abs(float(ref)) + 1e-6), (
        float(loss), float(ref))

    print("KERNEL_OK")
</pallas_src>

<mosaic_0001>
module attributes {stable_mosaic.version = 11 : i64} {
  func.func @_focal_sums_kernel(%arg0: i32, %arg1: i32, %arg2: memref<768x128xf32, #tpu.memory_space<vmem>>, %arg3: memref<768x128xf32, #tpu.memory_space<vmem>>, %arg4: memref<8x128xf32, #tpu.memory_space<vmem>>, %arg5: memref<8x128xf32, #tpu.memory_space<vmem>>) attributes {dimension_semantics = [#tpu.dimension_semantics<parallel>, #tpu.dimension_semantics<arbitrary>], iteration_bounds = array<i64: 1, 1>, scalar_prefetch = 0 : i64, scratch_operands = 0 : i64, tpu.core_type = #tpu.core_type<tc>, window_params = [{transform_indices = @transform_0, window_bounds = array<i64: 768, 128>}, {transform_indices = @transform_1, window_bounds = array<i64: 768, 128>}, {transform_indices = @transform_2, window_bounds = array<i64: 8, 128>}, {transform_indices = @transform_3, window_bounds = array<i64: 8, 128>}]} {
    %c0_i32 = arith.constant 0 : i32
    %0 = arith.cmpi eq, %arg1, %c0_i32 : i32
    %1 = arith.extui %0 : i1 to i32
    %c0_i32_0 = arith.constant 0 : i32
    %2 = arith.cmpi ne, %1, %c0_i32_0 : i32
    scf.if %2 {
      %cst_16 = arith.constant 0.000000e+00 : f32
      %32 = vector.broadcast %cst_16 : f32 to vector<8x128xf32>
      %c0_17 = arith.constant 0 : index
      %c0_18 = arith.constant 0 : index
      %33 = vector.load %arg4[%c0_17, %c0_18] : memref<8x128xf32, #tpu.memory_space<vmem>>, vector<8x128xf32>
      tpu.vector_store %arg4[%c0_17, %c0_18], %32 {strides = array<i32>} : memref<8x128xf32, #tpu.memory_space<vmem>>, vector<8x128xf32>,
      %cst_19 = arith.constant 0.000000e+00 : f32
      %34 = vector.broadcast %cst_19 : f32 to vector<8x128xf32>
      %c0_20 = arith.constant 0 : index
      %c0_21 = arith.constant 0 : index
      %35 = vector.load %arg5[%c0_20, %c0_21] : memref<8x128xf32, #tpu.memory_space<vmem>>, vector<8x128xf32>
      tpu.vector_store %arg5[%c0_20, %c0_21], %34 {strides = array<i32>} : memref<8x128xf32, #tpu.memory_space<vmem>>, vector<8x128xf32>,
    } else {
    }
    %c0 = arith.constant 0 : index
    %c0_1 = arith.constant 0 : index
    %3 = vector.load %arg2[%c0, %c0_1] : memref<768x128xf32, #tpu.memory_space<vmem>>, vector<768x128xf32>
    %c0_2 = arith.constant 0 : index
    %c0_3 = arith.constant 0 : index
    %4 = vector.load %arg3[%c0_2, %c0_3] : memref<768x128xf32, #tpu.memory_space<vmem>>, vector<768x128xf32>
    %cst = arith.constant 1.000000e+00 : f32
    %5 = vector.broadcast %cst : f32 to vector<768x128xf32>
    %6 = arith.cmpf oeq, %4, %5 : vector<768x128xf32>
    %7 = arith.extui %6 : vector<768x128xi1> to vector<768x128xi32>
    %8 = arith.sitofp %7 : vector<768x128xi32> to vector<768x128xf32>
    %cst_4 = arith.constant 1.000000e+00 : f32
    %9 = vector.broadcast %cst_4 : f32 to vector<768x128xf32>
    %10 = arith.subf %9, %3 : vector<768x128xf32>
    %cst_5 = arith.constant 1.000000e+00 : f32
    %11 = vector.broadcast %cst_5 : f32 to vector<768x128xf32>
    %12 = arith.subf %11, %4 : vector<768x128xf32>
    %13 = arith.mulf %12, %12 : vector<768x128xf32>
    %14 = arith.mulf %13, %13 : vector<768x128xf32>
    %15 = arith.select %6, %3, %10 : vector<768x128xi1>, vector<768x128xf32>
    %16 = math.log %15 : vector<768x128xf32>
    %17 = arith.mulf %3, %3 : vector<768x128xf32>
    %18 = arith.mulf %17, %14 : vector<768x128xf32>
    %19 = arith.mulf %10, %10 : vector<768x128xf32>
    %20 = arith.select %6, %19, %18 : vector<768x128xi1>, vector<768x128xf32>
    %21 = arith.mulf %16, %20 : vector<768x128xf32>
    %c0_6 = arith.constant 0 : index
    %c0_7 = arith.constant 0 : index
    %22 = vector.load %arg4[%c0_6, %c0_7] : memref<8x128xf32, #tpu.memory_space<vmem>>, vector<8x128xf32>
    %23 = vector.shape_cast %21 : vector<768x128xf32> to vector<96x8x128xf32>
    %cst_8 = arith.constant dense<0.000000e+00> : vector<8x128xf32>
    %24 = vector.multi_reduction <add>, %23, %cst_8 [0] : vector<96x8x128xf32> to vector<8x128xf32>
    %25 = arith.addf %22, %24 : vector<8x128xf32>
    %c0_9 = arith.constant 0 : index
    %c0_10 = arith.constant 0 : index
    %26 = vector.load %arg4[%c0_9, %c0_10] : memref<8x128xf32, #tpu.memory_space<vmem>>, vector<8x128xf32>
    tpu.vector_store %arg4[%c0_9, %c0_10], %25 {strides = array<i32>} : memref<8x128xf32, #tpu.memory_space<vmem>>, vector<8x128xf32>,
    %c0_11 = arith.constant 0 : index
    %c0_12 = arith.constant 0 : index
    %27 = vector.load %arg5[%c0_11, %c0_12] : memref<8x128xf32, #tpu.memory_space<vmem>>, vector<8x128xf32>
    %28 = vector.shape_cast %8 : vector<768x128xf32> to vector<96x8x128xf32>
    %cst_13 = arith.constant dense<0.000000e+00> : vector<8x128xf32>
    %29 = vector.multi_reduction <add>, %28, %cst_13 [0] : vector<96x8x128xf32> to vector<8x128xf32>
    %30 = arith.addf %27, %29 : vector<8x128xf32>
    %c0_14 = arith.constant 0 : index
    %c0_15 = arith.constant 0 : index
    %31 = vector.load %arg5[%c0_14, %c0_15] : memref<8x128xf32, #tpu.memory_space<vmem>>, vector<8x128xf32>
    tpu.vector_store %arg5[%c0_14, %c0_15], %30 {strides = array<i32>} : memref<8x128xf32, #tpu.memory_space<vmem>>, vector<8x128xf32>,
    return
  }
  func.func @transform_0(%arg0: i32, %arg1: i32) -> (i32, i32) {
    %c1_i32 = arith.constant 1 : i32
    %0 = arith.muli %arg0, %c1_i32 : i32
    %1 = arith.addi %0, %arg1 : i32
    %c0_i32 = arith.constant 0 : i32
    %c0_i32_0 = arith.constant 0 : i32
    return %1, %c0_i32 : i32, i32
  }
  func.func @transform_1(%arg0: i32, %arg1: i32) -> (i32, i32) {
    %c1_i32 = arith.constant 1 : i32
    %0 = arith.muli %arg0, %c1_i32 : i32
    %1 = arith.addi %0, %arg1 : i32
    %c0_i32 = arith.constant 0 : i32
    %c0_i32_0 = arith.constant 0 : i32
    return %1, %c0_i32 : i32, i32
  }
  func.func @transform_2(%arg0: i32, %arg1: i32) -> (i32, i32) {
    %c0_i32 = arith.constant 0 : i32
    %c0_i32_0 = arith.constant 0 : i32
    return %arg0, %c0_i32 : i32, i32
  }
  func.func @transform_3(%arg0: i32, %arg1: i32) -> (i32, i32) {
    %c0_i32 = arith.constant 0 : i32
    %c0_i32_0 = arith.constant 0 : i32
    return %arg0, %c0_i32 : i32, i32
  }
}

</mosaic_0001>

<bundles_post_ra>
// kernel: tpu_custom_call.1
= control target key start
LH: loop header
LB: loop body
LE: loop exit
PB: predicated region body
PF: predicated region fallthrough
CT: control target
= control target key end

     0   :  { %9 = vsyncpa [#allocation3], 0  ;;  %s6378_s0 = inlined_call_operand.hbm [shape: f32[768,128], index: 0, kind: input, shape index: {}]   ;;  %s6379_s1 = inlined_call_operand.hbm [shape: f32[768,128], index: 1, kind: input, shape index: {}]   ;;  %s6380_s2 = inlined_call_operand.hbm [shape: f32[8,128], index: 2, kind: output, shape index: {0}]   ;;  %s6381_s3 = inlined_call_operand.hbm [shape: f32[8,128], index: 3, kind: output, shape index: {1}]  }
   0x1   :  { %10 = vsyncpa [#allocation6], 0 }
   0x2   :  { %11 = vsyncpa [#allocation4], 0 }
   0x3   :  { %12 = vsyncpa [#allocation9], 0  ;;  %s2409_s12 = smov [#allocation2]   ;;  %s2313_s16 = scalar_lea.hbm %s6378_s0, 12288 }
   0x4   :  { %s22_s13 = sshll.u32 %s2409_s12, 4  ;;  %p2314_p0 = scmp.ne.s32.totalorder %s6378_s0, %s2313_s16  ;;  %s23_s13 = int_to_ptr.vmem [resolvable:$true] %s22_s13 }
   0x5   :  { %p2317_p1 = scmp.lt.u32.totalorder %s2313_s16, %s6378_s0 }
   0x7   :  { %p2319_p2 = pnand %p2317_p1, %p2314_p0 }
   0x9   :  { %2322 = shalt.err (!%p2319_p2)
}
   0xa   :  { %s2323_s21 = scalar_lea.vmem %s23_s13, 12288  ;;  %p2328_p4 = scmp.lt.s32.totalorder %s23_s13, %s23_s13 }
   0xb   :  { %p2324_p3 = scmp.ne.s32.totalorder %s23_s13, %s2323_s21  ;;  %p2329_p5 = scmp.lt.s32.totalorder %s2323_s21, %s2323_s21 }
   0xd   :  { %p2330_p6 = por %p2329_p5, %p2328_p4 }
   0xf   :  { %p2331_p7 = pnand %p2330_p6, %p2324_p3 }
  0x11   :  { %2334 = shalt.err (!%p2331_p7)
}
  0x12   :  { %s2410_s22 = smov 128   ;;  %s2411_s23 = smov 8  }
  0x13   :  { %28 = dma.hbm_to_vmem [thread:$0]  %s6378_s0, 12288, %s23_s13, [#allocation3], %s2410_s22, %s2410_s22, %s2411_s23  }
  0x14   :  { %s2412_s26 = smov [#allocation5]   ;;  %s2335_s30 = scalar_lea.hbm %s6379_s1, 12288 }
  0x15   :  { %s38_s27 = sshll.u32 %s2412_s26, 4  ;;  %p2336_p8 = scmp.ne.s32.totalorder %s6379_s1, %s2335_s30  ;;  %s39_s27 = int_to_ptr.vmem [resolvable:$true] %s38_s27 }
  0x16   :  { %p2339_p9 = scmp.lt.u32.totalorder %s2335_s30, %s6379_s1 }
  0x18   :  { %p2341_p10 = pnand %p2339_p9, %p2336_p8 }
  0x1a   :  { %2344 = shalt.err (!%p2341_p10)
}
  0x1b   :  { %s2345_s8 = scalar_lea.vmem %s39_s27, 12288  ;;  %p2350_p12 = scmp.lt.s32.totalorder %s39_s27, %s39_s27 }
  0x1c   :  { %p2346_p11 = scmp.ne.s32.totalorder %s39_s27, %s2345_s8  ;;  %p2351_p13 = scmp.lt.s32.totalorder %s2345_s8, %s2345_s8 }
  0x1e   :  { %p2352_p0 = por %p2351_p13, %p2350_p12 }
  0x20   :  { %p2353_p1 = pnand %p2352_p0, %p2346_p11 }
  0x22   :  { %2356 = shalt.err (!%p2353_p1)
}
  0x23   :  { %44 = dma.hbm_to_vmem [thread:$0]  %s6379_s1, 12288, %s39_s27, [#allocation6], %s2410_s22, %s2410_s22, %s2411_s23  }
  0x24   :  { %2401 = dma.done.wait [#allocation3], 12288  }
  0x25   :  { %2402 = vsyncadd [#allocation3], 4294955008 }
  0x26   :  { %2403 = dma.done.wait [#allocation6], 12288  }
  0x27   :  { %2404 = vsyncadd [#allocation6], 4294955008  ;;  %v2460_v0 = vld [vmem:[#allocation2] sm:$0xff]  ;;  %v2462_v1 = vld [vmem:[#allocation2 + $0x8] sm:$0xff]  ;;  %s2414_s1 = smov [#allocation7]   ;;  %s2415_s11 = smov [#allocation8]  }
  0x28   :  { %v2464_v2 = vld [vmem:[#allocation2 + $0x10] sm:$0xff]  ;;  %v2466_v3 = vld [vmem:[#allocation2 + $0x18] sm:$0xff]  ;;  %v2468_v4 = vld [vmem:[#allocation2 + $0x20] sm:$0xff]  ;;  %v2481_v10 = vsub.f32 1.0, %v2460_v0  ;;  %v2490_v14 = vsub.f32 1.0, %v2462_v1  ;;  %s1895_s10 = sshll.u32 %s2414_s1, 4  ;;  %s1896_s10 = int_to_ptr.vmem [resolvable:$true] %s1895_s10 }
  0x29   :  { %v2470_v5 = vld [vmem:[#allocation2 + $0x28] sm:$0xff]  ;;  %v2472_v6 = vld [vmem:[#allocation2 + $0x30] sm:$0xff]  ;;  %v2474_v7 = vld [vmem:[#allocation2 + $0x38] sm:$0xff]  ;;  %v2493_v15 = vsub.f32 1.0, %v2464_v2  ;;  %v2496_v16 = vsub.f32 1.0, %v2466_v3  ;;  %v2505_v20 = vsub.f32 1.0, %v2468_v4  ;;  %p2362_p3 = scmp.lt.s32.totalorder %s1896_s10, %s1896_s10 }
  0x2a   :  { %v2476_v8 = vld [vmem:[#allocation2 + $0x40] sm:$0xff]  ;;  %v2478_v9 = vld [vmem:[#allocation2 + $0x48] sm:$0xff]  ;;  %6765 = vst [vmem:[#allocation14_spill] sm:$0xff] %v2481_v10  ;;  %v2483_v11 = vld [vmem:[#allocation2 + $0x50] sm:$0xff]  ;;  %v2508_v21 = vsub.f32 1.0, %v2470_v5  ;;  %v2511_v22 = vsub.f32 1.0, %v2472_v6 }
  0x2b   :  { %v2485_v12 = vld [vmem:[#allocation2 + $0x58] sm:$0xff]  ;;  %v2487_v13 = vld [vmem:[#allocation2 + $0x60] sm:$0xff]  ;;  %6766 = vst [vmem:[#allocation15_spill] sm:$0xff] %v2490_v14  ;;  %6767 = vst [vmem:[#allocation16_spill] sm:$0xff] %v2493_v15  ;;  %v2520_v26 = vsub.f32 1.0, %v2474_v7  ;;  %v2523_v27 = vsub.f32 1.0, %v2476_v8 }
  0x2c   :  { %6768 = vst [vmem:[#allocation17_spill] sm:$0xff] %v2496_v16  ;;  %v2498_v17 = vld [vmem:[#allocation2 + $0x68] sm:$0xff]  ;;  %v2500_v18 = vld [vmem:[#allocation2 + $0x70] sm:$0xff]  ;;  %v2502_v19 = vld [vmem:[#allocation2 + $0x78] sm:$0xff]  ;;  %v2526_v28 = vsub.f32 1.0, %v2478_v9  ;;  %v2535_v32 = vsub.f32 1.0, %v2483_v11 }
  0x2d   :  { %6769 = vst [vmem:[#allocation18_spill] sm:$0xff] %v2505_v20  ;;  %6770 = vst [vmem:[#allocation19_spill] sm:$0xff] %v2508_v21  ;;  %v2513_v23 = vld [vmem:[#allocation2 + $0x80] sm:$0xff]  ;;  %v2515_v24 = vld [vmem:[#allocation2 + $0x88] sm:$0xff]  ;;  %v2538_v33 = vsub.f32 1.0, %v2485_v12  ;;  %v2541_v34 = vsub.f32 1.0, %v2487_v13 }
  0x2e   :  { %6771 = vst [vmem:[#allocation20_spill] sm:$0xff] %v2511_v22  ;;  %v2517_v25 = vld [vmem:[#allocation2 + $0x90] sm:$0xff]  ;;  %6772 = vst [vmem:[#allocation21_spill] sm:$0xff] %v2520_v26  ;;  %v2528_v29 = vld [vmem:[#allocation2 + $0x98] sm:$0xff]  ;;  %v2550_v38 = vsub.f32 1.0, %v2498_v17  ;;  %v2553_v39 = vsub.f32 1.0, %v2500_v18 }
  0x2f   :  { %6773 = vst [vmem:[#allocation22_spill] sm:$0xff] %v2523_v27  ;;  %6774 = vst [vmem:[#allocation23_spill] sm:$0xff] %v2526_v28  ;;  %v2530_v30 = vld [vmem:[#allocation2 + $0xa0] sm:$0xff]  ;;  %v2532_v31 = vld [vmem:[#allocation2 + $0xa8] sm:$0xff]  ;;  %v2556_v40 = vsub.f32 1.0, %v2502_v19  ;;  %v2565_v44 = vsub.f32 1.0, %v2513_v23 }
  0x30   :  { %6775 = vst [vmem:[#allocation24_spill] sm:$0xff] %v2528_v29  ;;  %6776 = vst [vmem:[#allocation25_spill] sm:$0xff] %v2530_v30  ;;  %v2543_v35 = vld [vmem:[#allocation2 + $0xb0] sm:$0xff]  ;;  %v2545_v36 = vld [vmem:[#allocation2 + $0xb8] sm:$0xff]  ;;  %v2568_v45 = vsub.f32 1.0, %v2515_v24  ;;  %v2571_v46 = vsub.f32 1.0, %v2517_v25 }
  0x31   :  { %6777 = vst [vmem:[#allocation26_spill] sm:$0xff] %v2532_v31  ;;  %6778 = vst [vmem:[#allocation27_spill] sm:$0xff] %v2535_v32  ;;  %v2547_v37 = vld [vmem:[#allocation2 + $0xc0] sm:$0xff]  ;;  %v2558_v41 = vld [vmem:[#allocation2 + $0xc8] sm:$0xff]  ;;  %v2578_v50 = vsub.f32 1.0, %v2528_v29  ;;  %v2581_v51 = vsub.f32 1.0, %v2530_v30 }
  0x32   :  { %6779 = vst [vmem:[#allocation28_spill] sm:$0xff] %v2538_v33  ;;  %6780 = vst [vmem:[#allocation29_spill] sm:$0xff] %v2541_v34  ;;  %v2560_v42 = vld [vmem:[#allocation2 + $0xd0] sm:$0xff]  ;;  %v2562_v43 = vld [vmem:[#allocation2 + $0xd8] sm:$0xff]  ;;  %v2584_v52 = vsub.f32 1.0, %v2532_v31  ;;  %v2587_v56 = vsub.f32 1.0, %v2543_v35 }
  0x33   :  { %6781 = vst [vmem:[#allocation30_spill] sm:$0xff] %v2543_v35  ;;  %6782 = vst [vmem:[#allocation31_spill] sm:$0xff] %v2545_v36  ;;  %v2573_v47 = vld [vmem:[#allocation2 + $0xe0] sm:$0xff]  ;;  %v2575_v48 = vld [vmem:[#allocation2 + $0xe8] sm:$0xff]  ;;  %v2590_v57 = vsub.f32 1.0, %v2545_v36  ;;  %v2593_v58 = vsub.f32 1.0, %v2547_v37 }
  0x34   :  { %6783 = vst [vmem:[#allocation32_spill] sm:$0xff] %v2547_v37  ;;  %6784 = vst [vmem:[#allocation33_spill] sm:$0xff] %v2550_v38  ;;  %v91_v49 = vld [vmem:[#allocation2 + $0xf0] sm:$0xff]  ;;  %v92_v53 = vld [vmem:[#allocation2 + $0xf8] sm:$0xff]  ;;  %v2596_v62 = vsub.f32 1.0, %v2558_v41  ;;  %v2599_v63 = vsub.f32 1.0, %v2560_v42 }
  0x35   :  { %6785 = vst [vmem:[#allocation34_spill] sm:$0xff] %v2553_v39  ;;  %6786 = vst [vmem:[#allocation35_spill] sm:$0xff] %v2556_v40  ;;  %v93_v54 = vld [vmem:[#allocation2 + $0x100] sm:$0xff]  ;;  %v94_v55 = vld [vmem:[#allocation2 + $0x108] sm:$0xff]  ;;  %v2602_v31 = vsub.f32 1.0, %v2562_v43  ;;  %v2605_v36 = vsub.f32 1.0, %v2573_v47 }
  0x36   :  { %6787 = vst [vmem:[#allocation36_spill] sm:$0xff] %v2558_v41  ;;  %6788 = vst [vmem:[#allocation37_spill] sm:$0xff] %v2560_v42  ;;  %v95_v59 = vld [vmem:[#allocation2 + $0x110] sm:$0xff]  ;;  %v96_v60 = vld [vmem:[#allocation2 + $0x118] sm:$0xff]  ;;  %v2608_v37 = vsub.f32 1.0, %v2575_v48  ;;  %v2612_v30 = vsub.f32 1.0, %v92_v53 }
  0x37   :  { %6789 = vst [vmem:[#allocation38_spill] sm:$0xff] %v2562_v43  ;;  %6790 = vst [vmem:[#allocation39_spill] sm:$0xff] %v2565_v44  ;;  %v97_v61 = vld [vmem:[#allocation2 + $0x120] sm:$0xff]  ;;  %v98_v35 = vld [vmem:[#allocation2 + $0x128] sm:$0xff]  ;;  %v2614_v42 = vsub.f32 1.0, %v93_v54  ;;  %v2616_v43 = vsub.f32 1.0, %v94_v55 }
  0x38   :  { %6791 = vst [vmem:[#allocation40_spill] sm:$0xff] %v2568_v45  ;;  %6792 = vst [vmem:[#allocation41_spill] sm:$0xff] %v2571_v46  ;;  %v102_v41 = vld [vmem:[#allocation2 + $0x148] sm:$0xff]  ;;  %v2618_v29 = vsub.f32 1.0, %v95_v59  ;;  %s1905_s12 = sshll.u32 %s2415_s11, 4  ;;  %s2357_s13 = scalar_lea.vmem %s1896_s10, 128  ;;  %s1906_s12 = int_to_ptr.vmem [resolvable:$true] %s1905_s12 }
  0x39   :  { %6793 = vst [vmem:[#allocation42_spill] sm:$0xff] %v2573_v47  ;;  %6794 = vst [vmem:[#allocation43_spill] sm:$0xff] %v2575_v48  ;;  %v2620_v47 = vsub.f32 1.0, %v96_v60  ;;  %v2622_v48 = vsub.f32 1.0, %v97_v61  ;;  %v110_v55 = vld [vmem:[#allocation2 + $0x188] sm:$0xff]  ;;  %v2632_v59 = vsub.f32 1.0, %v102_v41  ;;  %p2358_p2 = scmp.ne.s32.totalorder %s1896_s10, %s2357_s13  ;;  %p2363_p4 = scmp.lt.s32.totalorder %s2357_s13, %s2357_s13 }
  0x3a   :  { %6795 = vst [vmem:[#allocation44_spill] sm:$0xff] %v2578_v50  ;;  %6796 = vst [vmem:[#allocation45_spill] sm:$0xff] %v2581_v51  ;;  %v106_v51 = vld [vmem:[#allocation2 + $0x168] sm:$0xff]  ;;  %v113_v61 = vld [vmem:[#allocation2 + $0x1a0] sm:$0xff] }
  0x3b   :  { %6797 = vst [vmem:[#allocation46_spill] sm:$0xff] %v2584_v52  ;;  %6798 = vst [vmem:[#allocation47_spill] sm:$0xff] %v2587_v56  ;;  %v99_v56 = vld [vmem:[#allocation2 + $0x130] sm:$0xff]  ;;  %v100_v52 = vld [vmem:[#allocation2 + $0x138] sm:$0xff]  ;;  %p2364_p5 = por %p2363_p4, %p2362_p3 }
  0x3c   :  { %6799 = vst [vmem:[#allocation48_spill] sm:$0xff] %v2590_v57  ;;  %6800 = vst [vmem:[#allocation49_spill] sm:$0xff] %v2593_v58  ;;  %v2610_v58 = vsub.f32 1.0, %v91_v49  ;;  %v101_v57 = vld [vmem:[#allocation2 + $0x140] sm:$0xff]  ;;  %v107_v49 = vld [vmem:[#allocation2 + $0x170] sm:$0xff]  ;;  %v2626_v53 = vsub.f32 1.0, %v99_v56 }
  0x3d   :  { %6801 = vst [vmem:[#allocation50_spill] sm:$0xff] %v2596_v62  ;;  %6802 = vst [vmem:[#allocation51_spill] sm:$0xff] %v2599_v63  ;;  %v103_v62 = vld [vmem:[#allocation2 + $0x150] sm:$0xff]  ;;  %v105_v63 = vld [vmem:[#allocation2 + $0x160] sm:$0xff]  ;;  %v2628_v54 = vsub.f32 1.0, %v100_v52  ;;  %v2640_v56 = vsub.f32 1.0, %v106_v51  ;;  %p2365_p6 = pnand %p2364_p5, %p2358_p2 }
  0x3e   :  { %6803 = vst [vmem:[#allocation52_spill] sm:$0xff] %v2602_v31  ;;  %6804 = vst [vmem:[#allocation53_spill] sm:$0xff] %v2605_v36  ;;  %v104_v31 = vld [vmem:[#allocation2 + $0x158] sm:$0xff]  ;;  %v2624_v36 = vsub.f32 1.0, %v98_v35  ;;  %v2634_v60 = vsub.f32 1.0, %v103_v62  ;;  %v2638_v35 = vsub.f32 1.0, %v105_v63 }
  0x3f   :  { %6805 = vst [vmem:[#allocation54_spill] sm:$0xff] %v2608_v37  ;;  %6806 = vst [vmem:[#allocation55_spill] sm:$0xff] %v2610_v58  ;;  %v108_v58 = vld [vmem:[#allocation2 + $0x178] sm:$0xff]  ;;  %v109_v37 = vld [vmem:[#allocation2 + $0x180] sm:$0xff] }
  0x40   :  { %6807 = vst [vmem:[#allocation56_spill] sm:$0xff] %v2612_v30  ;;  %6808 = vst [vmem:[#allocation57_spill] sm:$0xff] %v2614_v42  ;;  %v112_v42 = vld [vmem:[#allocation2 + $0x198] sm:$0xff]  ;;  %v2630_v30 = vsub.f32 1.0, %v101_v57  ;;  %v2644_v57 = vsub.f32 1.0, %v108_v58  ;;  %v2646_v41 = vsub.f32 1.0, %v109_v37 }
  0x41   :  { %6809 = vst [vmem:[#allocation58_spill] sm:$0xff] %v2616_v43  ;;  %6810 = vst [vmem:[#allocation59_spill] sm:$0xff] %v2618_v29  ;;  %v111_v43 = vld [vmem:[#allocation2 + $0x190] sm:$0xff]  ;;  %v2636_v29 = vsub.f32 1.0, %v104_v31  ;;  %v116_v52 = vld [vmem:[#allocation2 + $0x1b8] sm:$0xff]  ;;  %v2652_v63 = vsub.f32 1.0, %v112_v42 }
  0x42   :  { %6811 = vst [vmem:[#allocation60_spill] sm:$0xff] %v2620_v47  ;;  %6812 = vst [vmem:[#allocation61_spill] sm:$0xff] %v2622_v48  ;;  %v114_v48 = vld [vmem:[#allocation2 + $0x1a8] sm:$0xff]  ;;  %v115_v47 = vld [vmem:[#allocation2 + $0x1b0] sm:$0xff]  ;;  %v2650_v31 = vsub.f32 1.0, %v111_v43 }
  0x43   :  { %6813 = vst [vmem:[#allocation62_spill] sm:$0xff] %v2624_v36  ;;  %6814 = vst [vmem:[#allocation63_spill] sm:$0xff] %v2626_v53  ;;  %v118_v53 = vld [vmem:[#allocation2 + $0x1c8] sm:$0xff]  ;;  %v2642_v36 = vsub.f32 1.0, %v107_v49  ;;  %v119_v62 = vld [vmem:[#allocation2 + $0x1d0] sm:$0xff]  ;;  %v2656_v49 = vsub.f32 1.0, %v114_v48 }
  0x44   :  { %6815 = vst [vmem:[#allocation64_spill] sm:$0xff] %v2628_v54  ;;  %6816 = vst [vmem:[#allocation65_spill] sm:$0xff] %v2630_v30  ;;  %v117_v54 = vld [vmem:[#allocation2 + $0x1c0] sm:$0xff]  ;;  %v2648_v30 = vsub.f32 1.0, %v110_v55  ;;  %v122_v51 = vld [vmem:[#allocation2 + $0x1e8] sm:$0xff]  ;;  %v2658_v58 = vsub.f32 1.0, %v115_v47 }
  0x45   :  { %6817 = vst [vmem:[#allocation66_spill] sm:$0xff] %v2632_v59  ;;  %6818 = vst [vmem:[#allocation67_spill] sm:$0xff] %v2634_v60  ;;  %v120_v60 = vld [vmem:[#allocation2 + $0x1d8] sm:$0xff]  ;;  %v121_v59 = vld [vmem:[#allocation2 + $0x1e0] sm:$0xff]  ;;  %v2662_v55 = vsub.f32 1.0, %v117_v54  ;;  %v2664_v43 = vsub.f32 1.0, %v118_v53 }
  0x46   :  { %6819 = vst [vmem:[#allocation68_spill] sm:$0xff] %v2636_v29  ;;  %6820 = vst [vmem:[#allocation69_spill] sm:$0xff] %v2638_v35  ;;  %v124_v35 = vld [vmem:[#allocation2 + $0x1f8] sm:$0xff]  ;;  %v2654_v29 = vsub.f32 1.0, %v113_v61  ;;  %v125_v37 = vld [vmem:[#allocation2 + $0x200] sm:$0xff]  ;;  %v2668_v61 = vsub.f32 1.0, %v120_v60 }
  0x47   :  { %6821 = vst [vmem:[#allocation70_spill] sm:$0xff] %v2640_v56  ;;  %6822 = vst [vmem:[#allocation71_spill] sm:$0xff] %v2642_v36  ;;  %v123_v56 = vld [vmem:[#allocation2 + $0x1f0] sm:$0xff]  ;;  %v2660_v36 = vsub.f32 1.0, %v116_v52  ;;  %v128_v42 = vld [vmem:[#allocation2 + $0x218] sm:$0xff]  ;;  %v2670_v48 = vsub.f32 1.0, %v121_v59 }
  0x48   :  { %6823 = vst [vmem:[#allocation72_spill] sm:$0xff] %v2644_v57  ;;  %6824 = vst [vmem:[#allocation73_spill] sm:$0xff] %v2646_v41  ;;  %v126_v41 = vld [vmem:[#allocation2 + $0x208] sm:$0xff]  ;;  %v127_v57 = vld [vmem:[#allocation2 + $0x210] sm:$0xff]  ;;  %v2674_v52 = vsub.f32 1.0, %v123_v56  ;;  %v2676_v54 = vsub.f32 1.0, %v124_v35 }
  0x49   :  { %6825 = vst [vmem:[#allocation74_spill] sm:$0xff] %v2648_v30  ;;  %6826 = vst [vmem:[#allocation75_spill] sm:$0xff] %v2650_v31  ;;  %v130_v31 = vld [vmem:[#allocation2 + $0x228] sm:$0xff]  ;;  %v2666_v30 = vsub.f32 1.0, %v119_v62  ;;  %v131_v47 = vld [vmem:[#allocation2 + $0x230] sm:$0xff]  ;;  %v2680_v62 = vsub.f32 1.0, %v126_v41 }
  0x4a   :  { %6827 = vst [vmem:[#allocation76_spill] sm:$0xff] %v2652_v63  ;;  %6828 = vst [vmem:[#allocation77_spill] sm:$0xff] %v2654_v29  ;;  %v129_v63 = vld [vmem:[#allocation2 + $0x220] sm:$0xff]  ;;  %v2672_v29 = vsub.f32 1.0, %v122_v51  ;;  %v134_v53 = vld [vmem:[#allocation2 + $0x248] sm:$0xff]  ;;  %v2682_v60 = vsub.f32 1.0, %v127_v57 }
  0x4b   :  { %6829 = vst [vmem:[#allocation78_spill] sm:$0xff] %v2656_v49  ;;  %6830 = vst [vmem:[#allocation79_spill] sm:$0xff] %v2658_v58  ;;  %v132_v58 = vld [vmem:[#allocation2 + $0x238] sm:$0xff]  ;;  %v133_v49 = vld [vmem:[#allocation2 + $0x240] sm:$0xff]  ;;  %v2686_v51 = vsub.f32 1.0, %v129_v63  ;;  %v2688_v56 = vsub.f32 1.0, %v130_v31 }
  0x4c   :  { %6831 = vst [vmem:[#allocation80_spill] sm:$0xff] %v2660_v36  ;;  %6832 = vst [vmem:[#allocation81_spill] sm:$0xff] %v2662_v55  ;;  %v136_v55 = vld [vmem:[#allocation2 + $0x258] sm:$0xff]  ;;  %v2678_v36 = vsub.f32 1.0, %v125_v37  ;;  %v137_v59 = vld [vmem:[#allocation2 + $0x260] sm:$0xff]  ;;  %v2692_v37 = vsub.f32 1.0, %v132_v58 }
  0x4d   :  { %6833 = vst [vmem:[#allocation82_spill] sm:$0xff] %v2664_v43  ;;  %6834 = vst [vmem:[#allocation83_spill] sm:$0xff] %v2666_v30  ;;  %v135_v43 = vld [vmem:[#allocation2 + $0x250] sm:$0xff]  ;;  %v2684_v30 = vsub.f32 1.0, %v128_v42  ;;  %v140_v35 = vld [vmem:[#allocation2 + $0x278] sm:$0xff]  ;;  %v2694_v41 = vsub.f32 1.0, %v133_v49 }
  0x4e   :  { %6835 = vst [vmem:[#allocation84_spill] sm:$0xff] %v2668_v61  ;;  %6836 = vst [vmem:[#allocation85_spill] sm:$0xff] %v2670_v48  ;;  %v138_v48 = vld [vmem:[#allocation2 + $0x268] sm:$0xff]  ;;  %v139_v61 = vld [vmem:[#allocation2 + $0x270] sm:$0xff]  ;;  %v2698_v42 = vsub.f32 1.0, %v135_v43  ;;  %v2700_v63 = vsub.f32 1.0, %v136_v55 }
  0x4f   :  { %6837 = vst [vmem:[#allocation86_spill] sm:$0xff] %v2672_v29  ;;  %6838 = vst [vmem:[#allocation87_spill] sm:$0xff] %v2674_v52  ;;  %v142_v52 = vld [vmem:[#allocation2 + $0x288] sm:$0xff]  ;;  %v2690_v29 = vsub.f32 1.0, %v131_v47  ;;  %v143_v57 = vld [vmem:[#allocation2 + $0x290] sm:$0xff]  ;;  %v2704_v47 = vsub.f32 1.0, %v138_v48 }
  0x50   :  { %6839 = vst [vmem:[#allocation88_spill] sm:$0xff] %v2676_v54  ;;  %6840 = vst [vmem:[#allocation89_spill] sm:$0xff] %v2678_v36  ;;  %v141_v54 = vld [vmem:[#allocation2 + $0x280] sm:$0xff]  ;;  %v2696_v36 = vsub.f32 1.0, %v134_v53  ;;  %v146_v31 = vld [vmem:[#allocation2 + $0x2a8] sm:$0xff]  ;;  %v2706_v58 = vsub.f32 1.0, %v139_v61 }
  0x51   :  { %6841 = vst [vmem:[#allocation90_spill] sm:$0xff] %v2680_v62  ;;  %6842 = vst [vmem:[#allocation91_spill] sm:$0xff] %v2682_v60  ;;  %v144_v60 = vld [vmem:[#allocation2 + $0x298] sm:$0xff]  ;;  %v145_v62 = vld [vmem:[#allocation2 + $0x2a0] sm:$0xff]  ;;  %v2710_v53 = vsub.f32 1.0, %v141_v54  ;;  %v2712_v43 = vsub.f32 1.0, %v142_v52 }
  0x52   :  { %6843 = vst [vmem:[#allocation92_spill] sm:$0xff] %v2684_v30  ;;  %6844 = vst [vmem:[#allocation93_spill] sm:$0xff] %v2686_v51  ;;  %v148_v51 = vld [vmem:[#allocation2 + $0x2b8] sm:$0xff]  ;;  %v2702_v30 = vsub.f32 1.0, %v137_v59  ;;  %v149_v49 = vld [vmem:[#allocation2 + $0x2c0] sm:$0xff]  ;;  %v2718_v59 = vsub.f32 1.0, %v144_v60 }
  0x53   :  { %6845 = vst [vmem:[#allocation94_spill] sm:$0xff] %v2688_v56  ;;  %6846 = vst [vmem:[#allocation95_spill] sm:$0xff] %v2690_v29  ;;  %v147_v56 = vld [vmem:[#allocation2 + $0x2b0] sm:$0xff]  ;;  %v2708_v29 = vsub.f32 1.0, %v140_v35  ;;  %v152_v55 = vld [vmem:[#allocation2 + $0x2d8] sm:$0xff]  ;;  %v2720_v48 = vsub.f32 1.0, %v145_v62 }
  0x54   :  { %6847 = vst [vmem:[#allocation96_spill] sm:$0xff] %v2692_v37  ;;  %6848 = vst [vmem:[#allocation97_spill] sm:$0xff] %v2694_v41  ;;  %v150_v41 = vld [vmem:[#allocation2 + $0x2c8] sm:$0xff]  ;;  %v151_v37 = vld [vmem:[#allocation2 + $0x2d0] sm:$0xff]  ;;  %v2724_v35 = vsub.f32 1.0, %v146_v31  ;;  %v2726_v54 = vsub.f32 1.0, %v147_v56 }
  0x55   :  { %6849 = vst [vmem:[#allocation98_spill] sm:$0xff] %v2696_v36  ;;  %6850 = vst [vmem:[#allocation99_spill] sm:$0xff] %v2698_v42  ;;  %v2714_v42 = vld [vmem:[#allocation5] sm:$0xff]  ;;  %v2716_v36 = vsub.f32 1.0, %v143_v57  ;;  %v154_v61 = vld [vmem:[#allocation2 + $0x2e8] sm:$0xff]  ;;  %v2728_v52 = vsub.f32 1.0, %v148_v51 }
  0x56   :  { %6851 = vst [vmem:[#allocation100_spill] sm:$0xff] %v2700_v63  ;;  %6852 = vst [vmem:[#allocation101_spill] sm:$0xff] %v2702_v30  ;;  %v153_v63 = vld [vmem:[#allocation2 + $0x2e0] sm:$0xff]  ;;  %v2734_v57 = vsub.f32 1.0, %v149_v49  ;;  %v2736_v60 = vsub.f32 1.0, %v150_v41  ;;  %v2738_v62 = vsub.f32 1.0, %v151_v37 }
  0x57   :  { %6853 = vst [vmem:[#allocation102_spill] sm:$0xff] %v2704_v47  ;;  %6854 = vst [vmem:[#allocation103_spill] sm:$0xff] %v2706_v58  ;;  %v155_v58 = vld [vmem:[#allocation2 + $0x2f0] sm:$0xff]  ;;  %v2722_v47 = vld [vmem:[#allocation5 + $0x8] sm:$0xff]  ;;  %vm6472_vm0 = vcmp.eq.f32.partialorder %v2714_v42, 1.0  ;;  %v2747_v51 = vsub.f32 1.0, %v152_v55 }
  0x58   :  { %6855 = vst [vmem:[#allocation104_spill] sm:$0xff] %v2708_v29  ;;  %6856 = vst [vmem:[#allocation105_spill] sm:$0xff] %v2710_v53  ;;  %v2730_v53 = vld [vmem:[#allocation5 + $0x10] sm:$0xff]  ;;  %v2732_v29 = vld [vmem:[#allocation5 + $0x18] sm:$0xff]  ;;  %v2749_v56 = vsub.f32 1.0, %v153_v63  ;;  %vm6471_vm1 = vcmp.eq.f32.partialorder %v2722_v47, 1.0 }
  0x59   :  { %6857 = vst [vmem:[#allocation106_spill] sm:$0xff] %v2712_v43  ;;  %6858 = vst [vmem:[#allocation107_spill] sm:$0xff] %v2714_v42  ;;  %v156_v43 = vld [vmem:[#allocation2 + $0x2f8] sm:$0xff]  ;;  %v2744_v31 = vld [vmem:[#allocation5 + $0x30] sm:$0xff]  ;;  %v2758_v37 = vsub.f32 1.0, %v154_v61  ;;  %vm6470_vm2 = vcmp.eq.f32.partialorder %v2730_v53, 1.0 }
  0x5a   :  { %6859 = vst [vmem:[#allocation108_spill] sm:$0xff] %v2716_v36  ;;  %6860 = vst [vmem:[#allocation109_spill] sm:$0xff] %v2718_v59  ;;  %v2742_v59 = vld [vmem:[#allocation5 + $0x28] sm:$0xff]  ;;  %v2753_v49 = vld [vmem:[#allocation5 + $0x40] sm:$0xff]  ;;  %vm6475_vm3 = vcmp.eq.f32.partialorder %v2732_v29, 1.0  ;;  %v2770_v63 = vsub.f32 1.0, %v156_v43 }
  0x5b   :  { %6861 = vst [vmem:[#allocation110_spill] sm:$0xff] %v2720_v48  ;;  %6862 = vst [vmem:[#allocation111_spill] sm:$0xff] %v2722_v47  ;;  %v2740_v48 = vld [vmem:[#allocation5 + $0x20] sm:$0xff]  ;;  %v2755_v41 = vld [vmem:[#allocation5 + $0x48] sm:$0xff]  ;;  %vm6478_vm5 = vcmp.eq.f32.partialorder %v2742_v59, 1.0  ;;  %vm6481_vm6 = vcmp.eq.f32.partialorder %v2744_v31, 1.0 }
  0x5c   :  { %6863 = vst [vmem:[#allocation112_spill] sm:$0xff] %v2724_v35  ;;  %6864 = vst [vmem:[#allocation113_spill] sm:$0xff] %v2726_v54  ;;  %v2766_v55 = vld [vmem:[#allocation5 + $0x60] sm:$0xff]  ;;  %v2776_v61 = vld [vmem:[#allocation5 + $0x78] sm:$0xff]  ;;  %vm6476_vm4 = vcmp.eq.f32.partialorder %v2740_v48, 1.0  ;;  %vm6529_vm8 = vcmp.eq.f32.partialorder %v2753_v49, 1.0  ;;  %v2815_v54 = vsel %vm6470_vm2, %v2464_v2, %v2493_v15  ;;  %v2830_v35 = vsel %vm6475_vm3, %v2466_v3, %v2496_v16 }
  0x5d   :  { %6865 = vst [vmem:[#allocation114_spill] sm:$0xff] %v2728_v52  ;;  %6866 = vst [vmem:[#allocation115_spill] sm:$0xff] %v2730_v53  ;;  %v2751_v52 = vld [vmem:[#allocation5 + $0x38] sm:$0xff]  ;;  %v2787_v43 = vld [vmem:[#allocation5 + $0x80] sm:$0xff]  ;;  %vm6528_vm9 = vcmp.eq.f32.partialorder %v2755_v41, 1.0  ;;  %vm6489_vm12 = vcmp.eq.f32.partialorder %v2766_v55, 1.0  ;;  %v2845_v36 = vsel %vm6476_vm4, %v2468_v4, %v2505_v20  ;;  %v2867_v4 = vsel %vm6481_vm6, %v2472_v6, %v2511_v22 }
  0x5e   :  { %6867 = vst [vmem:[#allocation116_spill] sm:$0xff] %v2732_v29  ;;  %6868 = vst [vmem:[#allocation117_spill] sm:$0xff] %v2734_v57  ;;  %v2764_v57 = vld [vmem:[#allocation5 + $0x58] sm:$0xff]  ;;  %vm6521_vm7 = vcmp.eq.f32.partialorder %v2751_v52, 1.0  ;;  %v2832_v2 = vld [vmem:[#allocation5 + $0xc8] sm:$0xff] }
  0x5f   :  { %6869 = vst [vmem:[#allocation118_spill] sm:$0xff] %v2736_v60  ;;  %6870 = vst [vmem:[#allocation119_spill] sm:$0xff] %v2738_v62  ;;  %v2760_v62 = vsub.f32 1.0, %v155_v58  ;;  %v2762_v60 = vld [vmem:[#allocation5 + $0x50] sm:$0xff]  ;;  %v2785_v58 = vsel %vm6472_vm0, %v2460_v0, %v2481_v10  ;;  %v2802_v0 = vld [vmem:[#allocation5 + $0x98] sm:$0xff]  ;;  %vm6492_vm11 = vcmp.eq.f32.partialorder %v2764_v57, 1.0 }
  0x60   :  { %6871 = vst [vmem:[#allocation120_spill] sm:$0xff] %v2740_v48  ;;  %6872 = vst [vmem:[#allocation121_spill] sm:$0xff] %v2742_v59  ;;  %v2804_v10 = vld [vmem:[#allocation5 + $0xa0] sm:$0xff]  ;;  %vm6530_vm10 = vcmp.eq.f32.partialorder %v2762_v60, 1.0  ;;  %v2834_v15 = vld [vmem:[#allocation5 + $0xd0] sm:$0xff]  ;;  %vm6548_vm3 = vcmp.eq.f32.partialorder %v2802_v0, 1.0 }
  0x61   :  { %6873 = vst [vmem:[#allocation122_spill] sm:$0xff] %v2744_v31  ;;  %6874 = vst [vmem:[#allocation123_spill] sm:$0xff] %v2747_v51  ;;  %v2774_v51 = vld [vmem:[#allocation5 + $0x70] sm:$0xff]  ;;  %v2847_v3 = vld [vmem:[#allocation5 + $0xe0] sm:$0xff]  ;;  %vm6500_vm15 = vcmp.eq.f32.partialorder %v2804_v10, 1.0  ;;  %vm6502_vm2 = vcmp.eq.f32.partialorder %v2832_v2, 1.0 }
  0x62   :  { %6875 = vst [vmem:[#allocation124_spill] sm:$0xff] %v2749_v56  ;;  %6876 = vst [vmem:[#allocation125_spill] sm:$0xff] %v2751_v52  ;;  %v2772_v56 = vld [vmem:[#allocation5 + $0x68] sm:$0xff]  ;;  %vm6539_vm14 = vcmp.eq.f32.partialorder %v2774_v51, 1.0  ;;  %v2869_v20 = vld [vmem:[#allocation5 + $0xf0] sm:$0xff]  ;;  %vm6510_vm6 = vcmp.eq.f32.partialorder %v2847_v3, 1.0 }
  0x63   :  { %6877 = vst [vmem:[#allocation126_spill] sm:$0xff] %v2753_v49  ;;  %6878 = vst [vmem:[#allocation127_spill] sm:$0xff] %v2755_v41  ;;  %vm6490_vm13 = vcmp.eq.f32.partialorder %v2772_v56, 1.0  ;;  %v2849_v16 = vld [vmem:[#allocation5 + $0xe8] sm:$0xff]  ;;  %v2886_v22 = vld [vmem:[#allocation5 + $0x110] sm:$0xff] }
  0x64   :  { %6879 = vst [vmem:[#allocation128_spill] sm:$0xff] %v2758_v37  ;;  %6880 = vst [vmem:[#allocation129_spill] sm:$0xff] %v2760_v62  ;;  %v2791_v62 = vld [vmem:[#allocation5 + $0x90] sm:$0xff]  ;;  %v2800_v37 = vsel %vm6471_vm1, %v2462_v1, %v2490_v14  ;;  %v2819_v14 = vld [vmem:[#allocation5 + $0xb8] sm:$0xff] }
  0x65   :  { %6881 = vst [vmem:[#allocation130_spill] sm:$0xff] %v2762_v60  ;;  %6882 = vst [vmem:[#allocation131_spill] sm:$0xff] %v2764_v57  ;;  %v2817_v1 = vld [vmem:[#allocation5 + $0xb0] sm:$0xff]  ;;  %vm6555_vm4 = vcmp.eq.f32.partialorder %v2819_v14, 1.0  ;;  %v2884_v6 = vld [vmem:[#allocation5 + $0x108] sm:$0xff] }
  0x66   :  { %6883 = vst [vmem:[#allocation132_spill] sm:$0xff] %v2766_v55  ;;  %6884 = vst [vmem:[#allocation133_spill] sm:$0xff] %v2770_v63  ;;  %v2789_v63 = vld [vmem:[#allocation5 + $0x88] sm:$0xff]  ;;  %v2908_v30 = vld [vmem:[#allocation5 + $0x130] sm:$0xff] }
  0x67   :  { %6885 = vst [vmem:[#allocation134_spill] sm:$0xff] %v2772_v56  ;;  %6886 = vst [vmem:[#allocation135_spill] sm:$0xff] %v2774_v51  ;;  %v2910_v52 = vld [vmem:[#allocation5 + $0x138] sm:$0xff]  ;;  %v3168_v49 = vld [vmem:[#allocation5 + $0x228] sm:$0xff] }
  0x68   :  { %6887 = vst [vmem:[#allocation136_spill] sm:$0xff] %v2776_v61  ;;  %6888 = vst [vmem:[#allocation137_spill] sm:$0xff] %v2785_v58  ;;  %v2806_v58 = vld [vmem:[#allocation5 + $0xa8] sm:$0xff]  ;;  %v3198_v60 = vld [vmem:[#allocation5 + $0x240] sm:$0xff] }
  0x69   :  { %6889 = vst [vmem:[#allocation138_spill] sm:$0xff] %v2787_v43  ;;  %6890 = vst [vmem:[#allocation139_spill] sm:$0xff] %v2789_v63  ;;  %v3204_v41 = vld [vmem:[#allocation5 + $0x258] sm:$0xff]  ;;  %v3230_v51 = vld [vmem:[#allocation5 + $0x260] sm:$0xff] }
  0x6a   :  { %6891 = vst [vmem:[#allocation140_spill] sm:$0xff] %v2791_v62  ;;  %6892 = vst [vmem:[#allocation141_spill] sm:$0xff] %v2800_v37  ;;  %v2821_v37 = vld [vmem:[#allocation5 + $0xc0] sm:$0xff] }
  0x6b   :  { %6893 = vst [vmem:[#allocation142_spill] sm:$0xff] %v2802_v0  ;;  %6894 = vst [vmem:[#allocation143_spill] sm:$0xff] %v2804_v10  ;;  %vm6560_vm1 = vcmp.eq.f32.partialorder %v2821_v37, 1.0 }
  0x6c   :  { %6895 = vst [vmem:[#allocation144_spill] sm:$0xff] %v2806_v58  ;;  %6896 = vst [vmem:[#allocation145_spill] sm:$0xff] %v2815_v54  ;;  %v2836_v54 = vld [vmem:[#allocation5 + $0xd8] sm:$0xff] }
  0x6d   :  { %6897 = vst [vmem:[#allocation146_spill] sm:$0xff] %v2817_v1  ;;  %6898 = vst [vmem:[#allocation147_spill] sm:$0xff] %v2819_v14  ;;  %vm6561_vm0 = vcmp.eq.f32.partialorder %v2836_v54, 1.0  ;;  %v3290_v14 = vld [vmem:[#allocation5 + $0x290] sm:$0xff] }
  0x6e   :  { %6899 = vst [vmem:[#allocation148_spill] sm:$0xff] %v2821_v37  ;;  %6900 = vst [vmem:[#allocation149_spill] sm:$0xff] %v2830_v35  ;;  %v2858_v35 = vsel %vm6478_vm5, %v2470_v5, %v2508_v21  ;;  %v2880_v5 = vsel %vm6521_vm7, %v2474_v7, %v2520_v26  ;;  %v2882_v21 = vld [vmem:[#allocation5 + $0x100] sm:$0xff]  ;;  %vm6509_vm5 = vcmp.eq.f32.partialorder %v2849_v16, 1.0  ;;  %v2902_v7 = vsel %vm6528_vm9, %v2478_v9, %v2526_v28  ;;  %v3292_v37 = vld [vmem:[#allocation5 + $0x298] sm:$0xff] }
  0x6f   :  { %6901 = vst [vmem:[#allocation150_spill] sm:$0xff] %v2832_v2  ;;  %6902 = vst [vmem:[#allocation151_spill] sm:$0xff] %v2834_v15  ;;  %v2904_v26 = vld [vmem:[#allocation5 + $0x120] sm:$0xff]  ;;  %v2922_v9 = vsel %vm6492_vm11, %v2485_v12, %v2538_v33  ;;  %v2928_v28 = vsel %vm6489_vm12, %v2487_v13, %v2541_v34  ;;  %v2942_v12 = vld [vmem:[#allocation5 + $0x158] sm:$0xff]  ;;  %v2948_v13 = vsel %vm6539_vm14, %v2500_v18, %v2553_v39  ;;  %vm6931_vm12 = vcmp.eq.f32.partialorder %v2776_v61, 1.0 }
  0x70   :  { %6903 = vst [vmem:[#allocation152_spill] sm:$0xff] %v2836_v54  ;;  %6904 = vst [vmem:[#allocation153_spill] sm:$0xff] %v2845_v36  ;;  %v2871_v36 = vld [vmem:[#allocation5 + $0xf8] sm:$0xff]  ;;  %vm6935_vm11 = vcmp.eq.f32.partialorder %v2789_v63, 1.0  ;;  %v2968_v18 = vld [vmem:[#allocation5 + $0x160] sm:$0xff] }
  0x71   :  { %6905 = vst [vmem:[#allocation154_spill] sm:$0xff] %v2847_v3  ;;  %6906 = vst [vmem:[#allocation155_spill] sm:$0xff] %v2849_v16  ;;  %v2966_v34 = vsel %vm6935_vm11, %v2515_v24, %v2568_v45  ;;  %v2970_v39 = vld [vmem:[#allocation5 + $0x168] sm:$0xff]  ;;  %v2972_v33 = vld [vmem:[#allocation5 + $0x170] sm:$0xff]  ;;  %vm6950_vm11 = vcmp.eq.f32.partialorder %v2806_v58, 1.0 }
  0x72   :  { %6907 = vst [vmem:[#allocation156_spill] sm:$0xff] %v2858_v35  ;;  %6908 = vst [vmem:[#allocation157_spill] sm:$0xff] %v2867_v4  ;;  %v2888_v4 = vld [vmem:[#allocation5 + $0x118] sm:$0xff]  ;;  %v2896_v35 = vsel %vm6529_vm8, %v2476_v8, %v2523_v27  ;;  %v2916_v8 = vsel %vm6530_vm10, %v2483_v11, %v2535_v32  ;;  %v2934_v27 = vsel %vm6490_vm13, %v2498_v17, %v2550_v38  ;;  %v2936_v11 = vld [vmem:[#allocation5 + $0x140] sm:$0xff]  ;;  %vm6933_vm13 = vcmp.eq.f32.partialorder %v2787_v43, 1.0 }
  0x73   :  { %6909 = vst [vmem:[#allocation158_spill] sm:$0xff] %v2869_v20  ;;  %6910 = vst [vmem:[#allocation159_spill] sm:$0xff] %v2871_v36  ;;  %v2938_v32 = vld [vmem:[#allocation5 + $0x148] sm:$0xff]  ;;  %v2954_v17 = vsel %vm6931_vm12, %v2502_v19, %v2556_v40  ;;  %v2960_v38 = vsel %vm6933_vm13, %v2513_v23, %v2565_v44  ;;  %v2974_v19 = vld [vmem:[#allocation5 + $0x178] sm:$0xff]  ;;  %vm6941_vm12 = vcmp.eq.f32.partialorder %v2791_v62, 1.0  ;;  %vm7004_vm13 = vcmp.eq.f32.partialorder %v2742_v59, 1.0 }
  0x74   :  { %6911 = vst [vmem:[#allocation160_spill] sm:$0xff] %v2880_v5  ;;  %6912 = vst [vmem:[#allocation161_spill] sm:$0xff] %v2882_v21  ;;  %v2906_v5 = vld [vmem:[#allocation5 + $0x128] sm:$0xff]  ;;  %v2980_v23 = vsel %vm6941_vm12, %v2517_v25, %v2571_v46  ;;  %v6943_v44 = vld [vmem:[#allocation24_spill] sm:$0xff]  ;;  %vm6996_vm12 = vcmp.eq.f32.partialorder %v2732_v29, 1.0 }
  0x75   :  { %6913 = vst [vmem:[#allocation162_spill] sm:$0xff] %v2884_v6  ;;  %6914 = vst [vmem:[#allocation163_spill] sm:$0xff] %v2886_v22  ;;  %v2986_v24 = vsel %vm6548_vm3, %v6943_v44, %v2578_v50  ;;  %v6945_v45 = vld [vmem:[#allocation45_spill] sm:$0xff]  ;;  %v3000_v25 = vld [vmem:[#allocation5 + $0x180] sm:$0xff] }
  0x76   :  { %6915 = vst [vmem:[#allocation164_spill] sm:$0xff] %v2888_v4  ;;  %6916 = vst [vmem:[#allocation165_spill] sm:$0xff] %v2896_v35  ;;  %v6946_v40 = vld [vmem:[#allocation25_spill] sm:$0xff]  ;;  %v3006_v44 = vld [vmem:[#allocation5 + $0x198] sm:$0xff] }
  0x77   :  { %6917 = vst [vmem:[#allocation166_spill] sm:$0xff] %v2902_v7  ;;  %6918 = vst [vmem:[#allocation167_spill] sm:$0xff] %v2904_v26  ;;  %v3002_v46 = vld [vmem:[#allocation5 + $0x188] sm:$0xff]  ;;  %v6983_v22 = vld [vmem:[#allocation54_spill] sm:$0xff] }
  0x78   :  { %6919 = vst [vmem:[#allocation168_spill] sm:$0xff] %v2906_v5  ;;  %6920 = vst [vmem:[#allocation169_spill] sm:$0xff] %v2908_v30  ;;  %v6984_v4 = vld [vmem:[#allocation43_spill] sm:$0xff]  ;;  %v3318_v54 = vld [vmem:[#allocation5 + $0x2a0] sm:$0xff] }
  0x79   :  { %6921 = vst [vmem:[#allocation170_spill] sm:$0xff] %v2910_v52  ;;  %6922 = vst [vmem:[#allocation171_spill] sm:$0xff] %v2916_v8  ;;  %v2940_v8 = vld [vmem:[#allocation5 + $0x150] sm:$0xff]  ;;  %v3068_v6 = vsel %vm6509_vm5, %v6984_v4, %v6983_v22  ;;  %vm6992_vm5 = vcmp.eq.f32.partialorder %v2722_v47, 1.0  ;;  %v3134_v47 = vld [vmem:[#allocation5 + $0x200] sm:$0xff] }
  0x7a   :  { %6923 = vst [vmem:[#allocation172_spill] sm:$0xff] %v2922_v9  ;;  %6924 = vst [vmem:[#allocation173_spill] sm:$0xff] %v2928_v28  ;;  %v6966_v28 = vld [vmem:[#allocation50_spill] sm:$0xff]  ;;  %v6967_v9 = vld [vmem:[#allocation36_spill] sm:$0xff] }
  0x7b   :  { %6925 = vst [vmem:[#allocation174_spill] sm:$0xff] %v2934_v27  ;;  %6926 = vst [vmem:[#allocation175_spill] sm:$0xff] %v2936_v11  ;;  %v3032_v7 = vsel %vm6502_vm2, %v6967_v9, %v6966_v28  ;;  %vm6975_vm2 = vcmp.eq.f32.partialorder %v2834_v15, 1.0  ;;  %v6977_v28 = vld [vmem:[#allocation52_spill] sm:$0xff]  ;;  %v3172_v59 = vld [vmem:[#allocation5 + $0x238] sm:$0xff] }
  0x7c   :  { %6927 = vst [vmem:[#allocation176_spill] sm:$0xff] %v2938_v32  ;;  %6928 = vst [vmem:[#allocation177_spill] sm:$0xff] %v2940_v8  ;;  %v7205_v58 = vld [vmem:[#allocation161_spill] sm:$0xff] }
  0x7d   :  { %6929 = vst [vmem:[#allocation178_spill] sm:$0xff] %v2942_v12  ;;  %6930 = vst [vmem:[#allocation179_spill] sm:$0xff] %v2948_v13 }
  0x7e   :  { %6932 = vst [vmem:[#allocation180_spill] sm:$0xff] %v2954_v17  ;;  %6934 = vst [vmem:[#allocation181_spill] sm:$0xff] %v2960_v38  ;;  %v6948_v38 = vld [vmem:[#allocation46_spill] sm:$0xff] }
  0x7f   :  { %6936 = vst [vmem:[#allocation182_spill] sm:$0xff] %v2966_v34  ;;  %6937 = vst [vmem:[#allocation183_spill] sm:$0xff] %v2968_v18  ;;  %v2992_v34 = vsel %vm6500_vm15, %v6946_v40, %v6945_v45  ;;  %v6949_v17 = vld [vmem:[#allocation26_spill] sm:$0xff]  ;;  %v6956_v40 = vld [vmem:[#allocation47_spill] sm:$0xff]  ;;  %vm6958_vm15 = vcmp.eq.f32.partialorder %v2817_v1, 1.0 }
  0x80   :  { %6938 = vst [vmem:[#allocation184_spill] sm:$0xff] %v2970_v39  ;;  %6939 = vst [vmem:[#allocation185_spill] sm:$0xff] %v2972_v33  ;;  %v2998_v13 = vsel %vm6950_vm11, %v6949_v17, %v6948_v38  ;;  %v6957_v45 = vld [vmem:[#allocation30_spill] sm:$0xff]  ;;  %v6960_v17 = vld [vmem:[#allocation48_spill] sm:$0xff] }
  0x81   :  { %6940 = vst [vmem:[#allocation186_spill] sm:$0xff] %v2974_v19  ;;  %6942 = vst [vmem:[#allocation187_spill] sm:$0xff] %v2980_v23  ;;  %v3004_v23 = vld [vmem:[#allocation5 + $0x190] sm:$0xff]  ;;  %v3014_v50 = vsel %vm6958_vm15, %v6957_v45, %v6956_v40  ;;  %v6961_v38 = vld [vmem:[#allocation31_spill] sm:$0xff]  ;;  %vm6990_vm15 = vcmp.eq.f32.partialorder %v2714_v42, 1.0 }
  0x82   :  { %6944 = vst [vmem:[#allocation24_spill] sm:$0xff] %v2986_v24  ;;  %6947 = vst [vmem:[#allocation25_spill] sm:$0xff] %v2992_v34  ;;  %v6963_v34 = vld [vmem:[#allocation49_spill] sm:$0xff]  ;;  %v6964_v24 = vld [vmem:[#allocation32_spill] sm:$0xff] }
  0x83   :  { %6951 = vst [vmem:[#allocation26_spill] sm:$0xff] %v2998_v13  ;;  %6952 = vst [vmem:[#allocation188_spill] sm:$0xff] %v3000_v25  ;;  %v3020_v13 = vsel %vm6555_vm4, %v6961_v38, %v6960_v17  ;;  %v3026_v27 = vsel %vm6560_vm1, %v6964_v24, %v6963_v34  ;;  %v3034_v45 = vld [vmem:[#allocation5 + $0x1a0] sm:$0xff]  ;;  %v3036_v40 = vld [vmem:[#allocation5 + $0x1a8] sm:$0xff] }
  0x84   :  { %6953 = vst [vmem:[#allocation189_spill] sm:$0xff] %v3002_v46  ;;  %6954 = vst [vmem:[#allocation190_spill] sm:$0xff] %v3004_v23  ;;  %v3040_v38 = vld [vmem:[#allocation5 + $0x1b8] sm:$0xff]  ;;  %v6974_v34 = vld [vmem:[#allocation37_spill] sm:$0xff] }
  0x85   :  { %6955 = vst [vmem:[#allocation191_spill] sm:$0xff] %v3006_v44  ;;  %6959 = vst [vmem:[#allocation30_spill] sm:$0xff] %v3014_v50  ;;  %v3038_v50 = vld [vmem:[#allocation5 + $0x1b0] sm:$0xff]  ;;  %v6973_v24 = vld [vmem:[#allocation51_spill] sm:$0xff] }
  0x86   :  { %6962 = vst [vmem:[#allocation31_spill] sm:$0xff] %v3020_v13  ;;  %6965 = vst [vmem:[#allocation32_spill] sm:$0xff] %v3026_v27  ;;  %v3050_v9 = vsel %vm6975_vm2, %v6974_v34, %v6973_v24  ;;  %v6978_v17 = vld [vmem:[#allocation38_spill] sm:$0xff]  ;;  %v6980_v27 = vld [vmem:[#allocation53_spill] sm:$0xff]  ;;  %vm6994_vm2 = vcmp.eq.f32.partialorder %v2730_v53, 1.0 }
  0x87   :  { %6968 = vst [vmem:[#allocation36_spill] sm:$0xff] %v3032_v7  ;;  %6969 = vst [vmem:[#allocation192_spill] sm:$0xff] %v3034_v45  ;;  %v3056_v7 = vsel %vm6561_vm0, %v6978_v17, %v6977_v28  ;;  %v6981_v13 = vld [vmem:[#allocation42_spill] sm:$0xff]  ;;  %v3070_v34 = vld [vmem:[#allocation5 + $0x1c0] sm:$0xff] }
  0x88   :  { %6970 = vst [vmem:[#allocation193_spill] sm:$0xff] %v3036_v40  ;;  %6971 = vst [vmem:[#allocation194_spill] sm:$0xff] %v3038_v50  ;;  %v3062_v35 = vsel %vm6510_vm6, %v6981_v13, %v6980_v27  ;;  %v3072_v24 = vld [vmem:[#allocation5 + $0x1c8] sm:$0xff]  ;;  %v3076_v17 = vld [vmem:[#allocation5 + $0x1d8] sm:$0xff]  ;;  %v6615_v13 = vmov 0.0   ;;  %vm7006_vm6 = vcmp.eq.f32.partialorder %v2744_v31, 1.0 }
  0x89   :  { %6972 = vst [vmem:[#allocation195_spill] sm:$0xff] %v3040_v38  ;;  %6976 = vst [vmem:[#allocation37_spill] sm:$0xff] %v3050_v9  ;;  %v3074_v9 = vld [vmem:[#allocation5 + $0x1d0] sm:$0xff]  ;;  %v3085_v4 = vsel %vm6990_vm15, 1.0, %v6615_v13  ;;  %v3090_v22 = vsel %vm6992_vm5, 1.0, %v6615_v13  ;;  %v3095_v27 = vsel %vm6994_vm2, 1.0, %v6615_v13 }
  0x8a   :  { %6979 = vst [vmem:[#allocation38_spill] sm:$0xff] %v3056_v7  ;;  %6982 = vst [vmem:[#allocation42_spill] sm:$0xff] %v3062_v35  ;;  %v3100_v28 = vsel %vm6996_vm12, 1.0, %v6615_v13  ;;  %v3104_v35 = vld [vmem:[#allocation5 + $0x1e8] sm:$0xff]  ;;  %v3108_v7 = vld [vmem:[#allocation5 + $0x1f8] sm:$0xff]  ;;  %vm6578_vm5 = vcmp.eq.f32.partialorder %v2936_v11, 1.0 }
  0x8b   :  { %6985 = vst [vmem:[#allocation43_spill] sm:$0xff] %v3068_v6  ;;  %6986 = vst [vmem:[#allocation196_spill] sm:$0xff] %v3070_v34  ;;  %v3102_v6 = vld [vmem:[#allocation5 + $0x1e0] sm:$0xff]  ;;  %vm6580_vm15 = vcmp.eq.f32.partialorder %v2938_v32, 1.0  ;;  %vm6579_vm2 = vcmp.eq.f32.partialorder %v2940_v8, 1.0  ;;  %vm7002_vm12 = vcmp.eq.f32.partialorder %v2740_v48, 1.0 }
  0x8c   :  { %6987 = vst [vmem:[#allocation197_spill] sm:$0xff] %v3072_v24  ;;  %6988 = vst [vmem:[#allocation198_spill] sm:$0xff] %v3074_v9  ;;  %v3132_v53 = vsel %vm6521_vm7, 1.0, %v6615_v13  ;;  %v3136_v48 = vld [vmem:[#allocation5 + $0x208] sm:$0xff]  ;;  %v3140_v42 = vld [vmem:[#allocation5 + $0x218] sm:$0xff]  ;;  %vm7017_vm7 = vcmp.eq.f32.partialorder %v2764_v57, 1.0 }
  0x8d   :  { %6989 = vst [vmem:[#allocation199_spill] sm:$0xff] %v3076_v17  ;;  %6991 = vst [vmem:[#allocation200_spill] sm:$0xff] %v3085_v4  ;;  %v3106_v4 = vld [vmem:[#allocation5 + $0x1f0] sm:$0xff]  ;;  %v3164_v29 = vsel %vm7017_vm7, 1.0, %v6615_v13  ;;  %v3166_v31 = vld [vmem:[#allocation5 + $0x220] sm:$0xff]  ;;  %vm7023_vm7 = vcmp.eq.f32.partialorder %v2766_v55, 1.0 }
  0x8e   :  { %6993 = vst [vmem:[#allocation201_spill] sm:$0xff] %v3090_v22  ;;  %6995 = vst [vmem:[#allocation202_spill] sm:$0xff] %v3095_v27  ;;  %v3122_v27 = vsel %vm7004_vm13, 1.0, %v6615_v13  ;;  %v3127_v22 = vsel %vm7006_vm6, 1.0, %v6615_v13  ;;  %vm6581_vm13 = vcmp.eq.f32.partialorder %v2968_v18, 1.0  ;;  %vm7025_vm6 = vcmp.eq.f32.partialorder %v2772_v56, 1.0 }
  0x8f   :  { %6997 = vst [vmem:[#allocation203_spill] sm:$0xff] %v3100_v28  ;;  %6998 = vst [vmem:[#allocation204_spill] sm:$0xff] %v3102_v6  ;;  %v3117_v28 = vsel %vm7002_vm12, 1.0, %v6615_v13  ;;  %vm6582_vm12 = vcmp.eq.f32.partialorder %v2970_v39, 1.0  ;;  %v3200_v55 = vld [vmem:[#allocation5 + $0x248] sm:$0xff]  ;;  %v3236_v56 = vld [vmem:[#allocation5 + $0x278] sm:$0xff] }
  0x90   :  { %6999 = vst [vmem:[#allocation205_spill] sm:$0xff] %v3104_v35  ;;  %7000 = vst [vmem:[#allocation206_spill] sm:$0xff] %v3106_v4  ;;  %v3260_v0 = vsel %vm6555_vm4, 1.0, %v6615_v13  ;;  %vm7057_vm4 = vcmp.eq.f32.partialorder %v2834_v15, 1.0  ;;  %v3346_v15 = vld [vmem:[#allocation5 + $0x2b0] sm:$0xff]  ;;  %v7208_v32 = vld [vmem:[#allocation192_spill] sm:$0xff] }
  0x91   :  { %7001 = vst [vmem:[#allocation207_spill] sm:$0xff] %v3108_v7  ;;  %7003 = vst [vmem:[#allocation208_spill] sm:$0xff] %v3117_v28  ;;  %v3138_v28 = vld [vmem:[#allocation5 + $0x210] sm:$0xff] }
  0x92   :  { %7005 = vst [vmem:[#allocation209_spill] sm:$0xff] %v3122_v27  ;;  %7007 = vst [vmem:[#allocation210_spill] sm:$0xff] %v3127_v22  ;;  %v3154_v22 = vsel %vm6528_vm9, 1.0, %v6615_v13  ;;  %v3159_v27 = vsel %vm6530_vm10, 1.0, %v6615_v13  ;;  %vm7028_vm10 = vcmp.eq.f32.partialorder %v2776_v61, 1.0  ;;  %vm7038_vm9 = vcmp.eq.f32.partialorder %v2791_v62, 1.0 }
  0x93   :  { %7009 = vst [vmem:[#allocation211_spill] sm:$0xff] %v3132_v53  ;;  %7010 = vst [vmem:[#allocation212_spill] sm:$0xff] %v3134_v47  ;;  %v3149_v53 = vsel %vm6529_vm8, 1.0, %v6615_v13  ;;  %v3196_v57 = vsel %vm7028_vm10, 1.0, %v6615_v13  ;;  %vm7034_vm10 = vcmp.eq.f32.partialorder %v2787_v43, 1.0  ;;  %vm7036_vm8 = vcmp.eq.f32.partialorder %v2789_v63, 1.0 }
  0x94   :  { %7011 = vst [vmem:[#allocation213_spill] sm:$0xff] %v3136_v48  ;;  %7012 = vst [vmem:[#allocation214_spill] sm:$0xff] %v3138_v28  ;;  %v3228_v61 = vsel %vm6548_vm3, 1.0, %v6615_v13  ;;  %v3232_v43 = vld [vmem:[#allocation5 + $0x268] sm:$0xff]  ;;  %vm7045_vm3 = vcmp.eq.f32.partialorder %v2804_v10, 1.0  ;;  %v3262_v62 = vld [vmem:[#allocation5 + $0x280] sm:$0xff] }
  0x95   :  { %7013 = vst [vmem:[#allocation215_spill] sm:$0xff] %v3140_v42  ;;  %7014 = vst [vmem:[#allocation216_spill] sm:$0xff] %v3149_v53  ;;  %v3170_v53 = vld [vmem:[#allocation5 + $0x230] sm:$0xff]  ;;  %v3264_v10 = vld [vmem:[#allocation5 + $0x288] sm:$0xff] }
  0x96   :  { %7015 = vst [vmem:[#allocation217_spill] sm:$0xff] %v3154_v22  ;;  %7016 = vst [vmem:[#allocation218_spill] sm:$0xff] %v3159_v27  ;;  %v3186_v27 = vsel %vm7025_vm6, 1.0, %v6615_v13  ;;  %v3191_v22 = vsel %vm6539_vm14, 1.0, %v6615_v13  ;;  %vm6732_vm6 = vcmp.eq.f32.partialorder %v3034_v45, 1.0  ;;  %v7201_v63 = vld [vmem:[#allocation154_spill] sm:$0xff] }
  0x97   :  { %7018 = vst [vmem:[#allocation219_spill] sm:$0xff] %v3164_v29  ;;  %7019 = vst [vmem:[#allocation220_spill] sm:$0xff] %v3166_v31  ;;  %v3181_v29 = vsel %vm7023_vm7, 1.0, %v6615_v13  ;;  %vm7049_vm7 = vcmp.eq.f32.partialorder %v2817_v1, 1.0 }
  0x98   :  { %7020 = vst [vmem:[#allocation221_spill] sm:$0xff] %v3168_v49  ;;  %7021 = vst [vmem:[#allocation222_spill] sm:$0xff] %v3170_v53 }
  0x99   :  { %7022 = vst [vmem:[#allocation223_spill] sm:$0xff] %v3172_v59  ;;  %7024 = vst [vmem:[#allocation224_spill] sm:$0xff] %v3181_v29  ;;  %v3202_v29 = vld [vmem:[#allocation5 + $0x250] sm:$0xff] }
  0x9a   :  { %7026 = vst [vmem:[#allocation225_spill] sm:$0xff] %v3186_v27  ;;  %7027 = vst [vmem:[#allocation226_spill] sm:$0xff] %v3191_v22  ;;  %v3218_v22 = vsel %vm7036_vm8, 1.0, %v6615_v13  ;;  %v3223_v27 = vsel %vm7038_vm9, 1.0, %v6615_v13  ;;  %vm309_vm8 = vcmp.eq.f32.partialorder %v3070_v34, 1.0 }
  0x9b   :  { %7029 = vst [vmem:[#allocation227_spill] sm:$0xff] %v3196_v57  ;;  %7030 = vst [vmem:[#allocation228_spill] sm:$0xff] %v3198_v60  ;;  %v3213_v57 = vsel %vm7034_vm10, 1.0, %v6615_v13  ;;  %vm6585_vm10 = vcmp.eq.f32.partialorder %v3072_v24, 1.0  ;;  %v3475_v45 = vsel %vm309_vm8, 1.0, %v6615_v13 }
  0x9c   :  { %7031 = vst [vmem:[#allocation229_spill] sm:$0xff] %v3200_v55  ;;  %7032 = vst [vmem:[#allocation230_spill] sm:$0xff] %v3202_v29 }
  0x9d   :  { %7033 = vst [vmem:[#allocation231_spill] sm:$0xff] %v3204_v41  ;;  %7035 = vst [vmem:[#allocation232_spill] sm:$0xff] %v3213_v57  ;;  %v3234_v57 = vld [vmem:[#allocation5 + $0x270] sm:$0xff] }
  0x9e   :  { %7037 = vst [vmem:[#allocation233_spill] sm:$0xff] %v3218_v22  ;;  %7039 = vst [vmem:[#allocation234_spill] sm:$0xff] %v3223_v27  ;;  %v3255_v22 = vsel %vm7049_vm7, 1.0, %v6615_v13  ;;  %vm7055_vm7 = vcmp.eq.f32.partialorder %v2832_v2, 1.0  ;;  %v7207_v2 = vld [vmem:[#allocation167_spill] sm:$0xff] }
  0x9f   :  { %7040 = vst [vmem:[#allocation235_spill] sm:$0xff] %v3228_v61  ;;  %7041 = vst [vmem:[#allocation236_spill] sm:$0xff] %v3230_v51  ;;  %v3245_v61 = vsel %vm7045_vm3, 1.0, %v6615_v13  ;;  %vm6586_vm3 = vcmp.eq.f32.partialorder %v3102_v6, 1.0 }
  0xa0   :  { %7042 = vst [vmem:[#allocation237_spill] sm:$0xff] %v3232_v43  ;;  %7043 = vst [vmem:[#allocation238_spill] sm:$0xff] %v3234_v57 }
  0xa1   :  { %7044 = vst [vmem:[#allocation239_spill] sm:$0xff] %v3236_v56  ;;  %7046 = vst [vmem:[#allocation240_spill] sm:$0xff] %v3245_v61  ;;  %v3288_v61 = vsel %vm6561_vm0, 1.0, %v6615_v13  ;;  %vm7064_vm0 = vcmp.eq.f32.partialorder %v2849_v16, 1.0 }
  0xa2   :  { %vm7047_vm14 = vmmov %vm6950_vm11  ;;  %7050 = vst [vmem:[#allocation242_spill] sm:$0xff] %v3255_v22  ;;  %v3273_v22 = vsel %vm6560_vm1, 1.0, %v6615_v13  ;;  %vm7066_vm11 = vcmp.eq.f32.partialorder %v2869_v20, 1.0  ;;  %v7080_v20 = vld [vmem:[#allocation164_spill] sm:$0xff] }
  0xa3   :  { %v3250_v27 = vsel %vm7047_vm14, 1.0, %v6615_v13  ;;  %7051 = vst [vmem:[#allocation243_spill] sm:$0xff] %v3260_v0  ;;  %7052 = vst [vmem:[#allocation244_spill] sm:$0xff] %v3262_v62  ;;  %v3278_v0 = vsel %vm7055_vm7, 1.0, %v6615_v13  ;;  %vm7068_vm7 = vcmp.eq.f32.partialorder %v2871_v36, 1.0  ;;  %vm330_vm14 = vcmp.eq.f32.partialorder %v3232_v43, 1.0 }
  0xa4   :  { %7048 = vst [vmem:[#allocation241_spill] sm:$0xff] %v3250_v27  ;;  %7053 = vst [vmem:[#allocation245_spill] sm:$0xff] %v3264_v10  ;;  %v3283_v27 = vsel %vm7057_vm4, 1.0, %v6615_v13  ;;  %vm7062_vm4 = vcmp.eq.f32.partialorder %v2847_v3, 1.0  ;;  %v3320_v3 = vld [vmem:[#allocation5 + $0x2a8] sm:$0xff] }
  0xa5   :  { %7054 = vst [vmem:[#allocation246_spill] sm:$0xff] %v3273_v22  ;;  %7056 = vst [vmem:[#allocation247_spill] sm:$0xff] %v3278_v0  ;;  %v3311_v0 = vsel %vm7066_vm11, 1.0, %v6615_v13  ;;  %v3316_v22 = vsel %vm7068_vm7, 1.0, %v6615_v13  ;;  %vm7072_vm11 = vcmp.eq.f32.partialorder %v2882_v21, 1.0  ;;  %v3348_v21 = vld [vmem:[#allocation5 + $0x2b8] sm:$0xff] }
  0xa6   :  { %7058 = vst [vmem:[#allocation248_spill] sm:$0xff] %v3283_v27  ;;  %7059 = vst [vmem:[#allocation249_spill] sm:$0xff] %v3288_v61  ;;  %v3301_v27 = vsel %vm7062_vm4, 1.0, %v6615_v13  ;;  %v3306_v61 = vsel %vm7064_vm0, 1.0, %v6615_v13  ;;  %vm7081_vm0 = vcmp.eq.f32.partialorder %v7080_v20, 1.0  ;;  %vm7089_vm4 = vcmp.eq.f32.partialorder %v2908_v30, 1.0 }
  0xa7   :  { %7060 = vst [vmem:[#allocation250_spill] sm:$0xff] %v3290_v14  ;;  %7061 = vst [vmem:[#allocation251_spill] sm:$0xff] %v3292_v37  ;;  %v3344_v16 = vsel %vm7081_vm0, 1.0, %v6615_v13  ;;  %vm7087_vm0 = vcmp.eq.f32.partialorder %v2906_v5, 1.0  ;;  %v3374_v20 = vld [vmem:[#allocation5 + $0x2c0] sm:$0xff] }
  0xa8   :  { %7063 = vst [vmem:[#allocation252_spill] sm:$0xff] %v3301_v27  ;;  %7065 = vst [vmem:[#allocation253_spill] sm:$0xff] %v3306_v61  ;;  %v7074_v61 = vld [vmem:[#allocation162_spill] sm:$0xff]  ;;  %v7077_v27 = vld [vmem:[#allocation163_spill] sm:$0xff]  ;;  %vm341_vm9 = vcmp.eq.f32.partialorder %v3374_v20, 1.0 }
  0xa9   :  { %7067 = vst [vmem:[#allocation254_spill] sm:$0xff] %v3311_v0  ;;  %7069 = vst [vmem:[#allocation255_spill] sm:$0xff] %v3316_v22  ;;  %v3329_v0 = vsel %vm7072_vm11, 1.0, %v6615_v13  ;;  %vm7075_vm7 = vcmp.eq.f32.partialorder %v7074_v61, 1.0  ;;  %vm7078_vm1 = vcmp.eq.f32.partialorder %v7077_v27, 1.0  ;;  %vm325_vm11 = vcmp.eq.f32.partialorder %v3198_v60, 1.0 }
  0xaa   :  { %7070 = vst [vmem:[#allocation256_spill] sm:$0xff] %v3318_v54  ;;  %7071 = vst [vmem:[#allocation257_spill] sm:$0xff] %v3320_v3  ;;  %v3334_v22 = vsel %vm7075_vm7, 1.0, %v6615_v13  ;;  %v3339_v36 = vsel %vm7078_vm1, 1.0, %v6615_v13  ;;  %vm7085_vm1 = vcmp.eq.f32.partialorder %v2904_v26, 1.0  ;;  %vm7091_vm7 = vcmp.eq.f32.partialorder %v2910_v52, 1.0 }
  0xab   :  { %7073 = vst [vmem:[#allocation258_spill] sm:$0xff] %v3329_v0  ;;  %7076 = vst [vmem:[#allocation259_spill] sm:$0xff] %v3334_v22  ;;  %v3367_v22 = vsel %vm7089_vm4, 1.0, %v6615_v13  ;;  %v3372_v0 = vsel %vm7091_vm7, 1.0, %v6615_v13  ;;  %v3376_v26 = vld [vmem:[#allocation5 + $0x2c8] sm:$0xff]  ;;  %vm7098_vm4 = vcmp.eq.f32.partialorder %v2942_v12, 1.0 }
  0xac   :  { %7079 = vst [vmem:[#allocation260_spill] sm:$0xff] %v3339_v36  ;;  %7082 = vst [vmem:[#allocation261_spill] sm:$0xff] %v3344_v16  ;;  %v3357_v36 = vsel %vm7085_vm1, 1.0, %v6615_v13  ;;  %v3362_v16 = vsel %vm7087_vm0, 1.0, %v6615_v13  ;;  %vm329_vm1 = vcmp.eq.f32.partialorder %v3230_v51, 1.0  ;;  %vm333_vm7 = vcmp.eq.f32.partialorder %v3262_v62, 1.0 }
  0xad   :  { %7083 = vst [vmem:[#allocation262_spill] sm:$0xff] %v3346_v15  ;;  %7084 = vst [vmem:[#allocation263_spill] sm:$0xff] %v3348_v21  ;;  %vm7112_vm0 = vcmp.eq.f32.partialorder %v3006_v44, 1.0  ;;  %v7200_v62 = vld [vmem:[#allocation152_spill] sm:$0xff]  ;;  %v7203_v51 = vld [vmem:[#allocation158_spill] sm:$0xff] }
  0xae   :  { %7086 = vst [vmem:[#allocation264_spill] sm:$0xff] %v3357_v36  ;;  %7088 = vst [vmem:[#allocation265_spill] sm:$0xff] %v3362_v16  ;;  %v3395_v16 = vsel %vm6579_vm2, 1.0, %v6615_v13  ;;  %v3400_v36 = vsel %vm7098_vm4, 1.0, %v6615_v13  ;;  %vm7102_vm4 = vcmp.eq.f32.partialorder %v2972_v33, 1.0  ;;  %vm7104_vm2 = vcmp.eq.f32.partialorder %v2974_v19, 1.0 }
  0xaf   :  { %7090 = vst [vmem:[#allocation266_spill] sm:$0xff] %v3367_v22  ;;  %7092 = vst [vmem:[#allocation267_spill] sm:$0xff] %v3372_v0  ;;  %v3385_v22 = vsel %vm6578_vm5, 1.0, %v6615_v13  ;;  %v3390_v0 = vsel %vm6580_vm15, 1.0, %v6615_v13  ;;  %vm334_vm5 = vcmp.eq.f32.partialorder %v3264_v10, 1.0  ;;  %vm337_vm15 = vcmp.eq.f32.partialorder %v3318_v54, 1.0 }
  0xb0   :  { %7093 = vst [vmem:[#allocation268_spill] sm:$0xff] %v3374_v20  ;;  %7094 = vst [vmem:[#allocation269_spill] sm:$0xff] %v3376_v26  ;;  %v7183_v20 = vld [vmem:[#allocation122_spill] sm:$0xff]  ;;  %v7199_v10 = vld [vmem:[#allocation151_spill] sm:$0xff] }
  0xb1   :  { %7095 = vst [vmem:[#allocation270_spill] sm:$0xff] %v3385_v22  ;;  %7096 = vst [vmem:[#allocation271_spill] sm:$0xff] %v3390_v0  ;;  %v3409_v0 = vsel %vm6581_vm13, 1.0, %v6615_v13  ;;  %v3424_v22 = vsel %vm7104_vm2, 1.0, %v6615_v13  ;;  %vm338_vm13 = vcmp.eq.f32.partialorder %v3320_v3, 1.0  ;;  %vm7110_vm2 = vcmp.eq.f32.partialorder %v3004_v23, 1.0 }
  0xb2   :  { %7097 = vst [vmem:[#allocation272_spill] sm:$0xff] %v3395_v16  ;;  %7099 = vst [vmem:[#allocation273_spill] sm:$0xff] %v3400_v36  ;;  %v3414_v16 = vsel %vm6582_vm12, 1.0, %v6615_v13  ;;  %v3419_v36 = vsel %vm7102_vm4, 1.0, %v6615_v13  ;;  %vm7106_vm12 = vcmp.eq.f32.partialorder %v3000_v25, 1.0  ;;  %vm7108_vm4 = vcmp.eq.f32.partialorder %v3002_v46, 1.0 }
  0xb3   :  { %7100 = vst [vmem:[#allocation274_spill] sm:$0xff] %v3409_v0  ;;  %7101 = vst [vmem:[#allocation275_spill] sm:$0xff] %v3414_v16  ;;  %v3433_v16 = vsel %vm7106_vm12, 1.0, %v6615_v13  ;;  %v3448_v0 = vsel %vm7112_vm0, 1.0, %v6615_v13  ;;  %vm342_vm12 = vcmp.eq.f32.partialorder %v3376_v26, 1.0  ;;  %vm7119_vm0 = vcmp.eq.f32.partialorder %v3040_v38, 1.0 }
  0xb4   :  { %7103 = vst [vmem:[#allocation276_spill] sm:$0xff] %v3419_v36  ;;  %7105 = vst [vmem:[#allocation277_spill] sm:$0xff] %v3424_v22  ;;  %v3438_v36 = vsel %vm7108_vm4, 1.0, %v6615_v13  ;;  %v3443_v22 = vsel %vm7110_vm2, 1.0, %v6615_v13  ;;  %vm7115_vm4 = vcmp.eq.f32.partialorder %v3036_v40, 1.0  ;;  %vm7117_vm2 = vcmp.eq.f32.partialorder %v3038_v50, 1.0 }
  0xb5   :  { %7107 = vst [vmem:[#allocation278_spill] sm:$0xff] %v3433_v16  ;;  %7109 = vst [vmem:[#allocation279_spill] sm:$0xff] %v3438_v36  ;;  %v3455_v16 = vsel %vm6732_vm6, 1.0, %v6615_v13  ;;  %v3460_v36 = vsel %vm7115_vm4, 1.0, %v6615_v13  ;;  %vm7123_vm4 = vcmp.eq.f32.partialorder %v3074_v9, 1.0  ;;  %v3734_v26 = vld [vmem:[#allocation5 + $0x2e8] sm:$0xff] }
  0xb6   :  { %7111 = vst [vmem:[#allocation280_spill] sm:$0xff] %v3443_v22  ;;  %7113 = vst [vmem:[#allocation281_spill] sm:$0xff] %v3448_v0  ;;  %v3465_v22 = vsel %vm7117_vm2, 1.0, %v6615_v13  ;;  %v3470_v0 = vsel %vm7119_vm0, 1.0, %v6615_v13  ;;  %vm7125_vm2 = vcmp.eq.f32.partialorder %v3076_v17, 1.0  ;;  %vm7128_vm0 = vcmp.eq.f32.partialorder %v3104_v35, 1.0 }
  0xb7   :  { %7114 = vst [vmem:[#allocation282_spill] sm:$0xff] %v3455_v16  ;;  %7116 = vst [vmem:[#allocation283_spill] sm:$0xff] %v3460_v36  ;;  %v3480_v16 = vsel %vm6585_vm10, 1.0, %v6615_v13  ;;  %v3485_v36 = vsel %vm7123_vm4, 1.0, %v6615_v13  ;;  %vm7130_vm10 = vcmp.eq.f32.partialorder %v3106_v4, 1.0  ;;  %vm7132_vm4 = vcmp.eq.f32.partialorder %v3108_v7, 1.0 }
  0xb8   :  { %7118 = vst [vmem:[#allocation284_spill] sm:$0xff] %v3465_v22  ;;  %7120 = vst [vmem:[#allocation285_spill] sm:$0xff] %v3470_v0  ;;  %v3490_v22 = vsel %vm7125_vm2, 1.0, %v6615_v13  ;;  %v3495_v0 = vsel %vm6586_vm3, 1.0, %v6615_v13  ;;  %vm7134_vm2 = vcmp.eq.f32.partialorder %v3134_v47, 1.0  ;;  %vm7136_vm3 = vcmp.eq.f32.partialorder %v3136_v48, 1.0 }
  0xb9   :  { %7121 = vst [vmem:[#allocation286_spill] sm:$0xff] %v3475_v45  ;;  %7122 = vst [vmem:[#allocation287_spill] sm:$0xff] %v3480_v16  ;;  %v3500_v45 = vsel %vm7128_vm0, 1.0, %v6615_v13  ;;  %v3505_v16 = vsel %vm7130_vm10, 1.0, %v6615_v13  ;;  %vm7138_vm0 = vcmp.eq.f32.partialorder %v3138_v28, 1.0  ;;  %vm7140_vm10 = vcmp.eq.f32.partialorder %v3140_v42, 1.0 }
  0xba   :  { %7124 = vst [vmem:[#allocation288_spill] sm:$0xff] %v3485_v36  ;;  %7126 = vst [vmem:[#allocation289_spill] sm:$0xff] %v3490_v22  ;;  %v3510_v36 = vsel %vm7132_vm4, 1.0, %v6615_v13  ;;  %v3515_v22 = vsel %vm7134_vm2, 1.0, %v6615_v13  ;;  %vm7142_vm4 = vcmp.eq.f32.partialorder %v3166_v31, 1.0  ;;  %vm7144_vm2 = vcmp.eq.f32.partialorder %v3168_v49, 1.0 }
  0xbb   :  { %7127 = vst [vmem:[#allocation290_spill] sm:$0xff] %v3495_v0  ;;  %7129 = vst [vmem:[#allocation291_spill] sm:$0xff] %v3500_v45  ;;  %v3520_v0 = vsel %vm7136_vm3, 1.0, %v6615_v13  ;;  %v3525_v45 = vsel %vm7138_vm0, 1.0, %v6615_v13  ;;  %vm7146_vm3 = vcmp.eq.f32.partialorder %v3170_v53, 1.0  ;;  %vm7148_vm0 = vcmp.eq.f32.partialorder %v3172_v59, 1.0 }
  0xbc   :  { %7131 = vst [vmem:[#allocation292_spill] sm:$0xff] %v3505_v16  ;;  %7133 = vst [vmem:[#allocation293_spill] sm:$0xff] %v3510_v36  ;;  %v3530_v16 = vsel %vm7140_vm10, 1.0, %v6615_v13  ;;  %v3535_v36 = vsel %vm7142_vm4, 1.0, %v6615_v13  ;;  %vm7151_vm10 = vcmp.eq.f32.partialorder %v3200_v55, 1.0  ;;  %vm7153_vm4 = vcmp.eq.f32.partialorder %v3202_v29, 1.0 }
  0xbd   :  { %7135 = vst [vmem:[#allocation294_spill] sm:$0xff] %v3515_v22  ;;  %7137 = vst [vmem:[#allocation295_spill] sm:$0xff] %v3520_v0  ;;  %v3540_v22 = vsel %vm7144_vm2, 1.0, %v6615_v13  ;;  %v3545_v0 = vsel %vm7146_vm3, 1.0, %v6615_v13  ;;  %vm7155_vm2 = vcmp.eq.f32.partialorder %v3204_v41, 1.0  ;;  %vm7159_vm3 = vcmp.eq.f32.partialorder %v3234_v57, 1.0 }
  0xbe   :  { %7139 = vst [vmem:[#allocation296_spill] sm:$0xff] %v3525_v45  ;;  %7141 = vst [vmem:[#allocation297_spill] sm:$0xff] %v3530_v16  ;;  %v3550_v45 = vsel %vm7148_vm0, 1.0, %v6615_v13  ;;  %v3555_v16 = vsel %vm325_vm11, 1.0, %v6615_v13  ;;  %vm7161_vm0 = vcmp.eq.f32.partialorder %v3236_v56, 1.0  ;;  %v7187_v41 = vld [vmem:[#allocation130_spill] sm:$0xff]  ;;  %v7220_v47 = vmov %v3318_v54 }
  0xbf   :  { %7143 = vst [vmem:[#allocation298_spill] sm:$0xff] %v3535_v36  ;;  %7145 = vst [vmem:[#allocation299_spill] sm:$0xff] %v3540_v22  ;;  %v3560_v36 = vsel %vm7151_vm10, 1.0, %v6615_v13  ;;  %v3565_v22 = vsel %vm7153_vm4, 1.0, %v6615_v13  ;;  %vm7165_vm10 = vcmp.eq.f32.partialorder %v3290_v14, 1.0  ;;  %vm7167_vm4 = vcmp.eq.f32.partialorder %v3292_v37, 1.0 }
  0xc0   :  { %7147 = vst [vmem:[#allocation300_spill] sm:$0xff] %v3545_v0  ;;  %7149 = vst [vmem:[#allocation301_spill] sm:$0xff] %v3550_v45  ;;  %v3570_v0 = vsel %vm7155_vm2, 1.0, %v6615_v13  ;;  %v3575_v45 = vsel %vm329_vm1, 1.0, %v6615_v13  ;;  %vm7171_vm2 = vcmp.eq.f32.partialorder %v3346_v15, 1.0  ;;  %v7191_v14 = vld [vmem:[#allocation135_spill] sm:$0xff] }
  0xc1   :  { %7150 = vst [vmem:[#allocation302_spill] sm:$0xff] %v3555_v16  ;;  %7152 = vst [vmem:[#allocation303_spill] sm:$0xff] %v3560_v36  ;;  %v3580_v16 = vsel %vm330_vm14, 1.0, %v6615_v13  ;;  %v3585_v36 = vsel %vm7159_vm3, 1.0, %v6615_v13  ;;  %vm7173_vm3 = vcmp.eq.f32.partialorder %v3348_v21, 1.0  ;;  %v7197_v15 = vld [vmem:[#allocation147_spill] sm:$0xff] }
  0xc2   :  { %7154 = vst [vmem:[#allocation304_spill] sm:$0xff] %v3565_v22  ;;  %7156 = vst [vmem:[#allocation305_spill] sm:$0xff] %v3570_v0  ;;  %v3590_v22 = vsel %vm7161_vm0, 1.0, %v6615_v13  ;;  %v3595_v0 = vsel %vm333_vm7, 1.0, %v6615_v13  ;;  %v3724_v59 = vld [vmem:[#allocation5 + $0x2d0] sm:$0xff]  ;;  %v3726_v37 = vld [vmem:[#allocation5 + $0x2d8] sm:$0xff] }
  0xc3   :  { %7157 = vst [vmem:[#allocation306_spill] sm:$0xff] %v3575_v45  ;;  %7158 = vst [vmem:[#allocation307_spill] sm:$0xff] %v3580_v16  ;;  %v3600_v45 = vsel %vm334_vm5, 1.0, %v6615_v13  ;;  %v3605_v16 = vsel %vm7165_vm10, 1.0, %v6615_v13  ;;  %v7218_v21 = vld [vmem:[#allocation250_spill] sm:$0xff]  ;;  %v7219_v29 = vld [vmem:[#allocation251_spill] sm:$0xff] }
  0xc4   :  { %7160 = vst [vmem:[#allocation308_spill] sm:$0xff] %v3585_v36  ;;  %7162 = vst [vmem:[#allocation309_spill] sm:$0xff] %v3590_v22  ;;  %v3610_v36 = vsel %vm7167_vm4, 1.0, %v6615_v13  ;;  %v3615_v22 = vsel %vm337_vm15, 1.0, %v6615_v13  ;;  %v3732_v28 = vld [vmem:[#allocation5 + $0x2e0] sm:$0xff]  ;;  %v3740_v60 = vld [vmem:[#allocation5 + $0x2f0] sm:$0xff] }
  0xc5   :  { %7163 = vst [vmem:[#allocation310_spill] sm:$0xff] %v3595_v0  ;;  %7164 = vst [vmem:[#allocation311_spill] sm:$0xff] %v3600_v45  ;;  %v3620_v0 = vsel %vm338_vm13, 1.0, %v6615_v13  ;;  %v3625_v45 = vsel %vm7171_vm2, 1.0, %v6615_v13  ;;  %v7230_v49 = vld [vmem:[#allocation107_spill] sm:$0xff]  ;;  %v7238_v48 = vld [vmem:[#allocation116_spill] sm:$0xff] }
  0xc6   :  { %7166 = vst [vmem:[#allocation312_spill] sm:$0xff] %v3605_v16  ;;  %7168 = vst [vmem:[#allocation313_spill] sm:$0xff] %v3610_v36  ;;  %v3630_v16 = vsel %vm7173_vm3, 1.0, %v6615_v13  ;;  %v3635_v36 = vsel %vm341_vm9, 1.0, %v6615_v13  ;;  %v7231_v31 = vsub.f32 1.0, %v7230_v49  ;;  %v7233_v42 = vld [vmem:[#allocation111_spill] sm:$0xff] }
  0xc7   :  { %7169 = vst [vmem:[#allocation314_spill] sm:$0xff] %v3615_v22  ;;  %7170 = vst [vmem:[#allocation315_spill] sm:$0xff] %v3620_v0  ;;  %v3640_v22 = vsel %vm342_vm12, 1.0, %v6615_v13  ;;  %v7188_v0 = vld [vmem:[#allocation131_spill] sm:$0xff]  ;;  %v7234_v53 = vsub.f32 1.0, %v7233_v42  ;;  %v7241_v54 = vld [vmem:[#allocation120_spill] sm:$0xff] }
  0xc8   :  { %7172 = vst [vmem:[#allocation316_spill] sm:$0xff] %v3625_v45  ;;  %7174 = vst [vmem:[#allocation317_spill] sm:$0xff] %v3630_v16  ;;  %v7204_v13 = vld [vmem:[#allocation159_spill] sm:$0xff]  ;;  %v7206_v45 = vld [vmem:[#allocation164_spill] sm:$0xff]  ;;  %v3753_v55 = vmul.f32 %v7231_v31, %v7231_v31  ;;  %v7242_v49 = vsub.f32 1.0, %v7241_v54 }
  0xc9   :  { %7175 = vst [vmem:[#allocation318_spill] sm:$0xff] %v3635_v36  ;;  %7176 = vst [vmem:[#allocation319_spill] sm:$0xff] %v3640_v22  ;;  %v7202_v36 = vld [vmem:[#allocation155_spill] sm:$0xff]  ;;  %v3758_v22 = vmul.f32 %v7234_v53, %v7234_v53 }
  0xca   :  { %7216 = vst [vmem:[#allocation320_spill] sm:$0xff] %v3724_v59  ;;  %7217 = vst [vmem:[#allocation321_spill] sm:$0xff] %v3726_v37  ;;  %v3742_v16 = vld [vmem:[#allocation5 + $0x2f8] sm:$0xff]  ;;  %v3773_v31 = vmul.f32 %v7242_v49, %v7242_v49 }
  0xcb   :  { %7222 = vst [vmem:[#allocation322_spill] sm:$0xff] %v3732_v28  ;;  %7223 = vst [vmem:[#allocation323_spill] sm:$0xff] %v3734_v26  ;;  %v7235_v57 = vld [vmem:[#allocation115_spill] sm:$0xff]  ;;  %v7239_v26 = vsub.f32 1.0, %v7238_v48 }
  0xcc   :  { %7228 = vst [vmem:[#allocation324_spill] sm:$0xff] %v3740_v60  ;;  %7229 = vst [vmem:[#allocation325_spill] sm:$0xff] %v3742_v16  ;;  %v7236_v43 = vsub.f32 1.0, %v7235_v57  ;;  %v7246_v57 = vsub.f32 1.0, %v7183_v20  ;;  %v7255_v20 = vsub.f32 1.0, %v7187_v41  ;;  %v7265_v41 = vsub.f32 1.0, %v7191_v14 }
  0xcd   :  { %7232 = vst [vmem:[#allocation326_spill] sm:$0xff] %v3753_v55  ;;  %v3768_v3 = vmul.f32 %v7239_v26, %v7239_v26  ;;  %7243 = vst [vmem:[#allocation329_spill] sm:$0xff] %v3773_v31  ;;  %v7244_v55 = vld [vmem:[#allocation121_spill] sm:$0xff]  ;;  %v7253_v31 = vld [vmem:[#allocation127_spill] sm:$0xff] }
  0xce   :  { %v3763_v56 = vmul.f32 %v7236_v43, %v7236_v43  ;;  %v7245_v42 = vsub.f32 1.0, %v7244_v55  ;;  %v3783_v43 = vmul.f32 %v7246_v57, %v7246_v57  ;;  %v7254_v55 = vsub.f32 1.0, %v7253_v31 }
  0xcf   :  { %7240 = vst [vmem:[#allocation328_spill] sm:$0xff] %v3768_v3  ;;  %v7250_v3 = vld [vmem:[#allocation126_spill] sm:$0xff]  ;;  %v3803_v57 = vmul.f32 %v7255_v20, %v7255_v20  ;;  %v3823_v20 = vmul.f32 %v7265_v41, %v7265_v41 }
  0xd0   :  { %7237 = vst [vmem:[#allocation327_spill] sm:$0xff] %v3763_v56  ;;  %v3778_v53 = vmul.f32 %v7245_v42, %v7245_v42  ;;  %v7247_v56 = vld [vmem:[#allocation125_spill] sm:$0xff]  ;;  %v7251_v54 = vsub.f32 1.0, %v7250_v3  ;;  %v3798_v42 = vmul.f32 %v7254_v55, %v7254_v55 }
  0xd1   :  { %v7248_v48 = vsub.f32 1.0, %v7247_v56  ;;  %7256 = vst [vmem:[#allocation332_spill] sm:$0xff] %v3803_v57  ;;  %v7257_v56 = vsub.f32 1.0, %v7188_v0  ;;  %7266 = vst [vmem:[#allocation336_spill] sm:$0xff] %v3823_v20  ;;  %v7267_v57 = vld [vmem:[#allocation136_spill] sm:$0xff]  ;;  %v7277_v20 = vld [vmem:[#allocation142_spill] sm:$0xff] }
  0xd2   :  { %v3793_v49 = vmul.f32 %v7251_v54, %v7251_v54  ;;  %v7268_v0 = vsub.f32 1.0, %v7267_v57  ;;  %v7278_v57 = vsub.f32 1.0, %v7277_v20  ;;  %v7286_v20 = vsub.f32 1.0, %v7197_v15 }
  0xd3   :  { %v3788_v26 = vmul.f32 %v7248_v48, %v7248_v48  ;;  %v3808_v48 = vmul.f32 %v7257_v56, %v7257_v56  ;;  %v7292_v15 = vsub.f32 1.0, %v7200_v62  ;;  %v7296_v62 = vsub.f32 1.0, %v7204_v13 }
  0xd4   :  { %7252 = vst [vmem:[#allocation331_spill] sm:$0xff] %v3793_v49  ;;  %v7262_v49 = vld [vmem:[#allocation134_spill] sm:$0xff]  ;;  %v3828_v56 = vmul.f32 %v7268_v0, %v7268_v0  ;;  %v3848_v0 = vmul.f32 %v7278_v57, %v7278_v57  ;;  %v3868_v57 = vmul.f32 %v7286_v20, %v7286_v20  ;;  %v7300_v13 = vsub.f32 1.0, %v7206_v45 }
  0xd5   :  { %7249 = vst [vmem:[#allocation330_spill] sm:$0xff] %v3788_v26  ;;  %7258 = vst [vmem:[#allocation333_spill] sm:$0xff] %v3808_v48  ;;  %v7259_v26 = vld [vmem:[#allocation132_spill] sm:$0xff]  ;;  %v7263_v31 = vsub.f32 1.0, %v7262_v49  ;;  %v7270_v48 = vld [vmem:[#allocation138_spill] sm:$0xff]  ;;  %v3888_v20 = vmul.f32 %v7292_v15, %v7292_v15  ;;  %v3908_v15 = vmul.f32 %v7296_v62, %v7296_v62  ;;  %v7305_v45 = vsub.f32 1.0, %v2910_v52 }
  0xd6   :  { %v7260_v3 = vsub.f32 1.0, %v7259_v26  ;;  %7269 = vst [vmem:[#allocation337_spill] sm:$0xff] %v3828_v56  ;;  %v7271_v26 = vsub.f32 1.0, %v7270_v48  ;;  %7279 = vst [vmem:[#allocation339_spill] sm:$0xff] %v3848_v0  ;;  %v7280_v56 = vld [vmem:[#allocation143_spill] sm:$0xff]  ;;  %v7287_v0 = vld [vmem:[#allocation148_spill] sm:$0xff]  ;;  %v3928_v62 = vmul.f32 %v7300_v13, %v7300_v13 }
  0xd7   :  { %v3818_v55 = vmul.f32 %v7263_v31, %v7263_v31  ;;  %v7281_v48 = vsub.f32 1.0, %v7280_v56  ;;  %v7288_v56 = vsub.f32 1.0, %v7287_v0  ;;  %v7293_v0 = vsub.f32 1.0, %v7201_v63 }
  0xd8   :  { %v3813_v54 = vmul.f32 %v7260_v3, %v7260_v3  ;;  %v3833_v3 = vmul.f32 %v7271_v26, %v7271_v26  ;;  %v7297_v63 = vsub.f32 1.0, %v7205_v58  ;;  %v7301_v58 = vsub.f32 1.0, %v7207_v2 }
  0xd9   :  { %7264 = vst [vmem:[#allocation335_spill] sm:$0xff] %v3818_v55  ;;  %v7275_v55 = vld [vmem:[#allocation140_spill] sm:$0xff]  ;;  %v3853_v26 = vmul.f32 %v7281_v48, %v7281_v48  ;;  %v3873_v48 = vmul.f32 %v7288_v56, %v7288_v56  ;;  %v3893_v56 = vmul.f32 %v7293_v0, %v7293_v0  ;;  %v3948_v13 = vmul.f32 %v7305_v45, %v7305_v45 }
  0xda   :  { %7261 = vst [vmem:[#allocation334_spill] sm:$0xff] %v3813_v54  ;;  %7272 = vst [vmem:[#allocation338_spill] sm:$0xff] %v3833_v3  ;;  %v7273_v54 = vld [vmem:[#allocation139_spill] sm:$0xff]  ;;  %v7276_v14 = vsub.f32 1.0, %v7275_v55  ;;  %v7283_v3 = vld [vmem:[#allocation144_spill] sm:$0xff]  ;;  %v7285_v55 = vsub.f32 1.0, %v2817_v1  ;;  %v3913_v0 = vmul.f32 %v7297_v63, %v7297_v63  ;;  %v3933_v63 = vmul.f32 %v7301_v58, %v7301_v58 }
  0xdb   :  { %v7274_v49 = vsub.f32 1.0, %v7273_v54  ;;  %7282 = vst [vmem:[#allocation340_spill] sm:$0xff] %v3853_v26  ;;  %v7284_v54 = vsub.f32 1.0, %v7283_v3  ;;  %v7289_v26 = vld [vmem:[#allocation150_spill] sm:$0xff]  ;;  %v7291_v1 = vsub.f32 1.0, %v7199_v10  ;;  %v7295_v10 = vsub.f32 1.0, %v7203_v51 }
  0xdc   :  { %v3843_v41 = vmul.f32 %v7276_v14, %v7276_v14  ;;  %v3863_v14 = vmul.f32 %v7285_v55, %v7285_v55  ;;  %v7290_v3 = vsub.f32 1.0, %v7289_v26  ;;  %v7294_v26 = vsub.f32 1.0, %v7202_v36  ;;  %7302 = vst [vmem:[#allocation341_spill] sm:$0xff] %v3933_v63  ;;  %v7307_v63 = vld [vmem:[#allocation176_spill] sm:$0xff] }
  0xdd   :  { %v3838_v31 = vmul.f32 %v7274_v49, %v7274_v49  ;;  %v3858_v49 = vmul.f32 %v7284_v54, %v7284_v54  ;;  %v3883_v55 = vmul.f32 %v7291_v1, %v7291_v1  ;;  %v3903_v1 = vmul.f32 %v7295_v10, %v7295_v10 }
  0xde   :  { %v3878_v54 = vmul.f32 %v7290_v3, %v7290_v3  ;;  %v3898_v3 = vmul.f32 %v7294_v26, %v7294_v26  ;;  %v7298_v36 = vsub.f32 1.0, %v7074_v61  ;;  %v7299_v51 = vsub.f32 1.0, %v7077_v27 }
  0xdf   :  { %v7303_v61 = vsub.f32 1.0, %v2906_v5  ;;  %v7304_v27 = vsub.f32 1.0, %v2908_v30  ;;  %v7306_v2 = vsub.f32 1.0, %v2936_v11  ;;  %v7308_v5 = vsub.f32 1.0, %v7307_v63 }
  0xe0   :  { %v3918_v26 = vmul.f32 %v7298_v36, %v7298_v36  ;;  %v3923_v10 = vmul.f32 %v7299_v51, %v7299_v51  ;;  %v7309_v30 = vsub.f32 1.0, %v2940_v8  ;;  %v7310_v52 = vsub.f32 1.0, %v2942_v12 }
  0xe1   :  { %v3938_v36 = vmul.f32 %v7303_v61, %v7303_v61  ;;  %v3943_v51 = vmul.f32 %v7304_v27, %v7304_v27  ;;  %v3953_v58 = vmul.f32 %v7306_v2, %v7306_v2  ;;  %v3958_v61 = vmul.f32 %v7308_v5, %v7308_v5 }
  0xe2   :  { %v3963_v27 = vmul.f32 %v7309_v30, %v7309_v30  ;;  %v3968_v45 = vmul.f32 %v7310_v52, %v7310_v52  ;;  %v7311_v11 = vsub.f32 1.0, %v2968_v18  ;;  %v7312_v63 = vsub.f32 1.0, %v2970_v39 }
  0xe3   :  { %v7313_v8 = vsub.f32 1.0, %v2972_v33  ;;  %v7314_v12 = vsub.f32 1.0, %v2974_v19  ;;  %v7315_v18 = vsub.f32 1.0, %v3000_v25  ;;  %v7316_v39 = vsub.f32 1.0, %v3002_v46 }
  0xe4   :  { %v3973_v2 = vmul.f32 %v7311_v11, %v7311_v11  ;;  %v3978_v5 = vmul.f32 %v7312_v63, %v7312_v63  ;;  %v7317_v33 = vsub.f32 1.0, %v3004_v23  ;;  %v7318_v19 = vsub.f32 1.0, %v3006_v44 }
  0xe5   :  { %v3983_v30 = vmul.f32 %v7313_v8, %v7313_v8  ;;  %v3988_v52 = vmul.f32 %v7314_v12, %v7314_v12  ;;  %v3993_v11 = vmul.f32 %v7315_v18, %v7315_v18  ;;  %v3998_v63 = vmul.f32 %v7316_v39, %v7316_v39 }
  0xe6   :  { %v4003_v8 = vmul.f32 %v7317_v33, %v7317_v33  ;;  %v4008_v12 = vmul.f32 %v7318_v19, %v7318_v19  ;;  %v7319_v25 = vsub.f32 1.0, %v7208_v32  ;;  %v7320_v46 = vsub.f32 1.0, %v3036_v40 }
  0xe7   :  { %v7321_v23 = vsub.f32 1.0, %v3038_v50  ;;  %v7322_v44 = vsub.f32 1.0, %v3040_v38  ;;  %v7323_v32 = vsub.f32 1.0, %v3070_v34  ;;  %v7324_v40 = vsub.f32 1.0, %v3072_v24 }
  0xe8   :  { %v4013_v18 = vmul.f32 %v7319_v25, %v7319_v25  ;;  %v4018_v39 = vmul.f32 %v7320_v46, %v7320_v46  ;;  %v7325_v50 = vsub.f32 1.0, %v3074_v9  ;;  %v7326_v38 = vsub.f32 1.0, %v3076_v17 }
  0xe9   :  { %v4023_v33 = vmul.f32 %v7321_v23, %v7321_v23  ;;  %v4028_v19 = vmul.f32 %v7322_v44, %v7322_v44  ;;  %v4033_v25 = vmul.f32 %v7323_v32, %v7323_v32  ;;  %v4038_v46 = vmul.f32 %v7324_v40, %v7324_v40 }
  0xea   :  { %v4043_v23 = vmul.f32 %v7325_v50, %v7325_v50  ;;  %v4048_v44 = vmul.f32 %v7326_v38, %v7326_v38  ;;  %v7328_v34 = vsub.f32 1.0, %v3102_v6  ;;  %v7330_v24 = vsub.f32 1.0, %v3104_v35 }
  0xeb   :  { %v7332_v9 = vsub.f32 1.0, %v3106_v4  ;;  %v7334_v17 = vsub.f32 1.0, %v3108_v7 }
  0xec   :  { %7327 = vst [vmem:[#allocation342_spill] sm:$0xff] %v4048_v44  ;;  %v4053_v32 = vmul.f32 %v7328_v34, %v7328_v34  ;;  %v4058_v40 = vmul.f32 %v7330_v24, %v7330_v24  ;;  %v7336_v44 = vld [vmem:[#allocation212_spill] sm:$0xff] }
  0xed   :  { %v4063_v50 = vmul.f32 %v7332_v9, %v7332_v9  ;;  %v4068_v38 = vmul.f32 %v7334_v17, %v7334_v17  ;;  %v7337_v6 = vsub.f32 1.0, %v7336_v44 }
  0xee   :  { %7329 = vst [vmem:[#allocation343_spill] sm:$0xff] %v4053_v32  ;;  %7331 = vst [vmem:[#allocation344_spill] sm:$0xff] %v4058_v40  ;;  %v7339_v32 = vld [vmem:[#allocation213_spill] sm:$0xff]  ;;  %v7342_v40 = vld [vmem:[#allocation214_spill] sm:$0xff] }
  0xef   :  { %7333 = vst [vmem:[#allocation345_spill] sm:$0xff] %v4063_v50  ;;  %7335 = vst [vmem:[#allocation346_spill] sm:$0xff] %v4068_v38  ;;  %v4073_v34 = vmul.f32 %v7337_v6, %v7337_v6  ;;  %v7340_v35 = vsub.f32 1.0, %v7339_v32  ;;  %v7343_v4 = vsub.f32 1.0, %v7342_v40  ;;  %v7345_v50 = vld [vmem:[#allocation215_spill] sm:$0xff]  ;;  %v7348_v38 = vld [vmem:[#allocation220_spill] sm:$0xff] }
  0xf0   :  { %v7346_v7 = vsub.f32 1.0, %v7345_v50  ;;  %v7349_v44 = vsub.f32 1.0, %v7348_v38 }
  0xf1   :  { %7338 = vst [vmem:[#allocation347_spill] sm:$0xff] %v4073_v34  ;;  %v4078_v24 = vmul.f32 %v7340_v35, %v7340_v35  ;;  %v4083_v9 = vmul.f32 %v7343_v4, %v7343_v4  ;;  %v7351_v34 = vld [vmem:[#allocation221_spill] sm:$0xff] }
  0xf2   :  { %v4088_v17 = vmul.f32 %v7346_v7, %v7346_v7  ;;  %v4093_v6 = vmul.f32 %v7349_v44, %v7349_v44  ;;  %v7352_v32 = vsub.f32 1.0, %v7351_v34 }
  0xf3   :  { %7341 = vst [vmem:[#allocation348_spill] sm:$0xff] %v4078_v24  ;;  %7344 = vst [vmem:[#allocation349_spill] sm:$0xff] %v4083_v9  ;;  %v7354_v24 = vld [vmem:[#allocation222_spill] sm:$0xff]  ;;  %v7357_v9 = vld [vmem:[#allocation223_spill] sm:$0xff] }
  0xf4   :  { %7347 = vst [vmem:[#allocation350_spill] sm:$0xff] %v4088_v17  ;;  %7350 = vst [vmem:[#allocation351_spill] sm:$0xff] %v4093_v6  ;;  %v4098_v35 = vmul.f32 %v7352_v32, %v7352_v32  ;;  %v7355_v40 = vsub.f32 1.0, %v7354_v24  ;;  %v7358_v50 = vsub.f32 1.0, %v7357_v9  ;;  %v7360_v17 = vld [vmem:[#allocation228_spill] sm:$0xff]  ;;  %v7363_v6 = vld [vmem:[#allocation229_spill] sm:$0xff] }
  0xf5   :  { %v7361_v38 = vsub.f32 1.0, %v7360_v17  ;;  %v7364_v34 = vsub.f32 1.0, %v7363_v6 }
  0xf6   :  { %7353 = vst [vmem:[#allocation352_spill] sm:$0xff] %v4098_v35  ;;  %v4103_v4 = vmul.f32 %v7355_v40, %v7355_v40  ;;  %v4108_v7 = vmul.f32 %v7358_v50, %v7358_v50  ;;  %v7366_v35 = vld [vmem:[#allocation230_spill] sm:$0xff] }
  0xf7   :  { %v4113_v44 = vmul.f32 %v7361_v38, %v7361_v38  ;;  %v4118_v32 = vmul.f32 %v7364_v34, %v7364_v34  ;;  %v7367_v24 = vsub.f32 1.0, %v7366_v35 }
  0xf8   :  { %7356 = vst [vmem:[#allocation353_spill] sm:$0xff] %v4103_v4  ;;  %7359 = vst [vmem:[#allocation354_spill] sm:$0xff] %v4108_v7  ;;  %v7369_v4 = vld [vmem:[#allocation231_spill] sm:$0xff]  ;;  %v7372_v7 = vld [vmem:[#allocation236_spill] sm:$0xff] }
  0xf9   :  { %7362 = vst [vmem:[#allocation355_spill] sm:$0xff] %v4113_v44  ;;  %7365 = vst [vmem:[#allocation356_spill] sm:$0xff] %v4118_v32  ;;  %v4123_v40 = vmul.f32 %v7367_v24, %v7367_v24  ;;  %v7370_v9 = vsub.f32 1.0, %v7369_v4  ;;  %v7373_v17 = vsub.f32 1.0, %v7372_v7  ;;  %v7375_v44 = vld [vmem:[#allocation237_spill] sm:$0xff]  ;;  %v7377_v32 = vld [vmem:[#allocation238_spill] sm:$0xff] }
  0xfa   :  { %v7376_v6 = vsub.f32 1.0, %v7375_v44  ;;  %v7378_v35 = vsub.f32 1.0, %v7377_v32  ;;  %v7387_v32 = vsub.f32 1.0, %v7218_v21 }
  0xfb   :  { %7368 = vst [vmem:[#allocation357_spill] sm:$0xff] %v4123_v40  ;;  %v4128_v50 = vmul.f32 %v7370_v9, %v7370_v9  ;;  %v4133_v38 = vmul.f32 %v7373_v17, %v7373_v17  ;;  %v7379_v40 = vld [vmem:[#allocation239_spill] sm:$0xff] }
  0xfc   :  { %v4138_v34 = vmul.f32 %v7376_v6, %v7376_v6  ;;  %v4143_v24 = vmul.f32 %v7378_v35, %v7378_v35  ;;  %v7380_v4 = vsub.f32 1.0, %v7379_v40  ;;  %v4163_v35 = vmul.f32 %v7387_v32, %v7387_v32 }
  0xfd   :  { %7371 = vst [vmem:[#allocation358_spill] sm:$0xff] %v4128_v50  ;;  %7374 = vst [vmem:[#allocation359_spill] sm:$0xff] %v4133_v38  ;;  %v7381_v50 = vld [vmem:[#allocation244_spill] sm:$0xff]  ;;  %v7384_v38 = vld [vmem:[#allocation245_spill] sm:$0xff]  ;;  %v7389_v40 = vsub.f32 1.0, %v7219_v29 }
  0xfe   :  { %v4148_v9 = vmul.f32 %v7380_v4, %v7380_v4  ;;  %v7382_v7 = vsub.f32 1.0, %v7381_v50  ;;  %v7385_v44 = vsub.f32 1.0, %v7384_v38  ;;  %7388 = vst [vmem:[#allocation362_spill] sm:$0xff] %v4163_v35  ;;  %v7391_v50 = vsub.f32 1.0, %v7220_v47  ;;  %v7397_v35 = vld [vmem:[#allocation263_spill] sm:$0xff] }
  0xff   :  { %v4168_v4 = vmul.f32 %v7389_v40, %v7389_v40  ;;  %v7398_v29 = vsub.f32 1.0, %v7397_v35  ;;  %v7405_v35 = vsub.f32 1.0, %v3726_v37  ;;  %v7411_v37 = vsub.f32 1.0, %v3742_v16  ;;  %v7417_v16 = vld [vmem:[#allocation329_spill] sm:$0xff] }
 0x100   :  { %v4153_v17 = vmul.f32 %v7382_v7, %v7382_v7  ;;  %v4158_v6 = vmul.f32 %v7385_v44, %v7385_v44  ;;  %v4173_v7 = vmul.f32 %v7391_v50, %v7391_v50 }
 0x101   :  { %7390 = vst [vmem:[#allocation363_spill] sm:$0xff] %v4168_v4  ;;  %v4188_v40 = vmul.f32 %v7398_v29, %v7398_v29  ;;  %v7399_v4 = vld [vmem:[#allocation268_spill] sm:$0xff]  ;;  %v4208_v29 = vmul.f32 %v7405_v35, %v7405_v35  ;;  %v4228_v35 = vmul.f32 %v7411_v37, %v7411_v37  ;;  %v4248_v37 = vmul.f32 %v7417_v16, %v7417_v16 }
 0x102   :  { %7383 = vst [vmem:[#allocation360_spill] sm:$0xff] %v4153_v17  ;;  %7386 = vst [vmem:[#allocation361_spill] sm:$0xff] %v4158_v6  ;;  %v7393_v17 = vld [vmem:[#allocation257_spill] sm:$0xff]  ;;  %v7395_v6 = vld [vmem:[#allocation262_spill] sm:$0xff]  ;;  %v7400_v47 = vsub.f32 1.0, %v7399_v4  ;;  %v7407_v4 = vsub.f32 1.0, %v3732_v28  ;;  %v4268_v16 = vmul.f32 %v3798_v42, %v3798_v42 }
 0x103   :  { %7392 = vst [vmem:[#allocation364_spill] sm:$0xff] %v4173_v7  ;;  %v7394_v38 = vsub.f32 1.0, %v7393_v17  ;;  %v7396_v21 = vsub.f32 1.0, %v7395_v6  ;;  %v7402_v7 = vld [vmem:[#allocation269_spill] sm:$0xff]  ;;  %v7404_v6 = vsub.f32 1.0, %v3724_v59  ;;  %7406 = vst [vmem:[#allocation366_spill] sm:$0xff] %v4208_v29 }
 0x104   :  { %v4193_v50 = vmul.f32 %v7400_v47, %v7400_v47  ;;  %v7403_v17 = vsub.f32 1.0, %v7402_v7  ;;  %v4213_v47 = vmul.f32 %v7407_v4, %v7407_v4  ;;  %v7410_v59 = vsub.f32 1.0, %v3740_v60  ;;  %v7412_v29 = vld [vmem:[#allocation326_spill] sm:$0xff]  ;;  %v7416_v60 = vld [vmem:[#allocation328_spill] sm:$0xff]  ;;  %7425 = vst [vmem:[#allocation368_spill] sm:$0xff] %v4268_v16  ;;  %v7436_v16 = vld [vmem:[#allocation337_spill] sm:$0xff] }
 0x105   :  { %v4178_v44 = vmul.f32 %v7394_v38, %v7394_v38  ;;  %v4183_v32 = vmul.f32 %v7396_v21, %v7396_v21  ;;  %v4203_v21 = vmul.f32 %v7404_v6, %v7404_v6  ;;  %v4232_v28 = vmul.f32 %v7412_v29, %v7412_v29  ;;  %7418 = vst [vmem:[#allocation328_spill] sm:$0xff] %v4248_v37  ;;  %v7426_v37 = vld [vmem:[#allocation332_spill] sm:$0xff] }
 0x106   :  { %7401 = vst [vmem:[#allocation365_spill] sm:$0xff] %v4193_v50  ;;  %v4198_v38 = vmul.f32 %v7403_v17, %v7403_v17  ;;  %v7408_v50 = vld [vmem:[#allocation323_spill] sm:$0xff]  ;;  %v4223_v6 = vmul.f32 %v7410_v59, %v7410_v59  ;;  %v4236_v4 = vmul.f32 %v3758_v22, %v3758_v22  ;;  %v4244_v59 = vmul.f32 %v7416_v60, %v7416_v60 }
 0x107   :  { %v7409_v7 = vsub.f32 1.0, %v7408_v50  ;;  %v4252_v29 = vmul.f32 %v3778_v53, %v3778_v53  ;;  %v4256_v22 = vmul.f32 %v3783_v43, %v3783_v43  ;;  %v4272_v53 = vmul.f32 %v7426_v37, %v7426_v37 }
 0x108   :  { %7413 = vst [vmem:[#allocation326_spill] sm:$0xff] %v4236_v4  ;;  %v7421_v4 = vld [vmem:[#allocation330_spill] sm:$0xff]  ;;  %v4292_v37 = vmul.f32 %v7436_v16, %v7436_v16 }
 0x109   :  { %v4218_v17 = vmul.f32 %v7409_v7, %v7409_v7  ;;  %v7414_v7 = vld [vmem:[#allocation327_spill] sm:$0xff]  ;;  %7419 = vst [vmem:[#allocation329_spill] sm:$0xff] %v4252_v29  ;;  %7420 = vst [vmem:[#allocation367_spill] sm:$0xff] %v4256_v22  ;;  %v7428_v29 = vld [vmem:[#allocation333_spill] sm:$0xff] }
 0x10a   :  { %v4240_v50 = vmul.f32 %v7414_v7, %v7414_v7  ;;  %v4260_v7 = vmul.f32 %v7421_v4, %v7421_v4  ;;  %7427 = vst [vmem:[#allocation332_spill] sm:$0xff] %v4272_v53  ;;  %v4276_v43 = vmul.f32 %v7428_v29, %v7428_v29  ;;  %v7430_v22 = vld [vmem:[#allocation334_spill] sm:$0xff]  ;;  %7437 = vst [vmem:[#allocation337_spill] sm:$0xff] %v4292_v37  ;;  %v4956_v37 = vld [vmem:[#allocation2 + $0x240] sm:$0xff] }
 0x10b   :  { %v4280_v4 = vmul.f32 %v7430_v22, %v7430_v22  ;;  %v7438_v53 = vld [vmem:[#allocation338_spill] sm:$0xff]  ;;  %v4300_v22 = vmul.f32 %v3838_v31, %v3838_v31  ;;  %v4320_v31 = vmul.f32 %v3863_v14, %v3863_v14  ;;  %v4340_v14 = vmul.f32 %v3888_v20, %v3888_v20  ;;  %7724 = vst [vmem:[#allocation467_spill] sm:$0xff] %v4956_v37 }
 0x10c   :  { %7415 = vst [vmem:[#allocation327_spill] sm:$0xff] %v4240_v50  ;;  %7422 = vst [vmem:[#allocation330_spill] sm:$0xff] %v4260_v7  ;;  %v7423_v50 = vld [vmem:[#allocation331_spill] sm:$0xff]  ;;  %v4296_v29 = vmul.f32 %v7438_v53, %v7438_v53  ;;  %v4316_v53 = vmul.f32 %v3858_v49, %v3858_v49  ;;  %v4336_v49 = vmul.f32 %v3883_v55, %v3883_v55 }
 0x10d   :  { %v4264_v60 = vmul.f32 %v7423_v50, %v7423_v50  ;;  %7429 = vst [vmem:[#allocation333_spill] sm:$0xff] %v4276_v43  ;;  %7431 = vst [vmem:[#allocation334_spill] sm:$0xff] %v4280_v4  ;;  %v7432_v7 = vld [vmem:[#allocation335_spill] sm:$0xff]  ;;  %v4356_v55 = vmul.f32 %v3908_v15, %v3908_v15  ;;  %v4360_v20 = vmul.f32 %v3913_v0, %v3913_v0  ;;  %v4972_v4 = vld [vmem:[#allocation2 + $0x250] sm:$0xff] }
 0x10e   :  { %v4284_v50 = vmul.f32 %v7432_v7, %v7432_v7  ;;  %7439 = vst [vmem:[#allocation338_spill] sm:$0xff] %v4296_v29  ;;  %7440 = vst [vmem:[#allocation369_spill] sm:$0xff] %v4300_v22  ;;  %v4304_v7 = vmul.f32 %v3843_v41, %v3843_v41  ;;  %v4324_v41 = vmul.f32 %v3868_v57, %v3868_v57  ;;  %v4932_v22 = vld [vmem:[#allocation2 + $0x228] sm:$0xff]  ;;  %v4940_v29 = vld [vmem:[#allocation2 + $0x230] sm:$0xff] }
 0x10f   :  { %7424 = vst [vmem:[#allocation331_spill] sm:$0xff] %v4264_v60  ;;  %v7434_v60 = vld [vmem:[#allocation336_spill] sm:$0xff]  ;;  %7446 = vst [vmem:[#allocation371_spill] sm:$0xff] %v4316_v53  ;;  %v4344_v57 = vmul.f32 %v3893_v56, %v3893_v56  ;;  %v4364_v56 = vmul.f32 %v3918_v26, %v3918_v26  ;;  %v4380_v0 = vmul.f32 %v3938_v36, %v3938_v36  ;;  %v4884_v53 = vld [vmem:[#allocation2 + $0x1f8] sm:$0xff] }
 0x110   :  { %7433 = vst [vmem:[#allocation335_spill] sm:$0xff] %v4284_v50  ;;  %v4288_v42 = vmul.f32 %v7434_v60, %v7434_v60  ;;  %7441 = vst [vmem:[#allocation370_spill] sm:$0xff] %v4304_v7  ;;  %v7442_v50 = vld [vmem:[#allocation339_spill] sm:$0xff]  ;;  %v4384_v26 = vmul.f32 %v3943_v51, %v3943_v51  ;;  %v4400_v36 = vmul.f32 %v3963_v27, %v3963_v27 }
 0x111   :  { %v4308_v60 = vmul.f32 %v7442_v50, %v7442_v50  ;;  %7447 = vst [vmem:[#allocation372_spill] sm:$0xff] %v4320_v31  ;;  %7448 = vst [vmem:[#allocation373_spill] sm:$0xff] %v4324_v41  ;;  %v4328_v50 = vmul.f32 %v3873_v48, %v3873_v48  ;;  %v4348_v48 = vmul.f32 %v3898_v3, %v3898_v3  ;;  %v4860_v41 = vld [vmem:[#allocation2 + $0x1e0] sm:$0xff]  ;;  %v4868_v31 = vld [vmem:[#allocation2 + $0x1e8] sm:$0xff] }
 0x112   :  { %7435 = vst [vmem:[#allocation336_spill] sm:$0xff] %v4288_v42  ;;  %v7444_v42 = vld [vmem:[#allocation340_spill] sm:$0xff]  ;;  %7451 = vst [vmem:[#allocation376_spill] sm:$0xff] %v4336_v49  ;;  %v4368_v3 = vmul.f32 %v3923_v10, %v3923_v10  ;;  %v4388_v10 = vmul.f32 %v3948_v13, %v3948_v13  ;;  %v4404_v51 = vmul.f32 %v3968_v45, %v3968_v45  ;;  %v4820_v49 = vld [vmem:[#allocation2 + $0x1b8] sm:$0xff] }
 0x113   :  { %7443 = vst [vmem:[#allocation339_spill] sm:$0xff] %v4308_v60  ;;  %v4312_v16 = vmul.f32 %v7444_v42, %v7444_v42  ;;  %7449 = vst [vmem:[#allocation374_spill] sm:$0xff] %v4328_v50  ;;  %v4332_v42 = vmul.f32 %v3878_v54, %v3878_v54  ;;  %v4352_v54 = vmul.f32 %v3903_v1, %v3903_v1  ;;  %v4844_v50 = vld [vmem:[#allocation2 + $0x1d0] sm:$0xff]  ;;  %v4916_v7 = vld [vmem:[#allocation2 + $0x218] sm:$0xff] }
 0x114   :  { %7452 = vst [vmem:[#allocation377_spill] sm:$0xff] %v4340_v14  ;;  %7453 = vst [vmem:[#allocation378_spill] sm:$0xff] %v4344_v57  ;;  %v4372_v1 = vmul.f32 %v3928_v62, %v3928_v62  ;;  %v4392_v62 = vmul.f32 %v3953_v58, %v3953_v58  ;;  %v4408_v13 = vmul.f32 %v3973_v2, %v3973_v2  ;;  %v7648_v57 = vld [vmem:[#allocation79_spill] sm:$0xff]  ;;  %v4908_v60 = vld [vmem:[#allocation2 + $0x210] sm:$0xff] }
 0x115   :  { %7445 = vst [vmem:[#allocation340_spill] sm:$0xff] %v4312_v16  ;;  %7450 = vst [vmem:[#allocation375_spill] sm:$0xff] %v4332_v42  ;;  %v4412_v58 = vmul.f32 %v3978_v5, %v3978_v5  ;;  %v4420_v27 = vmul.f32 %v3988_v52, %v3988_v52  ;;  %v4424_v45 = vmul.f32 %v3993_v11, %v3993_v11  ;;  %v4836_v42 = vld [vmem:[#allocation2 + $0x1c8] sm:$0xff]  ;;  %v4892_v16 = vld [vmem:[#allocation2 + $0x200] sm:$0xff] }
 0x116   :  { %7454 = vst [vmem:[#allocation379_spill] sm:$0xff] %v4348_v48  ;;  %7455 = vst [vmem:[#allocation380_spill] sm:$0xff] %v4352_v54  ;;  %v7461_v54 = vld [vmem:[#allocation341_spill] sm:$0xff]  ;;  %v4428_v2 = vmul.f32 %v3998_v63, %v3998_v63  ;;  %v4432_v5 = vmul.f32 %v4003_v8, %v4003_v8  ;;  %v4440_v52 = vmul.f32 %v4013_v18, %v4013_v18  ;;  %v7644_v48 = vld [vmem:[#allocation78_spill] sm:$0xff] }
 0x117   :  { %7456 = vst [vmem:[#allocation381_spill] sm:$0xff] %v4356_v55  ;;  %7457 = vst [vmem:[#allocation382_spill] sm:$0xff] %v4360_v20  ;;  %v4376_v15 = vmul.f32 %v7461_v54, %v7461_v54  ;;  %v4396_v54 = vmul.f32 %v3958_v61, %v3958_v61  ;;  %v4416_v61 = vmul.f32 %v3983_v30, %v3983_v30  ;;  %v7630_v20 = vld [vmem:[#allocation75_spill] sm:$0xff] }
 0x118   :  { %7458 = vst [vmem:[#allocation383_spill] sm:$0xff] %v4364_v56  ;;  %7459 = vst [vmem:[#allocation384_spill] sm:$0xff] %v4368_v3  ;;  %v4436_v30 = vmul.f32 %v4008_v12, %v4008_v12  ;;  %v4444_v11 = vmul.f32 %v4018_v39, %v4018_v39  ;;  %v4448_v63 = vmul.f32 %v4023_v33, %v4023_v33  ;;  %v4734_v3 = vld [vmem:[#allocation2 + $0x168] sm:$0xff]  ;;  %v7619_v56 = vld [vmem:[#allocation320_spill] sm:$0xff] }
 0x119   :  { %7460 = vst [vmem:[#allocation385_spill] sm:$0xff] %v4372_v1  ;;  %7462 = vst [vmem:[#allocation341_spill] sm:$0xff] %v4376_v15  ;;  %v4452_v8 = vmul.f32 %v4028_v19, %v4028_v19  ;;  %v4456_v12 = vmul.f32 %v4033_v25, %v4033_v25  ;;  %v4460_v18 = vmul.f32 %v4038_v46, %v4038_v46  ;;  %v4718_v1 = vld [vmem:[#allocation2 + $0x158] sm:$0xff] }
 0x11a   :  { %7463 = vst [vmem:[#allocation386_spill] sm:$0xff] %v4380_v0  ;;  %7464 = vst [vmem:[#allocation387_spill] sm:$0xff] %v4384_v26  ;;  %v4464_v39 = vmul.f32 %v4043_v23, %v4043_v23  ;;  %v7584_v26 = vld [vmem:[#allocation170_spill] sm:$0xff]  ;;  %v4694_v0 = vld [vmem:[#allocation2 + $0x140] sm:$0xff] }
 0x11b   :  { %7465 = vst [vmem:[#allocation388_spill] sm:$0xff] %v4388_v10  ;;  %7466 = vst [vmem:[#allocation389_spill] sm:$0xff] %v4392_v62  ;;  %v4686_v10 = vld [vmem:[#allocation2 + $0x138] sm:$0xff] }
 0x11c   :  { %7467 = vst [vmem:[#allocation390_spill] sm:$0xff] %v4396_v54  ;;  %7468 = vst [vmem:[#allocation391_spill] sm:$0xff] %v4400_v36  ;;  %v7579_v36 = vld [vmem:[#allocation63_spill] sm:$0xff]  ;;  %v7580_v54 = vld [vmem:[#allocation169_spill] sm:$0xff] }
 0x11d   :  { %7469 = vst [vmem:[#allocation392_spill] sm:$0xff] %v4404_v51  ;;  %7470 = vst [vmem:[#allocation393_spill] sm:$0xff] %v4408_v13  ;;  %v4678_v51 = vld [vmem:[#allocation2 + $0x130] sm:$0xff]  ;;  %v4785_v55 = vld [vmem:[#allocation2 + $0x198] sm:$0xff] }
 0x11e   :  { %7471 = vst [vmem:[#allocation394_spill] sm:$0xff] %v4412_v58  ;;  %7472 = vst [vmem:[#allocation395_spill] sm:$0xff] %v4416_v61  ;;  %v7575_v61 = vld [vmem:[#allocation62_spill] sm:$0xff]  ;;  %v7576_v58 = vld [vmem:[#allocation168_spill] sm:$0xff] }
 0x11f   :  { %7473 = vst [vmem:[#allocation396_spill] sm:$0xff] %v4420_v27  ;;  %7474 = vst [vmem:[#allocation397_spill] sm:$0xff] %v4424_v45  ;;  %v4670_v27 = vld [vmem:[#allocation2 + $0x128] sm:$0xff] }
 0x120   :  { %7475 = vst [vmem:[#allocation398_spill] sm:$0xff] %v4428_v2  ;;  %7476 = vst [vmem:[#allocation399_spill] sm:$0xff] %v4432_v5  ;;  %v7571_v5 = vld [vmem:[#allocation61_spill] sm:$0xff]  ;;  %v7572_v2 = vld [vmem:[#allocation167_spill] sm:$0xff] }
 0x121   :  { %7477 = vst [vmem:[#allocation400_spill] sm:$0xff] %v4436_v30  ;;  %7478 = vst [vmem:[#allocation401_spill] sm:$0xff] %v4440_v52  ;;  %v4662_v30 = vld [vmem:[#allocation2 + $0x120] sm:$0xff] }
 0x122   :  { %7479 = vst [vmem:[#allocation402_spill] sm:$0xff] %v4444_v11  ;;  %7480 = vst [vmem:[#allocation403_spill] sm:$0xff] %v4448_v63  ;;  %v7485_v11 = vld [vmem:[#allocation342_spill] sm:$0xff]  ;;  %v7487_v63 = vld [vmem:[#allocation343_spill] sm:$0xff] }
 0x123   :  { %7481 = vst [vmem:[#allocation404_spill] sm:$0xff] %v4452_v8  ;;  %7482 = vst [vmem:[#allocation405_spill] sm:$0xff] %v4456_v12  ;;  %v4468_v33 = vmul.f32 %v7485_v11, %v7485_v11  ;;  %v4472_v19 = vmul.f32 %v7487_v63, %v7487_v63  ;;  %v7489_v8 = vld [vmem:[#allocation344_spill] sm:$0xff]  ;;  %v7491_v12 = vld [vmem:[#allocation345_spill] sm:$0xff] }
 0x124   :  { %7483 = vst [vmem:[#allocation406_spill] sm:$0xff] %v4460_v18  ;;  %7484 = vst [vmem:[#allocation407_spill] sm:$0xff] %v4464_v39  ;;  %v4476_v25 = vmul.f32 %v7489_v8, %v7489_v8  ;;  %v4480_v46 = vmul.f32 %v7491_v12, %v7491_v12  ;;  %v7493_v18 = vld [vmem:[#allocation346_spill] sm:$0xff]  ;;  %v7495_v39 = vld [vmem:[#allocation347_spill] sm:$0xff] }
 0x125   :  { %7486 = vst [vmem:[#allocation342_spill] sm:$0xff] %v4468_v33  ;;  %7488 = vst [vmem:[#allocation343_spill] sm:$0xff] %v4472_v19  ;;  %v4484_v23 = vmul.f32 %v7493_v18, %v7493_v18  ;;  %v4488_v11 = vmul.f32 %v7495_v39, %v7495_v39  ;;  %v7497_v33 = vld [vmem:[#allocation348_spill] sm:$0xff]  ;;  %v7499_v19 = vld [vmem:[#allocation349_spill] sm:$0xff] }
 0x126   :  { %7490 = vst [vmem:[#allocation344_spill] sm:$0xff] %v4476_v25  ;;  %7492 = vst [vmem:[#allocation345_spill] sm:$0xff] %v4480_v46  ;;  %v4492_v63 = vmul.f32 %v7497_v33, %v7497_v33  ;;  %v4496_v8 = vmul.f32 %v7499_v19, %v7499_v19  ;;  %v7501_v25 = vld [vmem:[#allocation350_spill] sm:$0xff]  ;;  %v7503_v46 = vld [vmem:[#allocation351_spill] sm:$0xff] }
 0x127   :  { %7494 = vst [vmem:[#allocation346_spill] sm:$0xff] %v4484_v23  ;;  %7496 = vst [vmem:[#allocation347_spill] sm:$0xff] %v4488_v11  ;;  %v4500_v12 = vmul.f32 %v7501_v25, %v7501_v25  ;;  %v4504_v18 = vmul.f32 %v7503_v46, %v7503_v46  ;;  %v7505_v23 = vld [vmem:[#allocation352_spill] sm:$0xff]  ;;  %v7507_v11 = vld [vmem:[#allocation353_spill] sm:$0xff] }
 0x128   :  { %7498 = vst [vmem:[#allocation348_spill] sm:$0xff] %v4492_v63  ;;  %7500 = vst [vmem:[#allocation349_spill] sm:$0xff] %v4496_v8  ;;  %v4508_v39 = vmul.f32 %v7505_v23, %v7505_v23  ;;  %v4512_v33 = vmul.f32 %v7507_v11, %v7507_v11  ;;  %v7509_v63 = vld [vmem:[#allocation354_spill] sm:$0xff]  ;;  %v7511_v8 = vld [vmem:[#allocation355_spill] sm:$0xff] }
 0x129   :  { %7502 = vst [vmem:[#allocation350_spill] sm:$0xff] %v4500_v12  ;;  %7504 = vst [vmem:[#allocation351_spill] sm:$0xff] %v4504_v18  ;;  %v4516_v19 = vmul.f32 %v7509_v63, %v7509_v63  ;;  %v4520_v25 = vmul.f32 %v7511_v8, %v7511_v8  ;;  %v7513_v12 = vld [vmem:[#allocation356_spill] sm:$0xff]  ;;  %v7515_v18 = vld [vmem:[#allocation357_spill] sm:$0xff]  ;;  %v4540_v8 = vmul.f32 %v4138_v34, %v4138_v34 }
 0x12a   :  { %7506 = vst [vmem:[#allocation352_spill] sm:$0xff] %v4508_v39  ;;  %7508 = vst [vmem:[#allocation353_spill] sm:$0xff] %v4512_v33  ;;  %v4524_v46 = vmul.f32 %v7513_v12, %v7513_v12  ;;  %v4528_v23 = vmul.f32 %v7515_v18, %v7515_v18  ;;  %v7517_v39 = vld [vmem:[#allocation358_spill] sm:$0xff]  ;;  %v7519_v33 = vld [vmem:[#allocation359_spill] sm:$0xff]  ;;  %v4544_v12 = vmul.f32 %v4143_v24, %v4143_v24 }
 0x12b   :  { %7510 = vst [vmem:[#allocation354_spill] sm:$0xff] %v4516_v19  ;;  %7512 = vst [vmem:[#allocation355_spill] sm:$0xff] %v4520_v25  ;;  %v4532_v11 = vmul.f32 %v7517_v39, %v7517_v39  ;;  %v4536_v63 = vmul.f32 %v7519_v33, %v7519_v33  ;;  %v4548_v18 = vmul.f32 %v4148_v9, %v4148_v9  ;;  %v7567_v25 = vld [vmem:[#allocation60_spill] sm:$0xff] }
 0x12c   :  { %7514 = vst [vmem:[#allocation356_spill] sm:$0xff] %v4524_v46  ;;  %7516 = vst [vmem:[#allocation357_spill] sm:$0xff] %v4528_v23  ;;  %v7524_v23 = vld [vmem:[#allocation360_spill] sm:$0xff]  ;;  %v4654_v46 = vld [vmem:[#allocation2 + $0x118] sm:$0xff] }
 0x12d   :  { %7518 = vst [vmem:[#allocation358_spill] sm:$0xff] %v4532_v11  ;;  %7520 = vst [vmem:[#allocation359_spill] sm:$0xff] %v4536_v63  ;;  %v4552_v39 = vmul.f32 %v7524_v23, %v7524_v23  ;;  %v7526_v11 = vld [vmem:[#allocation361_spill] sm:$0xff]  ;;  %v7528_v63 = vld [vmem:[#allocation362_spill] sm:$0xff]  ;;  %v4572_v23 = vmul.f32 %v4178_v44, %v4178_v44  ;;  %v4592_v44 = vmul.f32 %v4203_v21, %v4203_v21 }
 0x12e   :  { %7521 = vst [vmem:[#allocation408_spill] sm:$0xff] %v4540_v8  ;;  %7522 = vst [vmem:[#allocation409_spill] sm:$0xff] %v4544_v12  ;;  %v4556_v33 = vmul.f32 %v7526_v11, %v7526_v11  ;;  %v4560_v34 = vmul.f32 %v7528_v63, %v7528_v63  ;;  %v7530_v8 = vld [vmem:[#allocation363_spill] sm:$0xff]  ;;  %v7532_v12 = vld [vmem:[#allocation364_spill] sm:$0xff]  ;;  %v4576_v11 = vmul.f32 %v4183_v32, %v4183_v32 }
 0x12f   :  { %7523 = vst [vmem:[#allocation410_spill] sm:$0xff] %v4548_v18  ;;  %7525 = vst [vmem:[#allocation360_spill] sm:$0xff] %v4552_v39  ;;  %v4564_v24 = vmul.f32 %v7530_v8, %v7530_v8  ;;  %v4568_v9 = vmul.f32 %v7532_v12, %v7532_v12  ;;  %v4580_v63 = vmul.f32 %v4188_v40, %v4188_v40  ;;  %v7564_v39 = vld [vmem:[#allocation163_spill] sm:$0xff]  ;;  %v7568_v19 = vld [vmem:[#allocation164_spill] sm:$0xff] }
 0x130   :  { %7527 = vst [vmem:[#allocation361_spill] sm:$0xff] %v4556_v33  ;;  %7529 = vst [vmem:[#allocation362_spill] sm:$0xff] %v4560_v34  ;;  %v7537_v34 = vld [vmem:[#allocation365_spill] sm:$0xff]  ;;  %v4588_v12 = vmul.f32 %v4198_v38, %v4198_v38  ;;  %v4600_v40 = vmul.f32 %v4213_v47, %v4213_v47  ;;  %v4608_v38 = vmul.f32 %v4223_v6, %v4223_v6  ;;  %v7563_v33 = vld [vmem:[#allocation59_spill] sm:$0xff]  ;;  %vm7565_vm3 = vcmp.eq.f32.partialorder %v7564_v39, 1.0 }
 0x131   :  { %7531 = vst [vmem:[#allocation363_spill] sm:$0xff] %v4564_v24  ;;  %7533 = vst [vmem:[#allocation364_spill] sm:$0xff] %v4568_v9  ;;  %v4584_v8 = vmul.f32 %v7537_v34, %v7537_v34  ;;  %v4604_v34 = vmul.f32 %v4218_v17, %v4218_v17  ;;  %v4612_v21 = vmul.f32 %v4228_v35, %v4228_v35  ;;  %v7551_v17 = vld [vmem:[#allocation56_spill] sm:$0xff]  ;;  %v7555_v35 = vld [vmem:[#allocation57_spill] sm:$0xff] }
 0x132   :  { %7534 = vst [vmem:[#allocation411_spill] sm:$0xff] %v4572_v23  ;;  %7535 = vst [vmem:[#allocation412_spill] sm:$0xff] %v4576_v11  ;;  %v7541_v23 = vld [vmem:[#allocation366_spill] sm:$0xff] }
 0x133   :  { %7536 = vst [vmem:[#allocation413_spill] sm:$0xff] %v4580_v63  ;;  %7538 = vst [vmem:[#allocation365_spill] sm:$0xff] %v4584_v8  ;;  %v4596_v32 = vmul.f32 %v7541_v23, %v7541_v23  ;;  %v7547_v23 = vld [vmem:[#allocation55_spill] sm:$0xff]  ;;  %v4638_v8 = vld [vmem:[#allocation2 + $0x108] sm:$0xff] }
 0x134   :  { %7539 = vst [vmem:[#allocation414_spill] sm:$0xff] %v4588_v12  ;;  %7540 = vst [vmem:[#allocation415_spill] sm:$0xff] %v4592_v44  ;;  %v4614_v44 = vld [vmem:[#allocation2 + $0xf0] sm:$0xff] }
 0x135   :  { %7542 = vst [vmem:[#allocation366_spill] sm:$0xff] %v4596_v32  ;;  %7543 = vst [vmem:[#allocation416_spill] sm:$0xff] %v4600_v40  ;;  %v7548_v32 = vld [vmem:[#allocation158_spill] sm:$0xff]  ;;  %v4622_v40 = vld [vmem:[#allocation2 + $0xf8] sm:$0xff] }
 0x136   :  { %7544 = vst [vmem:[#allocation417_spill] sm:$0xff] %v4604_v34  ;;  %7545 = vst [vmem:[#allocation418_spill] sm:$0xff] %v4608_v38  ;;  %vm7549_vm0 = vcmp.eq.f32.partialorder %v7548_v32, 1.0  ;;  %v7552_v34 = vld [vmem:[#allocation159_spill] sm:$0xff]  ;;  %v4630_v38 = vld [vmem:[#allocation2 + $0x100] sm:$0xff] }
 0x137   :  { %7546 = vst [vmem:[#allocation419_spill] sm:$0xff] %v4612_v21  ;;  %v4620_v47 = vsel %vm7549_vm0, %v4614_v44, %v7547_v23  ;;  %vm7553_vm10 = vcmp.eq.f32.partialorder %v7552_v34, 1.0  ;;  %v7556_v21 = vld [vmem:[#allocation161_spill] sm:$0xff]  ;;  %v7559_v63 = vld [vmem:[#allocation58_spill] sm:$0xff]  ;;  %vm7569_vm0 = vcmp.eq.f32.partialorder %v7568_v19, 1.0  ;;  %v7638_v23 = vld [vmem:[#allocation323_spill] sm:$0xff] }
 0x138   :  { %7550 = vst [vmem:[#allocation420_spill] sm:$0xff] %v4620_v47  ;;  %v4628_v6 = vsel %vm7553_vm10, %v4622_v40, %v7551_v17  ;;  %vm7557_vm4 = vcmp.eq.f32.partialorder %v7556_v21, 1.0  ;;  %v7560_v11 = vld [vmem:[#allocation162_spill] sm:$0xff]  ;;  %v4660_v52 = vsel %vm7569_vm0, %v4654_v46, %v7567_v25  ;;  %vm7573_vm10 = vcmp.eq.f32.partialorder %v7572_v2, 1.0  ;;  %v7583_v2 = vld [vmem:[#allocation64_spill] sm:$0xff]  ;;  %v7622_v32 = vld [vmem:[#allocation73_spill] sm:$0xff] }
 0x139   :  { %7554 = vst [vmem:[#allocation421_spill] sm:$0xff] %v4628_v6  ;;  %v4636_v12 = vsel %vm7557_vm4, %v4630_v38, %v7555_v35  ;;  %vm7561_vm2 = vcmp.eq.f32.partialorder %v7560_v11, 1.0  ;;  %v4646_v24 = vld [vmem:[#allocation2 + $0x110] sm:$0xff]  ;;  %7570 = vst [vmem:[#allocation425_spill] sm:$0xff] %v4660_v52  ;;  %v4668_v45 = vsel %vm7573_vm10, %v4662_v30, %v7571_v5  ;;  %vm7577_vm4 = vcmp.eq.f32.partialorder %v7576_v58, 1.0  ;;  %v7587_v58 = vld [vmem:[#allocation65_spill] sm:$0xff] }
 0x13a   :  { %7558 = vst [vmem:[#allocation422_spill] sm:$0xff] %v4636_v12  ;;  %v4644_v9 = vsel %vm7561_vm2, %v4638_v8, %v7559_v63  ;;  %v4652_v18 = vsel %vm7565_vm3, %v4646_v24, %v7563_v33  ;;  %7574 = vst [vmem:[#allocation426_spill] sm:$0xff] %v4668_v45  ;;  %v4676_v13 = vsel %vm7577_vm4, %v4670_v27, %v7575_v61  ;;  %vm7581_vm2 = vcmp.eq.f32.partialorder %v7580_v54, 1.0  ;;  %v7588_v61 = vld [vmem:[#allocation175_spill] sm:$0xff]  ;;  %v4702_v5 = vld [vmem:[#allocation2 + $0x148] sm:$0xff] }
 0x13b   :  { %7562 = vst [vmem:[#allocation423_spill] sm:$0xff] %v4644_v9  ;;  %7566 = vst [vmem:[#allocation424_spill] sm:$0xff] %v4652_v18  ;;  %v4684_v62 = vsel %vm7581_vm2, %v4678_v51, %v7579_v36  ;;  %vm7585_vm3 = vcmp.eq.f32.partialorder %v7584_v26, 1.0  ;;  %vm7589_vm0 = vcmp.eq.f32.partialorder %v7588_v61, 1.0  ;;  %v7591_v54 = vld [vmem:[#allocation66_spill] sm:$0xff]  ;;  %v7592_v36 = vld [vmem:[#allocation176_spill] sm:$0xff] }
 0x13c   :  { %7578 = vst [vmem:[#allocation427_spill] sm:$0xff] %v4676_v13  ;;  %7582 = vst [vmem:[#allocation428_spill] sm:$0xff] %v4684_v62  ;;  %v4692_v19 = vsel %vm7585_vm3, %v4686_v10, %v7583_v2  ;;  %v4700_v39 = vsel %vm7589_vm0, %v4694_v0, %v7587_v58  ;;  %vm7593_vm10 = vcmp.eq.f32.partialorder %v7592_v36, 1.0  ;;  %v4710_v11 = vld [vmem:[#allocation2 + $0x150] sm:$0xff]  ;;  %v7595_v26 = vld [vmem:[#allocation67_spill] sm:$0xff] }
 0x13d   :  { %7586 = vst [vmem:[#allocation429_spill] sm:$0xff] %v4692_v19  ;;  %7590 = vst [vmem:[#allocation430_spill] sm:$0xff] %v4700_v39  ;;  %v4708_v15 = vsel %vm7593_vm10, %v4702_v5, %v7591_v54  ;;  %v7596_v2 = vld [vmem:[#allocation177_spill] sm:$0xff]  ;;  %v7599_v61 = vld [vmem:[#allocation68_spill] sm:$0xff] }
 0x13e   :  { %7594 = vst [vmem:[#allocation431_spill] sm:$0xff] %v4708_v15  ;;  %vm7597_vm4 = vcmp.eq.f32.partialorder %v7596_v2, 1.0  ;;  %v7600_v58 = vld [vmem:[#allocation178_spill] sm:$0xff]  ;;  %v4726_v33 = vld [vmem:[#allocation2 + $0x160] sm:$0xff]  ;;  %v7603_v36 = vld [vmem:[#allocation69_spill] sm:$0xff] }
 0x13f   :  { %v4716_v25 = vsel %vm7597_vm4, %v4710_v11, %v7595_v26  ;;  %vm7601_vm2 = vcmp.eq.f32.partialorder %v7600_v58, 1.0  ;;  %v7604_v54 = vld [vmem:[#allocation183_spill] sm:$0xff]  ;;  %v7607_v2 = vld [vmem:[#allocation70_spill] sm:$0xff]  ;;  %v7608_v26 = vld [vmem:[#allocation184_spill] sm:$0xff]  ;;  %7699 = vst [vmem:[#allocation457_spill] sm:$0xff] %v4916_v7 }
 0x140   :  { %7598 = vst [vmem:[#allocation432_spill] sm:$0xff] %v4716_v25  ;;  %v4724_v21 = vsel %vm7601_vm2, %v4718_v1, %v7599_v61  ;;  %vm7605_vm3 = vcmp.eq.f32.partialorder %v7604_v54, 1.0  ;;  %vm7609_vm0 = vcmp.eq.f32.partialorder %v7608_v26, 1.0  ;;  %v4742_v34 = vld [vmem:[#allocation2 + $0x170] sm:$0xff]  ;;  %v7611_v58 = vld [vmem:[#allocation71_spill] sm:$0xff]  ;;  %v7612_v61 = vld [vmem:[#allocation185_spill] sm:$0xff] }
 0x141   :  { %7602 = vst [vmem:[#allocation433_spill] sm:$0xff] %v4724_v21  ;;  %v4732_v15 = vsel %vm7605_vm3, %v4726_v33, %v7603_v36  ;;  %v4740_v25 = vsel %vm7609_vm0, %v4734_v3, %v7607_v2  ;;  %vm7613_vm10 = vcmp.eq.f32.partialorder %v7612_v61, 1.0  ;;  %v4750_v63 = vld [vmem:[#allocation2 + $0x178] sm:$0xff]  ;;  %v7615_v54 = vld [vmem:[#allocation72_spill] sm:$0xff]  ;;  %v7616_v36 = vld [vmem:[#allocation186_spill] sm:$0xff]  ;;  %vm346_vm3 = vcmp.eq.f32.partialorder %v7638_v23, 1.0 }
 0x142   :  { %7606 = vst [vmem:[#allocation434_spill] sm:$0xff] %v4732_v15  ;;  %7610 = vst [vmem:[#allocation435_spill] sm:$0xff] %v4740_v25  ;;  %v4748_v21 = vsel %vm7613_vm10, %v4742_v34, %v7611_v58  ;;  %vm7617_vm4 = vcmp.eq.f32.partialorder %v7616_v36, 1.0  ;;  %v7620_v26 = vld [vmem:[#allocation321_spill] sm:$0xff]  ;;  %v7621_v2 = vld [vmem:[#allocation322_spill] sm:$0xff] }
 0x143   :  { %7614 = vst [vmem:[#allocation436_spill] sm:$0xff] %v4748_v21  ;;  %v4756_v15 = vsel %vm7617_vm4, %v4750_v63, %v7615_v54  ;;  %v4761_v25 = vld [vmem:[#allocation2 + $0x180] sm:$0xff]  ;;  %v4769_v21 = vld [vmem:[#allocation2 + $0x188] sm:$0xff]  ;;  %v7626_v35 = vld [vmem:[#allocation74_spill] sm:$0xff] }
 0x144   :  { %7618 = vst [vmem:[#allocation437_spill] sm:$0xff] %v4756_v15  ;;  %v7623_v61 = vld [vmem:[#allocation188_spill] sm:$0xff]  ;;  %v7627_v36 = vld [vmem:[#allocation189_spill] sm:$0xff]  ;;  %v4777_v15 = vld [vmem:[#allocation2 + $0x190] sm:$0xff] }
 0x145   :  { %vm7624_vm10 = vcmp.eq.f32.partialorder %v7623_v61, 1.0  ;;  %vm7628_vm4 = vcmp.eq.f32.partialorder %v7627_v36, 1.0  ;;  %v7631_v39 = vld [vmem:[#allocation190_spill] sm:$0xff]  ;;  %v7634_v61 = vld [vmem:[#allocation76_spill] sm:$0xff]  ;;  %v7641_v19 = vld [vmem:[#allocation77_spill] sm:$0xff]  ;;  %7709 = vst [vmem:[#allocation461_spill] sm:$0xff] %v4932_v22 }
 0x146   :  { %v4767_v58 = vsel %vm7624_vm10, %v4761_v25, %v7622_v32  ;;  %v4775_v54 = vsel %vm7628_vm4, %v4769_v21, %v7626_v35  ;;  %vm7632_vm0 = vcmp.eq.f32.partialorder %v7631_v39, 1.0  ;;  %v7635_v32 = vld [vmem:[#allocation191_spill] sm:$0xff]  ;;  %v7639_v36 = vld [vmem:[#allocation324_spill] sm:$0xff]  ;;  %v7640_v35 = vld [vmem:[#allocation325_spill] sm:$0xff]  ;;  %7714 = vst [vmem:[#allocation463_spill] sm:$0xff] %v4940_v29 }
 0x147   :  { %7625 = vst [vmem:[#allocation438_spill] sm:$0xff] %v4767_v58  ;;  %7629 = vst [vmem:[#allocation439_spill] sm:$0xff] %v4775_v54  ;;  %v4783_v17 = vsel %vm7632_vm0, %v4777_v15, %v7630_v20  ;;  %vm7636_vm10 = vcmp.eq.f32.partialorder %v7635_v32, 1.0  ;;  %vm347_vm4 = vcmp.eq.f32.partialorder %v7639_v36, 1.0  ;;  %vm348_vm2 = vcmp.eq.f32.partialorder %v7640_v35, 1.0  ;;  %v4796_v54 = vld [vmem:[#allocation2 + $0x1a0] sm:$0xff] }
 0x148   :  { %7633 = vst [vmem:[#allocation440_spill] sm:$0xff] %v4783_v17  ;;  %v4791_v58 = vsel %vm7636_vm10, %v4785_v55, %v7634_v61  ;;  %v4802_v20 = vsel %vm6732_vm6, %v4796_v54, %v7641_v19  ;;  %v4804_v17 = vld [vmem:[#allocation2 + $0x1a8] sm:$0xff]  ;;  %v7649_v62 = vld [vmem:[#allocation194_spill] sm:$0xff]  ;;  %v7652_v39 = vld [vmem:[#allocation80_spill] sm:$0xff] }
 0x149   :  { %7637 = vst [vmem:[#allocation441_spill] sm:$0xff] %v4791_v58  ;;  %7643 = vst [vmem:[#allocation442_spill] sm:$0xff] %v4802_v20  ;;  %v7645_v32 = vld [vmem:[#allocation193_spill] sm:$0xff]  ;;  %v4812_v58 = vld [vmem:[#allocation2 + $0x1b0] sm:$0xff]  ;;  %vm7650_vm10 = vcmp.eq.f32.partialorder %v7649_v62, 1.0 }
 0x14a   :  { %vm7646_vm0 = vcmp.eq.f32.partialorder %v7645_v32, 1.0  ;;  %v4818_v14 = vsel %vm7650_vm10, %v4812_v58, %v7648_v57  ;;  %v7653_v19 = vld [vmem:[#allocation195_spill] sm:$0xff]  ;;  %v4828_v13 = vld [vmem:[#allocation2 + $0x1c0] sm:$0xff]  ;;  %v7656_v32 = vld [vmem:[#allocation81_spill] sm:$0xff]  ;;  %7733 = vst [vmem:[#allocation471_spill] sm:$0xff] %v4972_v4 }
 0x14b   :  { %v4810_v61 = vsel %vm7646_vm0, %v4804_v17, %v7644_v48  ;;  %7651 = vst [vmem:[#allocation444_spill] sm:$0xff] %v4818_v14  ;;  %vm7654_vm6 = vcmp.eq.f32.partialorder %v7653_v19, 1.0  ;;  %v7659_v62 = vld [vmem:[#allocation82_spill] sm:$0xff]  ;;  %v7660_v57 = vld [vmem:[#allocation197_spill] sm:$0xff]  ;;  %v7663_v19 = vld [vmem:[#allocation83_spill] sm:$0xff] }
 0x14c   :  { %7647 = vst [vmem:[#allocation443_spill] sm:$0xff] %v4810_v61  ;;  %v4826_v20 = vsel %vm7654_vm6, %v4820_v49, %v7652_v39  ;;  %v4834_v61 = vsel %vm309_vm8, %v4828_v13, %v7656_v32  ;;  %vm7661_vm0 = vcmp.eq.f32.partialorder %v7660_v57, 1.0  ;;  %v7664_v39 = vld [vmem:[#allocation198_spill] sm:$0xff]  ;;  %v4852_v45 = vld [vmem:[#allocation2 + $0x1d8] sm:$0xff]  ;;  %v7667_v48 = vld [vmem:[#allocation84_spill] sm:$0xff] }
 0x14d   :  { %7655 = vst [vmem:[#allocation445_spill] sm:$0xff] %v4826_v20  ;;  %7658 = vst [vmem:[#allocation446_spill] sm:$0xff] %v4834_v61  ;;  %v4842_v14 = vsel %vm7661_vm0, %v4836_v42, %v7659_v62  ;;  %vm7665_vm6 = vcmp.eq.f32.partialorder %v7664_v39, 1.0  ;;  %v7668_v32 = vld [vmem:[#allocation199_spill] sm:$0xff]  ;;  %v7671_v57 = vld [vmem:[#allocation85_spill] sm:$0xff] }
 0x14e   :  { %7662 = vst [vmem:[#allocation447_spill] sm:$0xff] %v4842_v14  ;;  %v4850_v20 = vsel %vm7665_vm6, %v4844_v50, %v7663_v19  ;;  %vm7669_vm10 = vcmp.eq.f32.partialorder %v7668_v32, 1.0  ;;  %v7672_v62 = vld [vmem:[#allocation204_spill] sm:$0xff]  ;;  %v7675_v39 = vld [vmem:[#allocation86_spill] sm:$0xff]  ;;  %v7676_v19 = vld [vmem:[#allocation205_spill] sm:$0xff] }
 0x14f   :  { %7666 = vst [vmem:[#allocation448_spill] sm:$0xff] %v4850_v20  ;;  %v4858_v61 = vsel %vm7669_vm10, %v4852_v45, %v7667_v48  ;;  %vm7673_vm0 = vcmp.eq.f32.partialorder %v7672_v62, 1.0  ;;  %vm7677_vm6 = vcmp.eq.f32.partialorder %v7676_v19, 1.0  ;;  %v4876_v52 = vld [vmem:[#allocation2 + $0x1f0] sm:$0xff]  ;;  %v7679_v32 = vld [vmem:[#allocation87_spill] sm:$0xff]  ;;  %v7683_v62 = vld [vmem:[#allocation88_spill] sm:$0xff] }
 0x150   :  { %7670 = vst [vmem:[#allocation449_spill] sm:$0xff] %v4858_v61  ;;  %v4866_v14 = vsel %vm7673_vm0, %v4860_v41, %v7671_v57  ;;  %v4874_v20 = vsel %vm7677_vm6, %v4868_v31, %v7675_v39  ;;  %v7680_v48 = vld [vmem:[#allocation206_spill] sm:$0xff]  ;;  %v7684_v57 = vld [vmem:[#allocation207_spill] sm:$0xff]  ;;  %v7687_v19 = vld [vmem:[#allocation89_spill] sm:$0xff] }
 0x151   :  { %7674 = vst [vmem:[#allocation450_spill] sm:$0xff] %v4866_v14  ;;  %7678 = vst [vmem:[#allocation451_spill] sm:$0xff] %v4874_v20  ;;  %vm7681_vm10 = vcmp.eq.f32.partialorder %v7680_v48, 1.0  ;;  %vm7685_vm0 = vcmp.eq.f32.partialorder %v7684_v57, 1.0  ;;  %v7688_v39 = vld [vmem:[#allocation212_spill] sm:$0xff]  ;;  %v4900_v18 = vld [vmem:[#allocation2 + $0x208] sm:$0xff] }
 0x152   :  { %v4882_v61 = vsel %vm7681_vm10, %v4876_v52, %v7679_v32  ;;  %v4890_v14 = vsel %vm7685_vm0, %v4884_v53, %v7683_v62  ;;  %vm7689_vm6 = vcmp.eq.f32.partialorder %v7688_v39, 1.0  ;;  %v7691_v48 = vld [vmem:[#allocation90_spill] sm:$0xff]  ;;  %v7692_v32 = vld [vmem:[#allocation213_spill] sm:$0xff]  ;;  %v7695_v57 = vld [vmem:[#allocation91_spill] sm:$0xff] }
 0x153   :  { %7682 = vst [vmem:[#allocation452_spill] sm:$0xff] %v4882_v61  ;;  %7686 = vst [vmem:[#allocation453_spill] sm:$0xff] %v4890_v14  ;;  %v4898_v20 = vsel %vm7689_vm6, %v4892_v16, %v7687_v19  ;;  %vm7693_vm10 = vcmp.eq.f32.partialorder %v7692_v32, 1.0  ;;  %v7696_v62 = vld [vmem:[#allocation214_spill] sm:$0xff]  ;;  %v7700_v39 = vld [vmem:[#allocation92_spill] sm:$0xff] }
 0x154   :  { %7690 = vst [vmem:[#allocation454_spill] sm:$0xff] %v4898_v20  ;;  %v4906_v61 = vsel %vm7693_vm10, %v4900_v18, %v7691_v48  ;;  %vm7697_vm0 = vcmp.eq.f32.partialorder %v7696_v62, 1.0  ;;  %v7701_v19 = vld [vmem:[#allocation215_spill] sm:$0xff]  ;;  %v4924_v9 = vld [vmem:[#allocation2 + $0x220] sm:$0xff]  ;;  %v7705_v32 = vld [vmem:[#allocation93_spill] sm:$0xff] }
 0x155   :  { %7694 = vst [vmem:[#allocation455_spill] sm:$0xff] %v4906_v61  ;;  %v4914_v14 = vsel %vm7697_vm0, %v4908_v60, %v7695_v57  ;;  %vm7702_vm6 = vcmp.eq.f32.partialorder %v7701_v19, 1.0  ;;  %7704 = vst [vmem:[#allocation459_spill] sm:$0xff] %v4924_v9  ;;  %v7706_v48 = vld [vmem:[#allocation220_spill] sm:$0xff]  ;;  %v7710_v62 = vld [vmem:[#allocation94_spill] sm:$0xff] }
 0x156   :  { %7698 = vst [vmem:[#allocation456_spill] sm:$0xff] %v4914_v14  ;;  %v4922_v20 = vsel %vm7702_vm6, %v4916_v7, %v7700_v39  ;;  %vm7707_vm10 = vcmp.eq.f32.partialorder %v7706_v48, 1.0  ;;  %v7711_v57 = vld [vmem:[#allocation221_spill] sm:$0xff]  ;;  %v7715_v19 = vld [vmem:[#allocation95_spill] sm:$0xff]  ;;  %v7716_v39 = vld [vmem:[#allocation222_spill] sm:$0xff] }
 0x157   :  { %7703 = vst [vmem:[#allocation458_spill] sm:$0xff] %v4922_v20  ;;  %v4930_v61 = vsel %vm7707_vm10, %v4924_v9, %v7705_v32  ;;  %vm7712_vm0 = vcmp.eq.f32.partialorder %v7711_v57, 1.0  ;;  %vm7717_vm6 = vcmp.eq.f32.partialorder %v7716_v39, 1.0  ;;  %v4948_v12 = vld [vmem:[#allocation2 + $0x238] sm:$0xff]  ;;  %v7720_v48 = vld [vmem:[#allocation96_spill] sm:$0xff]  ;;  %v7725_v57 = vld [vmem:[#allocation97_spill] sm:$0xff] }
 0x158   :  { %7708 = vst [vmem:[#allocation460_spill] sm:$0xff] %v4930_v61  ;;  %v4938_v14 = vsel %vm7712_vm0, %v4932_v22, %v7710_v62  ;;  %v4946_v20 = vsel %vm7717_vm6, %v4940_v29, %v7715_v19  ;;  %7719 = vst [vmem:[#allocation465_spill] sm:$0xff] %v4948_v12  ;;  %v7721_v32 = vld [vmem:[#allocation223_spill] sm:$0xff]  ;;  %v4964_v6 = vld [vmem:[#allocation2 + $0x248] sm:$0xff] }
 0x159   :  { %7713 = vst [vmem:[#allocation462_spill] sm:$0xff] %v4938_v14  ;;  %7718 = vst [vmem:[#allocation464_spill] sm:$0xff] %v4946_v20  ;;  %vm7722_vm10 = vcmp.eq.f32.partialorder %v7721_v32, 1.0  ;;  %v4962_v14 = vsel %vm325_vm11, %v4956_v37, %v7725_v57  ;;  %v7729_v39 = vld [vmem:[#allocation98_spill] sm:$0xff]  ;;  %v7730_v19 = vld [vmem:[#allocation229_spill] sm:$0xff] }
 0x15a   :  { %v4954_v61 = vsel %vm7722_vm10, %v4948_v12, %v7720_v48  ;;  %7727 = vst [vmem:[#allocation468_spill] sm:$0xff] %v4962_v14  ;;  %7728 = vst [vmem:[#allocation469_spill] sm:$0xff] %v4964_v6  ;;  %vm7731_vm0 = vcmp.eq.f32.partialorder %v7730_v19, 1.0  ;;  %v7734_v32 = vld [vmem:[#allocation99_spill] sm:$0xff]  ;;  %v7735_v48 = vld [vmem:[#allocation230_spill] sm:$0xff] }
 0x15b   :  { %7723 = vst [vmem:[#allocation466_spill] sm:$0xff] %v4954_v61  ;;  %v4970_v20 = vsel %vm7731_vm0, %v4964_v6, %v7729_v39  ;;  %vm7736_vm6 = vcmp.eq.f32.partialorder %v7735_v48, 1.0  ;;  %v4980_v12 = vld [vmem:[#allocation2 + $0x258] sm:$0xff]  ;;  %v7739_v62 = vld [vmem:[#allocation100_spill] sm:$0xff]  ;;  %v7744_v19 = vld [vmem:[#allocation101_spill] sm:$0xff] }
 0x15c   :  { %7732 = vst [vmem:[#allocation470_spill] sm:$0xff] %v4970_v20  ;;  %v4978_v61 = vsel %vm7736_vm6, %v4972_v4, %v7734_v32  ;;  %7738 = vst [vmem:[#allocation473_spill] sm:$0xff] %v4980_v12  ;;  %v7740_v57 = vld [vmem:[#allocation231_spill] sm:$0xff]  ;;  %v4988_v37 = vld [vmem:[#allocation2 + $0x260] sm:$0xff] }
 0x15d   :  { %7737 = vst [vmem:[#allocation472_spill] sm:$0xff] %v4978_v61  ;;  %vm7741_vm10 = vcmp.eq.f32.partialorder %v7740_v57, 1.0  ;;  %7743 = vst [vmem:[#allocation475_spill] sm:$0xff] %v4988_v37  ;;  %v4994_v20 = vsel %vm329_vm1, %v4988_v37, %v7744_v19  ;;  %v4996_v6 = vld [vmem:[#allocation2 + $0x268] sm:$0xff]  ;;  %v7748_v48 = vld [vmem:[#allocation102_spill] sm:$0xff] }
 0x15e   :  { %v4986_v14 = vsel %vm7741_vm10, %v4980_v12, %v7739_v62  ;;  %7746 = vst [vmem:[#allocation476_spill] sm:$0xff] %v4994_v20  ;;  %7747 = vst [vmem:[#allocation477_spill] sm:$0xff] %v4996_v6  ;;  %v5002_v61 = vsel %vm330_vm14, %v4996_v6, %v7748_v48  ;;  %v5004_v4 = vld [vmem:[#allocation2 + $0x270] sm:$0xff]  ;;  %v7752_v57 = vld [vmem:[#allocation103_spill] sm:$0xff] }
 0x15f   :  { %7742 = vst [vmem:[#allocation474_spill] sm:$0xff] %v4986_v14  ;;  %7750 = vst [vmem:[#allocation478_spill] sm:$0xff] %v5002_v61  ;;  %v7753_v62 = vld [vmem:[#allocation238_spill] sm:$0xff]  ;;  %v5012_v12 = vld [vmem:[#allocation2 + $0x278] sm:$0xff] }
 0x160   :  { %7751 = vst [vmem:[#allocation479_spill] sm:$0xff] %v5004_v4  ;;  %vm7754_vm0 = vcmp.eq.f32.partialorder %v7753_v62, 1.0  ;;  %7756 = vst [vmem:[#allocation481_spill] sm:$0xff] %v5012_v12  ;;  %v7757_v39 = vld [vmem:[#allocation104_spill] sm:$0xff]  ;;  %v7758_v19 = vld [vmem:[#allocation239_spill] sm:$0xff] }
 0x161   :  { %v5010_v14 = vsel %vm7754_vm0, %v5004_v4, %v7752_v57  ;;  %vm7759_vm6 = vcmp.eq.f32.partialorder %v7758_v19, 1.0  ;;  %v5020_v37 = vld [vmem:[#allocation2 + $0x280] sm:$0xff]  ;;  %v7762_v32 = vld [vmem:[#allocation105_spill] sm:$0xff]  ;;  %v7766_v62 = vld [vmem:[#allocation106_spill] sm:$0xff] }
 0x162   :  { %7755 = vst [vmem:[#allocation480_spill] sm:$0xff] %v5010_v14  ;;  %v5018_v20 = vsel %vm7759_vm6, %v5012_v12, %v7757_v39  ;;  %7761 = vst [vmem:[#allocation483_spill] sm:$0xff] %v5020_v37  ;;  %v5026_v61 = vsel %vm333_vm7, %v5020_v37, %v7762_v32  ;;  %v5028_v6 = vld [vmem:[#allocation2 + $0x288] sm:$0xff]  ;;  %v5036_v4 = vld [vmem:[#allocation2 + $0x290] sm:$0xff] }
 0x163   :  { %7760 = vst [vmem:[#allocation482_spill] sm:$0xff] %v5018_v20  ;;  %7764 = vst [vmem:[#allocation484_spill] sm:$0xff] %v5026_v61  ;;  %v5034_v14 = vsel %vm334_vm5, %v5028_v6, %v7766_v62  ;;  %v7770_v19 = vld [vmem:[#allocation108_spill] sm:$0xff]  ;;  %v7771_v39 = vld [vmem:[#allocation250_spill] sm:$0xff] }
 0x164   :  { %7765 = vst [vmem:[#allocation485_spill] sm:$0xff] %v5028_v6  ;;  %7768 = vst [vmem:[#allocation486_spill] sm:$0xff] %v5034_v14  ;;  %vm7772_vm10 = vcmp.eq.f32.partialorder %v7771_v39, 1.0  ;;  %v5044_v12 = vld [vmem:[#allocation2 + $0x298] sm:$0xff]  ;;  %v7775_v48 = vld [vmem:[#allocation109_spill] sm:$0xff] }
 0x165   :  { %7769 = vst [vmem:[#allocation487_spill] sm:$0xff] %v5036_v4  ;;  %v5042_v20 = vsel %vm7772_vm10, %v5036_v4, %v7770_v19  ;;  %7774 = vst [vmem:[#allocation489_spill] sm:$0xff] %v5044_v12  ;;  %v7776_v32 = vld [vmem:[#allocation251_spill] sm:$0xff]  ;;  %v5052_v37 = vld [vmem:[#allocation2 + $0x2a0] sm:$0xff] }
 0x166   :  { %7773 = vst [vmem:[#allocation488_spill] sm:$0xff] %v5042_v20  ;;  %vm7777_vm0 = vcmp.eq.f32.partialorder %v7776_v32, 1.0  ;;  %7779 = vst [vmem:[#allocation491_spill] sm:$0xff] %v5052_v37  ;;  %v7780_v57 = vld [vmem:[#allocation110_spill] sm:$0xff]  ;;  %v5060_v6 = vld [vmem:[#allocation2 + $0x2a8] sm:$0xff] }
 0x167   :  { %v5050_v61 = vsel %vm7777_vm0, %v5044_v12, %v7775_v48  ;;  %v5058_v14 = vsel %vm337_vm15, %v5052_v37, %v7780_v57  ;;  %7783 = vst [vmem:[#allocation493_spill] sm:$0xff] %v5060_v6  ;;  %v7784_v39 = vld [vmem:[#allocation112_spill] sm:$0xff]  ;;  %v5068_v4 = vld [vmem:[#allocation2 + $0x2b0] sm:$0xff]  ;;  %v7788_v32 = vld [vmem:[#allocation113_spill] sm:$0xff]  ;;  %vm7809_vm0 = vcmp.eq.f32.partialorder %v7619_v56, 1.0 }
 0x168   :  { %7778 = vst [vmem:[#allocation490_spill] sm:$0xff] %v5050_v61  ;;  %7782 = vst [vmem:[#allocation492_spill] sm:$0xff] %v5058_v14  ;;  %v5066_v20 = vsel %vm338_vm13, %v5060_v6, %v7784_v39  ;;  %v7789_v48 = vld [vmem:[#allocation262_spill] sm:$0xff]  ;;  %v7792_v12 = vld [vmem:[#allocation137_spill] sm:$0xff] }
 0x169   :  { %7786 = vst [vmem:[#allocation494_spill] sm:$0xff] %v5066_v20  ;;  %7787 = vst [vmem:[#allocation495_spill] sm:$0xff] %v5068_v4  ;;  %vm7790_vm6 = vcmp.eq.f32.partialorder %v7789_v48, 1.0  ;;  %2022 = vlog2.f32 %v7792_v12  ;;  %v5077_v62 = vld [vmem:[#allocation2 + $0x2b8] sm:$0xff]  ;;  %v7794_v57 = vld [vmem:[#allocation114_spill] sm:$0xff] }
 0x16a   :  { %v5074_v61 = vsel %vm7790_vm6, %v5068_v4, %v7788_v32  ;;  %7793 = vst [vmem:[#allocation137_spill] sm:$0xff] %v5077_v62  ;;  %v7795_v14 = vld [vmem:[#allocation263_spill] sm:$0xff]  ;;  %v5085_v19 = vld [vmem:[#allocation2 + $0x2c0] sm:$0xff]  ;;  %v7799_v39 = vld [vmem:[#allocation117_spill] sm:$0xff]  ;;  %vm7813_vm6 = vcmp.eq.f32.partialorder %v7620_v26, 1.0 }
 0x16b   :  { %7791 = vst [vmem:[#allocation496_spill] sm:$0xff] %v5074_v61  ;;  %vm7796_vm10 = vcmp.eq.f32.partialorder %v7795_v14, 1.0  ;;  %7798 = vst [vmem:[#allocation498_spill] sm:$0xff] %v5085_v19  ;;  %v5091_v6 = vsel %vm341_vm9, %v5085_v19, %v7799_v39  ;;  %v5093_v48 = vld [vmem:[#allocation2 + $0x2c8] sm:$0xff]  ;;  %v7803_v32 = vld [vmem:[#allocation118_spill] sm:$0xff] }
 0x16c   :  { %v5083_v37 = vsel %vm7796_vm10, %v5077_v62, %v7794_v57  ;;  %7801 = vst [vmem:[#allocation499_spill] sm:$0xff] %v5091_v6  ;;  %7802 = vst [vmem:[#allocation500_spill] sm:$0xff] %v5093_v48  ;;  %v5099_v61 = vsel %vm342_vm12, %v5093_v48, %v7803_v32  ;;  %v7806_v4 = vld [vmem:[#allocation141_spill] sm:$0xff]  ;;  %v5102_v14 = vld [vmem:[#allocation2 + $0x2d0] sm:$0xff]  ;;  %vm7817_vm10 = vcmp.eq.f32.partialorder %v7621_v2, 1.0 }
 0x16d   :  { %7797 = vst [vmem:[#allocation497_spill] sm:$0xff] %v5083_v37  ;;  %7805 = vst [vmem:[#allocation501_spill] sm:$0xff] %v5099_v61  ;;  %2024 = vlog2.f32 %v7806_v4  ;;  %v7808_v57 = vld [vmem:[#allocation119_spill] sm:$0xff]  ;;  %v5118_v12 = vld [vmem:[#allocation2 + $0x2e0] sm:$0xff] }
 0x16e   :  { %7807 = vst [vmem:[#allocation141_spill] sm:$0xff] %v5102_v14  ;;  %v5108_v37 = vsel %vm7809_vm0, %v5102_v14, %v7808_v57  ;;  %v5110_v20 = vld [vmem:[#allocation2 + $0x2d8] sm:$0xff]  ;;  %7815 = vst [vmem:[#allocation505_spill] sm:$0xff] %v5118_v12  ;;  %v7816_v32 = vld [vmem:[#allocation124_spill] sm:$0xff] }
 0x16f   :  { %7810 = vst [vmem:[#allocation502_spill] sm:$0xff] %v5108_v37  ;;  %7811 = vst [vmem:[#allocation503_spill] sm:$0xff] %v5110_v20  ;;  %v7812_v39 = vld [vmem:[#allocation123_spill] sm:$0xff]  ;;  %v5124_v4 = vsel %vm7817_vm10, %v5118_v12, %v7816_v32  ;;  %v7819_v61 = vld [vmem:[#allocation145_spill] sm:$0xff] }
 0x170   :  { %v5116_v6 = vsel %vm7813_vm6, %v5110_v20, %v7812_v39  ;;  %7818 = vst [vmem:[#allocation506_spill] sm:$0xff] %v5124_v4  ;;  %2026 = vlog2.f32 %v7819_v61  ;;  %v2277_v56 = vld [vmem:[#allocation2 + $0x2e8] sm:$0xff]  ;;  %v7820_v57 = vld [vmem:[#allocation128_spill] sm:$0xff]  ;;  %v2278_v14 = vld [vmem:[#allocation2 + $0x2f0] sm:$0xff] }
 0x171   :  { %7814 = vst [vmem:[#allocation504_spill] sm:$0xff] %v5116_v6  ;;  %v5130_v37 = vsel %vm346_vm3, %v2277_v56, %v7820_v57  ;;  %v7822_v26 = vld [vmem:[#allocation129_spill] sm:$0xff]  ;;  %v2279_v6 = vld [vmem:[#allocation2 + $0x2f8] sm:$0xff]  ;;  %v2280_v4 = vld [vmem:[#allocation2] sm:$0xff] }
 0x172   :  { %7821 = vst [vmem:[#allocation145_spill] sm:$0xff] %v5130_v37  ;;  %v5135_v39 = vsel %vm347_vm4, %v2278_v14, %v7822_v26  ;;  %v7824_v20 = vld [vmem:[#allocation133_spill] sm:$0xff]  ;;  %v5144_v23 = vmul.f32 %v2280_v4, %v2280_v4  ;;  %v2282_v37 = vld [vmem:[#allocation2 + $0x10] sm:$0xff]  ;;  %v7828_v14 = vld [vmem:[#allocation156_spill] sm:$0xff] }
 0x173   :  { %7823 = vst [vmem:[#allocation507_spill] sm:$0xff] %v5135_v39  ;;  %v5140_v2 = vsel %vm348_vm2, %v2279_v6, %v7824_v20  ;;  %v7826_v32 = vld [vmem:[#allocation149_spill] sm:$0xff]  ;;  %v5148_v36 = vmul.f32 %v2282_v37, %v2282_v37  ;;  %v2283_v26 = vld [vmem:[#allocation2 + $0x18] sm:$0xff]  ;;  %v2284_v6 = vld [vmem:[#allocation2 + $0x20] sm:$0xff] }
 0x174   :  { %7825 = vst [vmem:[#allocation508_spill] sm:$0xff] %v5140_v2  ;;  %2028 = vlog2.f32 %v7826_v32  ;;  %v7827_v61 = vld [vmem:[#allocation153_spill] sm:$0xff]  ;;  %v5151_v39 = vmul.f32 %v2283_v26, %v2283_v26  ;;  %v5153_v35 = vmul.f32 %v2284_v6, %v2284_v6  ;;  %v2286_v4 = vld [vmem:[#allocation2 + $0x30] sm:$0xff]  ;;  %v2288_v37 = vld [vmem:[#allocation2 + $0x40] sm:$0xff] }
 0x175   :  { %2030 = vlog2.f32 %v7827_v61  ;;  %v2281_v56 = vld [vmem:[#allocation2 + $0x8] sm:$0xff]  ;;  %v5158_v2 = vmul.f32 %v2286_v4, %v2286_v4  ;;  %v5162_v48 = vmul.f32 %v2288_v37, %v2288_v37  ;;  %v2290_v6 = vld [vmem:[#allocation2 + $0x50] sm:$0xff]  ;;  %v2292_v4 = vld [vmem:[#allocation2 + $0x60] sm:$0xff] }
 0x176   :  { %v5146_v57 = vmul.f32 %v2281_v56, %v2281_v56  ;;  %2032 = vlog2.f32 %v7828_v14  ;;  %v2285_v32 = vld [vmem:[#allocation2 + $0x28] sm:$0xff]  ;;  %v2287_v56 = vld [vmem:[#allocation2 + $0x38] sm:$0xff]  ;;  %v7831_v14 = vld [vmem:[#allocation160_spill] sm:$0xff]  ;;  %v5167_v62 = vmul.f32 %v2290_v6, %v2290_v6  ;;  %v5172_v47 = vmul.f32 %v2292_v4, %v2292_v4 }
 0x177   :  { %v5155_v20 = vmul.f32 %v2285_v32, %v2285_v32  ;;  %v7829_v61 = vld [vmem:[#allocation157_spill] sm:$0xff]  ;;  %v5160_v12 = vmul.f32 %v2287_v56, %v2287_v56  ;;  %7830 = vst [vmem:[#allocation149_spill] sm:$0xff] %v5162_v48  ;;  %v2291_v32 = vld [vmem:[#allocation2 + $0x58] sm:$0xff]  ;;  %v2294_v37 = vld [vmem:[#allocation2 + $0x70] sm:$0xff] }
 0x178   :  { %2034 = vlog2.f32 %v7829_v61  ;;  %v2289_v26 = vld [vmem:[#allocation2 + $0x48] sm:$0xff]  ;;  %7833 = vst [vmem:[#allocation156_spill] sm:$0xff] %v5167_v62  ;;  %v5169_v29 = vmul.f32 %v2291_v32, %v2291_v32  ;;  %7836 = vst [vmem:[#allocation160_spill] sm:$0xff] %v5172_v47  ;;  %v5176_v22 = vmul.f32 %v2294_v37, %v2294_v37  ;;  %v2296_v6 = vld [vmem:[#allocation2 + $0x80] sm:$0xff] }
 0x179   :  { %2036 = vlog2.f32 %v7831_v14  ;;  %v5165_v19 = vmul.f32 %v2289_v26, %v2289_v26  ;;  %v7835_v61 = vld [vmem:[#allocation165_spill] sm:$0xff]  ;;  %v7839_v14 = vld [vmem:[#allocation166_spill] sm:$0xff]  ;;  %v2295_v26 = vld [vmem:[#allocation2 + $0x78] sm:$0xff]  ;;  %v5181_v62 = vmul.f32 %v2296_v6, %v2296_v6 }
 0x17a   :  { %7834 = vst [vmem:[#allocation157_spill] sm:$0xff] %v5169_v29  ;;  %2038 = vlog2.f32 %v7835_v61  ;;  %v2293_v56 = vld [vmem:[#allocation2 + $0x68] sm:$0xff]  ;;  %7838 = vst [vmem:[#allocation509_spill] sm:$0xff] %v5176_v22  ;;  %v5179_v9 = vmul.f32 %v2295_v26, %v2295_v26  ;;  %v2023_v61 = vpop.eup %2022  ;;  %v7843_v4 = vld [vmem:[#allocation171_spill] sm:$0xff] }
 0x17b   :  { %7832 = vst [vmem:[#allocation153_spill] sm:$0xff] %v5165_v19  ;;  %v5174_v43 = vmul.f32 %v2293_v56, %v2293_v56  ;;  %2040 = vlog2.f32 %v7839_v14  ;;  %7841 = vst [vmem:[#allocation510_spill] sm:$0xff] %v5181_v62  ;;  %v2297_v32 = vld [vmem:[#allocation2 + $0x88] sm:$0xff]  ;;  %v2298_v47 = vld [vmem:[#allocation2 + $0x90] sm:$0xff]  ;;  %v2025_v26 = vpop.eup %2024 }
 0x17c   :  { %7840 = vst [vmem:[#allocation166_spill] sm:$0xff] %v5179_v9  ;;  %v5183_v29 = vmul.f32 %v2297_v32, %v2297_v32  ;;  %2042 = vlog2.f32 %v7843_v4  ;;  %v5186_v56 = vmul.f32 %v2298_v47, %v2298_v47  ;;  %v2300_v22 = vld [vmem:[#allocation2 + $0xa0] sm:$0xff]  ;;  %v2301_v6 = vld [vmem:[#allocation2 + $0xa8] sm:$0xff]  ;;  %v2302_v32 = vld [vmem:[#allocation2 + $0xb0] sm:$0xff]  ;;  %v2027_v47 = vpop.eup %2026 }
 0x17d   :  { %7837 = vst [vmem:[#allocation165_spill] sm:$0xff] %v5174_v43  ;;  %v2299_v43 = vld [vmem:[#allocation2 + $0x98] sm:$0xff]  ;;  %v5190_v14 = vmul.f32 %v2300_v22, %v2300_v22  ;;  %v7847_v9 = vld [vmem:[#allocation172_spill] sm:$0xff]  ;;  %v5193_v62 = vmul.f32 %v2301_v6, %v2301_v6  ;;  %v2306_v22 = vld [vmem:[#allocation2 + $0xd0] sm:$0xff] }
 0x17e   :  { %7842 = vst [vmem:[#allocation511_spill] sm:$0xff] %v5183_v29  ;;  %7844 = vst [vmem:[#allocation171_spill] sm:$0xff] %v5186_v56  ;;  %v5188_v37 = vmul.f32 %v2299_v43, %v2299_v43  ;;  %2044 = vlog2.f32 %v7847_v9  ;;  %v5195_v29 = vmul.f32 %v2302_v32, %v2302_v32  ;;  %v2303_v19 = vld [vmem:[#allocation2 + $0xb8] sm:$0xff]  ;;  %v2304_v56 = vld [vmem:[#allocation2 + $0xc0] sm:$0xff]  ;;  %v2029_v6 = vpop.eup %2028 }
 0x17f   :  { %7846 = vst [vmem:[#allocation513_spill] sm:$0xff] %v5190_v14  ;;  %7848 = vst [vmem:[#allocation172_spill] sm:$0xff] %v5193_v62  ;;  %v5197_v4 = vmul.f32 %v2303_v19, %v2303_v19  ;;  %v5199_v7 = vmul.f32 %v2304_v56, %v2304_v56  ;;  %v2305_v43 = vld [vmem:[#allocation2 + $0xc8] sm:$0xff]  ;;  %v5203_v14 = vmul.f32 %v2306_v22, %v2306_v22  ;;  %v2307_v9 = vld [vmem:[#allocation2 + $0xd8] sm:$0xff] }
 0x180   :  { %7845 = vst [vmem:[#allocation512_spill] sm:$0xff] %v5188_v37  ;;  %7849 = vst [vmem:[#allocation514_spill] sm:$0xff] %v5195_v29  ;;  %v5201_v37 = vmul.f32 %v2305_v43, %v2305_v43  ;;  %v5205_v48 = vmul.f32 %v2307_v9, %v2307_v9  ;;  %v7852_v62 = vld [vmem:[#allocation173_spill] sm:$0xff]  ;;  %v2308_v32 = vld [vmem:[#allocation2 + $0xe0] sm:$0xff]  ;;  %v5214_v56 = vmul.f32 %v4614_v44, %v4614_v44  ;;  %v2031_v43 = vpop.eup %2030 }
 0x181   :  { %7850 = vst [vmem:[#allocation515_spill] sm:$0xff] %v5197_v4  ;;  %2046 = vlog2.f32 %v7852_v62  ;;  %v5208_v29 = vmul.f32 %v2308_v32, %v2308_v32  ;;  %v2309_v19 = vld [vmem:[#allocation2 + $0xe8] sm:$0xff]  ;;  %v5220_v22 = vmul.f32 %v4622_v40, %v4622_v40  ;;  %v5224_v62 = vmul.f32 %v4630_v38, %v4630_v38  ;;  %v2033_v32 = vpop.eup %2032  ;;  %v7855_v44 = vld [vmem:[#allocation174_spill] sm:$0xff] }
 0x182   :  { %7851 = vst [vmem:[#allocation516_spill] sm:$0xff] %v5201_v37  ;;  %v5210_v4 = vmul.f32 %v2309_v19, %v2309_v19  ;;  %v5216_v37 = vmul.f32 0.6931472, %v2023_v61  ;;  %v5228_v9 = vmul.f32 %v4638_v8, %v4638_v8  ;;  %v5230_v19 = vmul.f32 0.6931472, %v2025_v26 }
 0x183   :  { %7853 = vst [vmem:[#allocation173_spill] sm:$0xff] %v5220_v22  ;;  %7854 = vst [vmem:[#allocation517_spill] sm:$0xff] %v5224_v62  ;;  %2048 = vlog2.f32 %v7855_v44  ;;  %v5235_v61 = vmul.f32 %v4646_v24, %v4646_v24  ;;  %v5239_v40 = vmul.f32 %v4654_v46, %v4654_v46  ;;  %v2035_v22 = vpop.eup %2034  ;;  %v5241_v38 = vmul.f32 0.6931472, %v2027_v47 }
 0x184   :  { %v5243_v62 = vmul.f32 0.6931472, %v2029_v6  ;;  %v5247_v8 = vmul.f32 %v4662_v30, %v4662_v30  ;;  %v5251_v26 = vmul.f32 %v4670_v27, %v4670_v27  ;;  %v2037_v44 = vpop.eup %2036  ;;  %v5253_v24 = vmul.f32 0.6931472, %v2031_v43 }
 0x185   :  { %7856 = vst [vmem:[#allocation174_spill] sm:$0xff] %v5235_v61  ;;  %v7858_v61 = vld [vmem:[#allocation179_spill] sm:$0xff]  ;;  %v5258_v46 = vmul.f32 %v4678_v51, %v4678_v51  ;;  %v5262_v47 = vmul.f32 %v4686_v10, %v4686_v10  ;;  %v2039_v6 = vpop.eup %2038  ;;  %v5264_v30 = vmul.f32 0.6931472, %v2033_v32  ;;  %v5269_v27 = vmul.f32 %v4694_v0, %v4694_v0 }
 0x186   :  { %7857 = vst [vmem:[#allocation518_spill] sm:$0xff] %v5247_v8  ;;  %2050 = vlog2.f32 %v7858_v61  ;;  %v7860_v8 = vld [vmem:[#allocation180_spill] sm:$0xff]  ;;  %v5273_v43 = vmul.f32 %v4702_v5, %v4702_v5  ;;  %v2041_v61 = vpop.eup %2040  ;;  %v5275_v51 = vmul.f32 0.6931472, %v2035_v22  ;;  %v5280_v10 = vmul.f32 %v4710_v11, %v4710_v11 }
 0x187   :  { %7859 = vst [vmem:[#allocation179_spill] sm:$0xff] %v5258_v46  ;;  %2052 = vlog2.f32 %v7860_v8  ;;  %7861 = vst [vmem:[#allocation180_spill] sm:$0xff] %v5269_v27  ;;  %v7862_v46 = vld [vmem:[#allocation181_spill] sm:$0xff]  ;;  %v5284_v32 = vmul.f32 %v4718_v1, %v4718_v1  ;;  %v2043_v8 = vpop.eup %2042  ;;  %v5286_v0 = vmul.f32 0.6931472, %v2037_v44  ;;  %v7864_v27 = vld [vmem:[#allocation182_spill] sm:$0xff]  ;;  %v5291_v5 = vmul.f32 %v4726_v33, %v4726_v33 }
 0x188   :  { %2054 = vlog2.f32 %v7862_v46  ;;  %7863 = vst [vmem:[#allocation181_spill] sm:$0xff] %v5280_v10  ;;  %v5295_v22 = vmul.f32 %v4734_v3, %v4734_v3  ;;  %v2045_v46 = vpop.eup %2044  ;;  %v5297_v11 = vmul.f32 0.6931472, %v2039_v6  ;;  %v7866_v10 = vld [vmem:[#allocation187_spill] sm:$0xff]  ;;  %v5302_v1 = vmul.f32 %v4742_v34, %v4742_v34  ;;  %v7867_v33 = vld [vmem:[#allocation24_spill] sm:$0xff]  ;;  %v7870_v34 = vld [vmem:[#allocation25_spill] sm:$0xff] }
 0x189   :  { %2056 = vlog2.f32 %v7864_v27  ;;  %v5306_v44 = vmul.f32 %v4750_v63, %v4750_v63  ;;  %v5308_v27 = vmul.f32 0.6931472, %v2041_v61  ;;  %v5313_v3 = vmul.f32 %v4761_v25, %v4761_v25  ;;  %v7873_v25 = vld [vmem:[#allocation26_spill] sm:$0xff] }
 0x18a   :  { %7865 = vst [vmem:[#allocation182_spill] sm:$0xff] %v5295_v22  ;;  %2058 = vlog2.f32 %v7866_v10  ;;  %v5317_v6 = vmul.f32 %v4769_v21, %v4769_v21  ;;  %v5319_v22 = vmul.f32 0.6931472, %v2043_v8  ;;  %v5324_v63 = vmul.f32 %v4777_v15, %v4777_v15 }
 0x18b   :  { %2060 = vlog2.f32 %v7867_v33  ;;  %7868 = vst [vmem:[#allocation187_spill] sm:$0xff] %v5313_v3  ;;  %v2047_v10 = vpop.eup %2046  ;;  %v5328_v61 = vmul.f32 %v4785_v55, %v4785_v55  ;;  %v5330_v33 = vmul.f32 0.6931472, %v2045_v46  ;;  %v5335_v21 = vmul.f32 %v4796_v54, %v4796_v54  ;;  %v7879_v54 = vld [vmem:[#allocation30_spill] sm:$0xff] }
 0x18c   :  { %7869 = vst [vmem:[#allocation24_spill] sm:$0xff] %v5317_v6  ;;  %2062 = vlog2.f32 %v7870_v34  ;;  %7871 = vst [vmem:[#allocation25_spill] sm:$0xff] %v5324_v63  ;;  %v5339_v8 = vmul.f32 %v4804_v17, %v4804_v17  ;;  %v1309_v15 = vmul.f32 %v5144_v23, %v4232_v28  ;;  %v7876_v63 = vld [vmem:[#allocation326_spill] sm:$0xff]  ;;  %v7878_v6 = vld [vmem:[#allocation15_spill] sm:$0xff]  ;;  %v5349_v3 = vmul.f32 0.6931472, %v2047_v10 }
 0x18d   :  { %7872 = vst [vmem:[#allocation519_spill] sm:$0xff] %v5328_v61  ;;  %2064 = vlog2.f32 %v7873_v25  ;;  %7874 = vst [vmem:[#allocation26_spill] sm:$0xff] %v5335_v21  ;;  %v2049_v34 = vpop.eup %2048  ;;  %v1310_v55 = vmul.f32 %v5146_v57, %v7876_v63  ;;  %v7877_v61 = vld [vmem:[#allocation14_spill] sm:$0xff]  ;;  %v1406_v25 = vmul.f32 %v7878_v6, %v7878_v6  ;;  %v5354_v17 = vmul.f32 %v4812_v58, %v4812_v58  ;;  %v7882_v57 = vld [vmem:[#allocation31_spill] sm:$0xff] }
 0x18e   :  { %7875 = vst [vmem:[#allocation520_spill] sm:$0xff] %v5339_v8  ;;  %v1405_v46 = vmul.f32 %v7877_v61, %v7877_v61  ;;  %2066 = vlog2.f32 %v7879_v54  ;;  %v5358_v28 = vmul.f32 %v4820_v49, %v4820_v49  ;;  %v5363_v63 = vmul.f32 %v4828_v13, %v4828_v13  ;;  %v7884_v6 = vld [vmem:[#allocation327_spill] sm:$0xff]  ;;  %v7885_v61 = vld [vmem:[#allocation16_spill] sm:$0xff] }
 0x18f   :  { %7880 = vst [vmem:[#allocation326_spill] sm:$0xff] %v5354_v17  ;;  %2068 = vlog2.f32 %v7882_v57  ;;  %v1311_v10 = vmul.f32 %v5148_v36, %v7884_v6  ;;  %v1407_v54 = vmul.f32 %v7885_v61, %v7885_v61  ;;  %v5369_v58 = vmul.f32 0.6931472, %v2049_v34  ;;  %v7886_v17 = vld [vmem:[#allocation32_spill] sm:$0xff]  ;;  %v7888_v6 = vld [vmem:[#allocation17_spill] sm:$0xff] }
 0x190   :  { %7881 = vst [vmem:[#allocation14_spill] sm:$0xff] %v5358_v28  ;;  %v2051_v23 = vpop.eup %2050  ;;  %7883 = vst [vmem:[#allocation15_spill] sm:$0xff] %v5363_v63  ;;  %2070 = vlog2.f32 %v7886_v17  ;;  %v5374_v49 = vmul.f32 %v4836_v42, %v4836_v42  ;;  %v5378_v57 = vmul.f32 %v4844_v50, %v4844_v50  ;;  %v1312_v36 = vmul.f32 %v5151_v39, %v4244_v59  ;;  %v7889_v63 = vld [vmem:[#allocation107_spill] sm:$0xff] }
 0x191   :  { %v2053_v8 = vpop.eup %2052  ;;  %v1408_v61 = vmul.f32 %v7888_v6, %v7888_v6  ;;  %vm7890_vm0 = vcmp.eq.f32.partialorder %v7889_v63, 1.0  ;;  %v7891_v28 = vld [vmem:[#allocation111_spill] sm:$0xff]  ;;  %v5388_v42 = vmul.f32 0.6931472, %v2051_v23  ;;  %v5393_v50 = vmul.f32 %v4852_v45, %v4852_v45  ;;  %v7899_v6 = vld [vmem:[#allocation37_spill] sm:$0xff] }
 0x192   :  { %7887 = vst [vmem:[#allocation30_spill] sm:$0xff] %v5374_v49  ;;  %v2055_v13 = vpop.eup %2054  ;;  %v1501_v34 = vsel %vm7890_vm0, %v1405_v46, %v1309_v15  ;;  %vm7892_vm6 = vcmp.eq.f32.partialorder %v7891_v28, 1.0  ;;  %v7893_v49 = vld [vmem:[#allocation36_spill] sm:$0xff]  ;;  %v5397_v59 = vmul.f32 %v4860_v41, %v4860_v41  ;;  %v5401_v15 = vmul.f32 %v4868_v31, %v4868_v31  ;;  %v7897_v23 = vld [vmem:[#allocation115_spill] sm:$0xff] }
 0x193   :  { %v1502_v17 = vsel %vm7892_vm6, %v1406_v25, %v1310_v55  ;;  %v2057_v21 = vpop.eup %2056  ;;  %2072 = vlog2.f32 %v7893_v49  ;;  %v7895_v46 = vld [vmem:[#allocation328_spill] sm:$0xff]  ;;  %v7896_v25 = vld [vmem:[#allocation18_spill] sm:$0xff]  ;;  %vm7898_vm10 = vcmp.eq.f32.partialorder %v7897_v23, 1.0  ;;  %v5409_v49 = vmul.f32 0.6931472, %v2053_v8  ;;  %v7902_v23 = vld [vmem:[#allocation19_spill] sm:$0xff] }
 0x194   :  { %7894 = vst [vmem:[#allocation31_spill] sm:$0xff] %v5397_v59  ;;  %v2059_v39 = vpop.eup %2058  ;;  %v1313_v55 = vmul.f32 %v5153_v35, %v7895_v46  ;;  %v1409_v28 = vmul.f32 %v7896_v25, %v7896_v25  ;;  %v1503_v63 = vsel %vm7898_vm10, %v1407_v54, %v1311_v10  ;;  %2074 = vlog2.f32 %v7899_v6  ;;  %v7901_v46 = vld [vmem:[#allocation329_spill] sm:$0xff]  ;;  %v7903_v8 = vld [vmem:[#allocation116_spill] sm:$0xff] }
 0x195   :  { %v2061_v45 = vpop.eup %2060  ;;  %v1597_v41 = vmul.f32 %v1501_v34, %v5216_v37  ;;  %v1598_v59 = vmul.f32 %v1502_v17, %v5230_v19  ;;  %v5418_v35 = vmul.f32 %v4876_v52, %v4876_v52  ;;  %v1314_v25 = vmul.f32 %v5155_v20, %v7901_v46  ;;  %v7905_v19 = vld [vmem:[#allocation38_spill] sm:$0xff]  ;;  %v7908_v17 = vld [vmem:[#allocation367_spill] sm:$0xff] }
 0x196   :  { %v5414_v31 = vpop.eup %2062  ;;  %v1410_v10 = vmul.f32 %v7902_v23, %v7902_v23  ;;  %vm7904_vm0 = vcmp.eq.f32.partialorder %v7903_v8, 1.0  ;;  %v5428_v37 = vmul.f32 0.6931472, %v2055_v13  ;;  %2076 = vlog2.f32 %v7905_v19  ;;  %v7910_v13 = vld [vmem:[#allocation120_spill] sm:$0xff]  ;;  %v7914_v19 = vld [vmem:[#allocation201_spill] sm:$0xff] }
 0x197   :  { %7900 = vst [vmem:[#allocation327_spill] sm:$0xff] %v5418_v35  ;;  %v1504_v54 = vsel %vm7904_vm0, %v1408_v61, %v1312_v36  ;;  %v5426_v6 = vpop.eup %2064  ;;  %v5433_v34 = vmul.f32 %v4884_v53, %v4884_v53  ;;  %v1599_v52 = vmul.f32 %v1503_v63, %v5241_v38  ;;  %v5438_v20 = vmul.f32 %v4892_v16, %v4892_v16  ;;  %v7909_v36 = vld [vmem:[#allocation20_spill] sm:$0xff] }
 0x198   :  { %v1315_v46 = vmul.f32 %v5158_v2, %v7908_v17  ;;  %v1411_v61 = vmul.f32 %v7909_v36, %v7909_v36  ;;  %vm7911_vm6 = vcmp.eq.f32.partialorder %v7910_v13, 1.0  ;;  %v5446_v8 = vpop.eup %2066  ;;  %v5450_v53 = vmul.f32 %v4900_v18, %v4900_v18  ;;  %v7913_v16 = vld [vmem:[#allocation200_spill] sm:$0xff]  ;;  %v7915_v17 = vld [vmem:[#allocation330_spill] sm:$0xff]  ;;  %v7917_v13 = vld [vmem:[#allocation121_spill] sm:$0xff] }
 0x199   :  { %7906 = vst [vmem:[#allocation16_spill] sm:$0xff] %v5433_v34  ;;  %7907 = vst [vmem:[#allocation32_spill] sm:$0xff] %v5438_v20  ;;  %v1505_v23 = vsel %vm7911_vm6, %v1409_v28, %v1313_v55  ;;  %v1600_v38 = vmul.f32 %v1504_v54, %v5243_v62  ;;  %v1694_v63 = vadd.f32 %v1598_v59, %v1597_v41  ;;  %v5455_v34 = vpop.eup %2068  ;;  %v5457_v2 = vmul.f32 0.6931472, %v2057_v21  ;;  %v7916_v55 = vld [vmem:[#allocation21_spill] sm:$0xff]  ;;  %v7919_v62 = vld [vmem:[#allocation42_spill] sm:$0xff] }
 0x19a   :  { %7912 = vst [vmem:[#allocation17_spill] sm:$0xff] %v5450_v53  ;;  %v1792_v20 = vadd.f32 %v7914_v19, %v7913_v16  ;;  %v1316_v36 = vmul.f32 %v5160_v12, %v7915_v17  ;;  %v1412_v28 = vmul.f32 %v7916_v55, %v7916_v55  ;;  %vm7918_vm10 = vcmp.eq.f32.partialorder %v7917_v13, 1.0  ;;  %v5465_v53 = vpop.eup %2070  ;;  %v7920_v54 = vld [vmem:[#allocation202_spill] sm:$0xff]  ;;  %v7922_v12 = vld [vmem:[#allocation331_spill] sm:$0xff]  ;;  %v7923_v19 = vld [vmem:[#allocation149_spill] sm:$0xff] }
 0x19b   :  { %v1506_v18 = vsel %vm7918_vm10, %v1410_v10, %v1314_v25  ;;  %2078 = vlog2.f32 %v7919_v62  ;;  %v1601_v59 = vmul.f32 %v1505_v23, %v5253_v24  ;;  %v1695_v41 = vadd.f32 %v1694_v63, %v1599_v52  ;;  %v7924_v55 = vld [vmem:[#allocation22_spill] sm:$0xff]  ;;  %v7927_v62 = vld [vmem:[#allocation457_spill] sm:$0xff] }
 0x19c   :  { %v1793_v16 = vadd.f32 %v7920_v54, %v1792_v20  ;;  %v5472_v21 = vmul.f32 %v4908_v60, %v4908_v60  ;;  %v1317_v17 = vmul.f32 %v7923_v19, %v7922_v12  ;;  %v1413_v13 = vmul.f32 %v7924_v55, %v7924_v55  ;;  %v7925_v25 = vld [vmem:[#allocation122_spill] sm:$0xff]  ;;  %v7929_v60 = vld [vmem:[#allocation203_spill] sm:$0xff]  ;;  %v7930_v54 = vld [vmem:[#allocation368_spill] sm:$0xff] }
 0x19d   :  { %vm7926_vm0 = vcmp.eq.f32.partialorder %v7925_v25, 1.0  ;;  %v5480_v35 = vpop.eup %2072  ;;  %v5484_v24 = vmul.f32 %v7927_v62, %v7927_v62  ;;  %v1602_v52 = vmul.f32 %v1506_v18, %v5264_v30  ;;  %v1696_v20 = vadd.f32 %v1695_v41, %v1600_v38  ;;  %v7931_v12 = vld [vmem:[#allocation153_spill] sm:$0xff]  ;;  %v7932_v55 = vld [vmem:[#allocation23_spill] sm:$0xff]  ;;  %v7936_v18 = vld [vmem:[#allocation208_spill] sm:$0xff] }
 0x19e   :  { %7921 = vst [vmem:[#allocation107_spill] sm:$0xff] %v5472_v21  ;;  %v1507_v10 = vsel %vm7926_vm0, %v1411_v61, %v1315_v46  ;;  %v1794_v23 = vadd.f32 %v7929_v60, %v1793_v16  ;;  %v5488_v63 = vmul.f32 0.6931472, %v2059_v39  ;;  %v1318_v19 = vmul.f32 %v7931_v12, %v7930_v54  ;;  %v7933_v46 = vld [vmem:[#allocation125_spill] sm:$0xff]  ;;  %v5496_v21 = vpop.eup %2074  ;;  %v7935_v62 = vld [vmem:[#allocation43_spill] sm:$0xff]  ;;  %v7939_v60 = vld [vmem:[#allocation332_spill] sm:$0xff] }
 0x19f   :  { %7928 = vst [vmem:[#allocation111_spill] sm:$0xff] %v5484_v24  ;;  %v1414_v25 = vmul.f32 %v7932_v55, %v7932_v55  ;;  %vm7934_vm6 = vcmp.eq.f32.partialorder %v7933_v46, 1.0  ;;  %2080 = vlog2.f32 %v7935_v62  ;;  %v1603_v30 = vmul.f32 %v1507_v10, %v5275_v51  ;;  %v7937_v39 = vld [vmem:[#allocation459_spill] sm:$0xff]  ;;  %v7940_v54 = vld [vmem:[#allocation156_spill] sm:$0xff]  ;;  %v7944_v62 = vld [vmem:[#allocation461_spill] sm:$0xff] }
 0x1a0   :  { %v1508_v61 = vsel %vm7934_vm6, %v1412_v28, %v1316_v36  ;;  %v1697_v38 = vadd.f32 %v1696_v20, %v1601_v59  ;;  %v1795_v41 = vadd.f32 %v7936_v18, %v1794_v23  ;;  %v5503_v16 = vmul.f32 %v7937_v39, %v7937_v39  ;;  %v7941_v55 = vld [vmem:[#allocation27_spill] sm:$0xff]  ;;  %v7942_v36 = vld [vmem:[#allocation126_spill] sm:$0xff]  ;;  %v5511_v24 = vpop.eup %2076  ;;  %v7946_v20 = vld [vmem:[#allocation209_spill] sm:$0xff] }
 0x1a1   :  { %v1319_v12 = vmul.f32 %v7940_v54, %v7939_v60  ;;  %v1415_v46 = vmul.f32 %v7941_v55, %v7941_v55  ;;  %vm7943_vm10 = vcmp.eq.f32.partialorder %v7942_v36, 1.0  ;;  %v5515_v51 = vmul.f32 %v7944_v62, %v7944_v62  ;;  %v7947_v39 = vld [vmem:[#allocation333_spill] sm:$0xff]  ;;  %v7949_v55 = vld [vmem:[#allocation28_spill] sm:$0xff] }
 0x1a2   :  { %7938 = vst [vmem:[#allocation36_spill] sm:$0xff] %v5503_v16  ;;  %v1509_v28 = vsel %vm7943_vm10, %v1413_v13, %v1317_v17  ;;  %v1604_v59 = vmul.f32 %v1508_v61, %v5286_v0  ;;  %v1698_v10 = vadd.f32 %v1697_v38, %v1602_v52  ;;  %v1796_v23 = vadd.f32 %v7946_v20, %v1795_v41  ;;  %v7948_v60 = vld [vmem:[#allocation157_spill] sm:$0xff]  ;;  %v7950_v17 = vld [vmem:[#allocation127_spill] sm:$0xff]  ;;  %v7952_v16 = vld [vmem:[#allocation420_spill] sm:$0xff] }
 0x1a3   :  { %7945 = vst [vmem:[#allocation328_spill] sm:$0xff] %v5515_v51  ;;  %v5519_v18 = vmul.f32 0.6931472, %v2061_v45  ;;  %v1320_v54 = vmul.f32 %v7948_v60, %v7947_v39  ;;  %v1416_v36 = vmul.f32 %v7949_v55, %v7949_v55  ;;  %vm7951_vm0 = vcmp.eq.f32.partialorder %v7950_v17, 1.0  ;;  %v7953_v0 = vld [vmem:[#allocation210_spill] sm:$0xff]  ;;  %v7954_v61 = vld [vmem:[#allocation463_spill] sm:$0xff] }
 0x1a4   :  { %v1510_v13 = vsel %vm7951_vm0, %v1414_v25, %v1318_v19  ;;  %2082 = vlog2.f32 %v7952_v16  ;;  %v1605_v62 = vmul.f32 %v1509_v28, %v5297_v11  ;;  %v1699_v51 = vadd.f32 %v1698_v10, %v1603_v30  ;;  %v7955_v38 = vld [vmem:[#allocation334_spill] sm:$0xff]  ;;  %v7956_v41 = vld [vmem:[#allocation160_spill] sm:$0xff]  ;;  %v7957_v39 = vld [vmem:[#allocation29_spill] sm:$0xff] }
 0x1a5   :  { %v1797_v52 = vadd.f32 %v7953_v0, %v1796_v23  ;;  %v5532_v45 = vmul.f32 %v7954_v61, %v7954_v61  ;;  %v1321_v20 = vmul.f32 %v7956_v41, %v7955_v38  ;;  %v1417_v60 = vmul.f32 %v7957_v39, %v7957_v39  ;;  %v7958_v55 = vld [vmem:[#allocation130_spill] sm:$0xff]  ;;  %v5540_v25 = vpop.eup %2078  ;;  %v7960_v16 = vld [vmem:[#allocation465_spill] sm:$0xff]  ;;  %v7962_v10 = vld [vmem:[#allocation211_spill] sm:$0xff] }
 0x1a6   :  { %vm7959_vm6 = vcmp.eq.f32.partialorder %v7958_v55, 1.0  ;;  %v5544_v11 = vmul.f32 %v7960_v16, %v7960_v16  ;;  %v1606_v30 = vmul.f32 %v1510_v13, %v5308_v27  ;;  %v1700_v28 = vadd.f32 %v1699_v51, %v1604_v59  ;;  %v7963_v0 = vld [vmem:[#allocation335_spill] sm:$0xff]  ;;  %v7964_v61 = vld [vmem:[#allocation165_spill] sm:$0xff]  ;;  %v7969_v51 = vld [vmem:[#allocation216_spill] sm:$0xff] }
 0x1a7   :  { %v1511_v19 = vsel %vm7959_vm6, %v1415_v46, %v1319_v12  ;;  %v1798_v23 = vadd.f32 %v7962_v10, %v1797_v52  ;;  %v5549_v17 = vmul.f32 0.6931472, %v5414_v31  ;;  %v1322_v38 = vmul.f32 %v7964_v61, %v7963_v0  ;;  %v7965_v41 = vld [vmem:[#allocation33_spill] sm:$0xff]  ;;  %v7966_v46 = vld [vmem:[#allocation131_spill] sm:$0xff]  ;;  %v7971_v52 = vld [vmem:[#allocation336_spill] sm:$0xff] }
 0x1a8   :  { %7961 = vst [vmem:[#allocation18_spill] sm:$0xff] %v5544_v11  ;;  %v1418_v12 = vmul.f32 %v7965_v41, %v7965_v41  ;;  %vm7967_vm10 = vcmp.eq.f32.partialorder %v7966_v46, 1.0  ;;  %v7968_v55 = vld [vmem:[#allocation421_spill] sm:$0xff]  ;;  %v1607_v16 = vmul.f32 %v1511_v19, %v5319_v22  ;;  %v1701_v27 = vadd.f32 %v1700_v28, %v1605_v62  ;;  %v7970_v13 = vld [vmem:[#allocation467_spill] sm:$0xff]  ;;  %v7973_v61 = vld [vmem:[#allocation34_spill] sm:$0xff] }
 0x1a9   :  { %v1512_v39 = vsel %vm7967_vm10, %v1416_v36, %v1320_v54  ;;  %2084 = vlog2.f32 %v7968_v55  ;;  %v1799_v59 = vadd.f32 %v7969_v51, %v1798_v23  ;;  %v5562_v31 = vmul.f32 %v7970_v13, %v7970_v13  ;;  %v7972_v10 = vld [vmem:[#allocation509_spill] sm:$0xff]  ;;  %v7974_v11 = vld [vmem:[#allocation132_spill] sm:$0xff]  ;;  %v5570_v36 = vpop.eup %2080  ;;  %v7980_v13 = vld [vmem:[#allocation166_spill] sm:$0xff] }
 0x1aa   :  { %v1323_v0 = vmul.f32 %v7972_v10, %v7971_v52  ;;  %v1419_v41 = vmul.f32 %v7973_v61, %v7973_v61  ;;  %vm7975_vm0 = vcmp.eq.f32.partialorder %v7974_v11, 1.0  ;;  %v7976_v46 = vld [vmem:[#allocation469_spill] sm:$0xff]  ;;  %v1608_v62 = vmul.f32 %v1512_v39, %v5330_v33  ;;  %v7981_v10 = vld [vmem:[#allocation35_spill] sm:$0xff]  ;;  %v7984_v61 = vld [vmem:[#allocation422_spill] sm:$0xff] }
 0x1ab   :  { %v1513_v54 = vsel %vm7975_vm0, %v1417_v60, %v1321_v20  ;;  %v5574_v22 = vmul.f32 %v7976_v46, %v7976_v46  ;;  %v1702_v19 = vadd.f32 %v1701_v27, %v1606_v30  ;;  %v7978_v28 = vld [vmem:[#allocation217_spill] sm:$0xff]  ;;  %v5579_v55 = vmul.f32 0.6931472, %v5426_v6  ;;  %v7982_v60 = vld [vmem:[#allocation134_spill] sm:$0xff]  ;;  %v7986_v27 = vld [vmem:[#allocation471_spill] sm:$0xff] }
 0x1ac   :  { %v1800_v23 = vadd.f32 %v7978_v28, %v1799_v59  ;;  %v7979_v51 = vld [vmem:[#allocation337_spill] sm:$0xff]  ;;  %v1420_v20 = vmul.f32 %v7981_v10, %v7981_v10  ;;  %vm7983_vm6 = vcmp.eq.f32.partialorder %v7982_v60, 1.0  ;;  %2086 = vlog2.f32 %v7984_v61  ;;  %v7985_v30 = vld [vmem:[#allocation218_spill] sm:$0xff] }
 0x1ad   :  { %7977 = vst [vmem:[#allocation115_spill] sm:$0xff] %v5574_v22  ;;  %v1324_v52 = vmul.f32 %v7980_v13, %v7979_v51  ;;  %v1514_v11 = vsel %vm7983_vm6, %v1418_v12, %v1322_v38  ;;  %v1609_v46 = vmul.f32 %v1513_v54, %v5349_v3  ;;  %v1703_v33 = vadd.f32 %v1702_v19, %v1607_v16  ;;  %v7987_v59 = vld [vmem:[#allocation338_spill] sm:$0xff]  ;;  %v7989_v13 = vld [vmem:[#allocation39_spill] sm:$0xff]  ;;  %v7992_v60 = vld [vmem:[#allocation473_spill] sm:$0xff] }
 0x1ae   :  { %v1801_v39 = vadd.f32 %v7985_v30, %v1800_v23  ;;  %v5592_v6 = vmul.f32 %v7986_v27, %v7986_v27  ;;  %v7988_v28 = vld [vmem:[#allocation510_spill] sm:$0xff]  ;;  %v1421_v10 = vmul.f32 %v7989_v13, %v7989_v13  ;;  %v7990_v22 = vld [vmem:[#allocation135_spill] sm:$0xff]  ;;  %v5600_v12 = vpop.eup %2082  ;;  %v5604_v3 = vmul.f32 %v7992_v60, %v7992_v60  ;;  %v7995_v30 = vld [vmem:[#allocation369_spill] sm:$0xff] }
 0x1af   :  { %v1325_v51 = vmul.f32 %v7988_v28, %v7987_v59  ;;  %vm7991_vm10 = vcmp.eq.f32.partialorder %v7990_v22, 1.0  ;;  %v1610_v16 = vmul.f32 %v1514_v11, %v5369_v58  ;;  %v1704_v54 = vadd.f32 %v1703_v33, %v1608_v62  ;;  %v7994_v19 = vld [vmem:[#allocation219_spill] sm:$0xff]  ;;  %v7997_v28 = vld [vmem:[#allocation40_spill] sm:$0xff] }
 0x1b0   :  { %v1515_v38 = vsel %vm7991_vm10, %v1419_v41, %v1323_v0  ;;  %7993 = vst [vmem:[#allocation37_spill] sm:$0xff] %v5604_v3  ;;  %v1802_v23 = vadd.f32 %v7994_v19, %v1801_v39  ;;  %v5609_v61 = vmul.f32 0.6931472, %v5446_v8  ;;  %v7996_v27 = vld [vmem:[#allocation511_spill] sm:$0xff]  ;;  %v1422_v0 = vmul.f32 %v7997_v28, %v7997_v28  ;;  %v7998_v41 = vld [vmem:[#allocation136_spill] sm:$0xff]  ;;  %v8003_v39 = vld [vmem:[#allocation370_spill] sm:$0xff] }
 0x1b1   :  { %v1326_v59 = vmul.f32 %v7996_v27, %v7995_v30  ;;  %vm7999_vm0 = vcmp.eq.f32.partialorder %v7998_v41, 1.0  ;;  %v8000_v13 = vld [vmem:[#allocation423_spill] sm:$0xff]  ;;  %v1611_v60 = vmul.f32 %v1515_v38, %v5388_v42  ;;  %v1705_v58 = vadd.f32 %v1704_v54, %v1609_v46  ;;  %v8001_v62 = vld [vmem:[#allocation224_spill] sm:$0xff]  ;;  %v8005_v27 = vld [vmem:[#allocation41_spill] sm:$0xff] }
 0x1b2   :  { %v1516_v22 = vsel %vm7999_vm0, %v1420_v20, %v1324_v52  ;;  %2088 = vlog2.f32 %v8000_v13  ;;  %v1803_v11 = vadd.f32 %v8001_v62, %v1802_v23  ;;  %v8002_v33 = vld [vmem:[#allocation475_spill] sm:$0xff]  ;;  %v1423_v28 = vmul.f32 %v8005_v27, %v8005_v27  ;;  %v8006_v3 = vld [vmem:[#allocation138_spill] sm:$0xff]  ;;  %v8008_v41 = vld [vmem:[#allocation477_spill] sm:$0xff] }
 0x1b3   :  { %v5622_v8 = vmul.f32 %v8002_v33, %v8002_v33  ;;  %v8004_v19 = vld [vmem:[#allocation171_spill] sm:$0xff]  ;;  %vm8007_vm6 = vcmp.eq.f32.partialorder %v8006_v3, 1.0  ;;  %v5630_v20 = vpop.eup %2084  ;;  %v5634_v42 = vmul.f32 %v8008_v41, %v8008_v41  ;;  %v1612_v46 = vmul.f32 %v1516_v22, %v5409_v49  ;;  %v8010_v54 = vld [vmem:[#allocation225_spill] sm:$0xff]  ;;  %v8012_v33 = vld [vmem:[#allocation512_spill] sm:$0xff] }
 0x1b4   :  { %v1327_v30 = vmul.f32 %v8004_v19, %v8003_v39  ;;  %v1517_v52 = vsel %vm8007_vm6, %v1421_v10, %v1325_v51  ;;  %v1706_v38 = vadd.f32 %v1705_v58, %v1610_v16  ;;  %v1804_v23 = vadd.f32 %v8010_v54, %v1803_v11  ;;  %v8011_v62 = vld [vmem:[#allocation339_spill] sm:$0xff]  ;;  %v8013_v19 = vld [vmem:[#allocation44_spill] sm:$0xff]  ;;  %v8017_v16 = vld [vmem:[#allocation226_spill] sm:$0xff] }
 0x1b5   :  { %8009 = vst [vmem:[#allocation329_spill] sm:$0xff] %v5634_v42  ;;  %v5639_v13 = vmul.f32 0.6931472, %v5455_v34  ;;  %v1328_v39 = vmul.f32 %v8012_v33, %v8011_v62  ;;  %v1424_v51 = vmul.f32 %v8013_v19, %v8013_v19  ;;  %v8014_v10 = vld [vmem:[#allocation139_spill] sm:$0xff]  ;;  %v8016_v27 = vld [vmem:[#allocation424_spill] sm:$0xff]  ;;  %v1613_v41 = vmul.f32 %v1517_v52, %v5428_v37  ;;  %v8020_v54 = vld [vmem:[#allocation513_spill] sm:$0xff] }
 0x1b6   :  { %vm8015_vm10 = vcmp.eq.f32.partialorder %v8014_v10, 1.0  ;;  %2090 = vlog2.f32 %v8016_v27  ;;  %v1707_v49 = vadd.f32 %v1706_v38, %v1611_v60  ;;  %v1805_v22 = vadd.f32 %v8017_v16, %v1804_v23  ;;  %v8018_v58 = vld [vmem:[#allocation479_spill] sm:$0xff]  ;;  %v8019_v11 = vld [vmem:[#allocation340_spill] sm:$0xff]  ;;  %v8021_v33 = vld [vmem:[#allocation45_spill] sm:$0xff] }
 0x1b7   :  { %v1518_v3 = vsel %vm8015_vm10, %v1422_v0, %v1326_v59  ;;  %v5652_v34 = vmul.f32 %v8018_v58, %v8018_v58  ;;  %v1329_v62 = vmul.f32 %v8020_v54, %v8019_v11  ;;  %v1425_v19 = vmul.f32 %v8021_v33, %v8021_v33  ;;  %v8022_v42 = vld [vmem:[#allocation140_spill] sm:$0xff]  ;;  %v5660_v0 = vpop.eup %2086  ;;  %v8024_v10 = vld [vmem:[#allocation481_spill] sm:$0xff]  ;;  %v8026_v38 = vld [vmem:[#allocation227_spill] sm:$0xff] }
 0x1b8   :  { %vm8023_vm0 = vcmp.eq.f32.partialorder %v8022_v42, 1.0  ;;  %v5664_v37 = vmul.f32 %v8024_v10, %v8024_v10  ;;  %v1614_v60 = vmul.f32 %v1518_v3, %v5457_v2  ;;  %v1708_v52 = vadd.f32 %v1707_v49, %v1612_v46  ;;  %v8027_v16 = vld [vmem:[#allocation371_spill] sm:$0xff]  ;;  %v8028_v58 = vld [vmem:[#allocation172_spill] sm:$0xff]  ;;  %v8029_v54 = vld [vmem:[#allocation46_spill] sm:$0xff] }
 0x1b9   :  { %v1519_v59 = vsel %vm8023_vm0, %v1423_v28, %v1327_v30  ;;  %v1806_v23 = vadd.f32 %v8026_v38, %v1805_v22  ;;  %v1070_v27 = vmul.f32 0.6931472, %v5465_v53  ;;  %v1330_v11 = vmul.f32 %v8028_v58, %v8027_v16  ;;  %v8030_v30 = vld [vmem:[#allocation142_spill] sm:$0xff]  ;;  %v8032_v33 = vld [vmem:[#allocation425_spill] sm:$0xff]  ;;  %v8033_v2 = vld [vmem:[#allocation232_spill] sm:$0xff] }
 0x1ba   :  { %8025 = vst [vmem:[#allocation19_spill] sm:$0xff] %v5664_v37  ;;  %v1426_v42 = vmul.f32 %v8029_v54, %v8029_v54  ;;  %vm8031_vm6 = vcmp.eq.f32.partialorder %v8030_v30, 1.0  ;;  %2092 = vlog2.f32 %v8032_v33  ;;  %v1615_v10 = vmul.f32 %v1519_v59, %v5488_v63  ;;  %v8034_v3 = vld [vmem:[#allocation483_spill] sm:$0xff]  ;;  %v8035_v53 = vld [vmem:[#allocation372_spill] sm:$0xff]  ;;  %v8036_v22 = vld [vmem:[#allocation514_spill] sm:$0xff] }
 0x1bb   :  { %v1520_v28 = vsel %vm8031_vm6, %v1424_v51, %v1328_v39  ;;  %v1709_v37 = vadd.f32 %v1708_v52, %v1613_v41  ;;  %v1807_v46 = vadd.f32 %v8033_v2, %v1806_v23  ;;  %v5680_v49 = vmul.f32 %v8034_v3, %v8034_v3  ;;  %v8037_v16 = vld [vmem:[#allocation47_spill] sm:$0xff]  ;;  %v8040_v30 = vld [vmem:[#allocation485_spill] sm:$0xff] }
 0x1bc   :  { %v1331_v38 = vmul.f32 %v8036_v22, %v8035_v53  ;;  %v1427_v58 = vmul.f32 %v8037_v16, %v8037_v16  ;;  %v8038_v54 = vld [vmem:[#allocation143_spill] sm:$0xff]  ;;  %v5688_v51 = vpop.eup %2088  ;;  %v5692_v63 = vmul.f32 %v8040_v30, %v8040_v30  ;;  %v1616_v41 = vmul.f32 %v1520_v28, %v5519_v18  ;;  %v8042_v52 = vld [vmem:[#allocation233_spill] sm:$0xff]  ;;  %v8045_v22 = vld [vmem:[#allocation48_spill] sm:$0xff] }
 0x1bd   :  { %vm8039_vm10 = vcmp.eq.f32.partialorder %v8038_v54, 1.0  ;;  %v1710_v59 = vadd.f32 %v1709_v37, %v1614_v60  ;;  %v1808_v23 = vadd.f32 %v8042_v52, %v1807_v46  ;;  %v1072_v33 = vmul.f32 0.6931472, %v5480_v35  ;;  %v8043_v2 = vld [vmem:[#allocation373_spill] sm:$0xff]  ;;  %v8044_v3 = vld [vmem:[#allocation515_spill] sm:$0xff]  ;;  %v8048_v54 = vld [vmem:[#allocation426_spill] sm:$0xff] }
 0x1be   :  { %v1521_v39 = vsel %vm8039_vm10, %v1425_v19, %v1329_v62  ;;  %8041 = vst [vmem:[#allocation116_spill] sm:$0xff] %v5692_v63  ;;  %v1332_v53 = vmul.f32 %v8044_v3, %v8043_v2  ;;  %v1428_v16 = vmul.f32 %v8045_v22, %v8045_v22  ;;  %v8046_v62 = vld [vmem:[#allocation144_spill] sm:$0xff]  ;;  %2094 = vlog2.f32 %v8048_v54  ;;  %v8049_v18 = vld [vmem:[#allocation234_spill] sm:$0xff]  ;;  %v8050_v60 = vld [vmem:[#allocation487_spill] sm:$0xff] }
 0x1bf   :  { %vm8047_vm0 = vcmp.eq.f32.partialorder %v8046_v62, 1.0  ;;  %v1617_v30 = vmul.f32 %v1521_v39, %v5549_v17  ;;  %v1711_v63 = vadd.f32 %v1710_v59, %v1615_v10  ;;  %v1809_v37 = vadd.f32 %v8049_v18, %v1808_v23  ;;  %v8051_v35 = vld [vmem:[#allocation374_spill] sm:$0xff]  ;;  %v8052_v52 = vld [vmem:[#allocation49_spill] sm:$0xff]  ;;  %v8056_v59 = vld [vmem:[#allocation235_spill] sm:$0xff] }
 0x1c0   :  { %v1522_v19 = vsel %vm8047_vm0, %v1426_v42, %v1330_v11  ;;  %v5708_v28 = vmul.f32 %v8050_v60, %v8050_v60  ;;  %v1333_v46 = vmul.f32 %v5199_v7, %v8051_v35  ;;  %v1429_v2 = vmul.f32 %v8052_v52, %v8052_v52  ;;  %v8053_v3 = vld [vmem:[#allocation146_spill] sm:$0xff]  ;;  %v5716_v42 = vpop.eup %2090  ;;  %v8055_v22 = vld [vmem:[#allocation489_spill] sm:$0xff]  ;;  %v8057_v7 = vld [vmem:[#allocation375_spill] sm:$0xff] }
 0x1c1   :  { %vm8054_vm6 = vcmp.eq.f32.partialorder %v8053_v3, 1.0  ;;  %v5720_v17 = vmul.f32 %v8055_v22, %v8055_v22  ;;  %v1618_v10 = vmul.f32 %v1522_v19, %v5579_v55  ;;  %v1712_v39 = vadd.f32 %v1711_v63, %v1616_v41  ;;  %v8058_v54 = vld [vmem:[#allocation516_spill] sm:$0xff]  ;;  %v8059_v60 = vld [vmem:[#allocation50_spill] sm:$0xff]  ;;  %v8062_v52 = vld [vmem:[#allocation427_spill] sm:$0xff] }
 0x1c2   :  { %v1523_v11 = vsel %vm8054_vm6, %v1427_v58, %v1331_v38  ;;  %v1810_v23 = vadd.f32 %v8056_v59, %v1809_v37  ;;  %v1074_v62 = vmul.f32 0.6931472, %v5496_v21  ;;  %v1334_v18 = vmul.f32 %v8058_v54, %v8057_v7  ;;  %v8060_v38 = vld [vmem:[#allocation147_spill] sm:$0xff]  ;;  %v8063_v55 = vld [vmem:[#allocation240_spill] sm:$0xff] }
 0x1c3   :  { %v1430_v35 = vmul.f32 %v8059_v60, %v8059_v60  ;;  %vm8061_vm10 = vcmp.eq.f32.partialorder %v8060_v38, 1.0  ;;  %2096 = vlog2.f32 %v8062_v52  ;;  %v1619_v3 = vmul.f32 %v1523_v11, %v5609_v61  ;;  %v8064_v41 = vld [vmem:[#allocation491_spill] sm:$0xff]  ;;  %v8065_v21 = vld [vmem:[#allocation376_spill] sm:$0xff]  ;;  %v8069_v60 = vld [vmem:[#allocation493_spill] sm:$0xff] }
 0x1c4   :  { %v1524_v58 = vsel %vm8061_vm10, %v1428_v16, %v1332_v53  ;;  %v1713_v22 = vadd.f32 %v1712_v39, %v1617_v30  ;;  %v1811_v63 = vadd.f32 %v8063_v55, %v1810_v23  ;;  %v5736_v19 = vmul.f32 %v8064_v41, %v8064_v41  ;;  %v8066_v59 = vld [vmem:[#allocation51_spill] sm:$0xff]  ;;  %v8067_v54 = vld [vmem:[#allocation148_spill] sm:$0xff]  ;;  %v5744_v16 = vpop.eup %2092  ;;  %v8070_v39 = vld [vmem:[#allocation241_spill] sm:$0xff] }
 0x1c5   :  { %v1335_v37 = vmul.f32 %v5203_v14, %v8065_v21  ;;  %v1431_v7 = vmul.f32 %v8066_v59, %v8066_v59  ;;  %vm8068_vm0 = vcmp.eq.f32.partialorder %v8067_v54, 1.0  ;;  %v5748_v61 = vmul.f32 %v8069_v60, %v8069_v60  ;;  %v8071_v14 = vld [vmem:[#allocation377_spill] sm:$0xff]  ;;  %v8072_v55 = vld [vmem:[#allocation52_spill] sm:$0xff]  ;;  %v8076_v60 = vld [vmem:[#allocation242_spill] sm:$0xff] }
 0x1c6   :  { %v1525_v53 = vsel %vm8068_vm0, %v1429_v2, %v1333_v46  ;;  %v1620_v30 = vmul.f32 %v1524_v58, %v5639_v13  ;;  %v1714_v11 = vadd.f32 %v1713_v22, %v1618_v10  ;;  %v1812_v23 = vadd.f32 %v8070_v39, %v1811_v63  ;;  %v8073_v46 = vld [vmem:[#allocation150_spill] sm:$0xff]  ;;  %v8075_v21 = vld [vmem:[#allocation428_spill] sm:$0xff]  ;;  %v8077_v10 = vld [vmem:[#allocation495_spill] sm:$0xff] }
 0x1c7   :  { %v1076_v38 = vmul.f32 0.6931472, %v5511_v24  ;;  %v1336_v52 = vmul.f32 %v5205_v48, %v8071_v14  ;;  %v1432_v41 = vmul.f32 %v8072_v55, %v8072_v55  ;;  %vm8074_vm6 = vcmp.eq.f32.partialorder %v8073_v46, 1.0  ;;  %v8078_v24 = vld [vmem:[#allocation378_spill] sm:$0xff]  ;;  %v8079_v48 = vld [vmem:[#allocation53_spill] sm:$0xff]  ;;  %v8080_v39 = vld [vmem:[#allocation151_spill] sm:$0xff] }
 0x1c8   :  { %v1526_v2 = vsel %vm8074_vm6, %v1430_v35, %v1334_v18  ;;  %2098 = vlog2.f32 %v8075_v21  ;;  %v1621_v59 = vmul.f32 %v1525_v53, %v1070_v27  ;;  %v1715_v54 = vadd.f32 %v1714_v11, %v1619_v3  ;;  %v5771_v18 = vpop.eup %2094  ;;  %v8082_v35 = vld [vmem:[#allocation137_spill] sm:$0xff]  ;;  %v8083_v11 = vld [vmem:[#allocation243_spill] sm:$0xff]  ;;  %v8085_v21 = vld [vmem:[#allocation54_spill] sm:$0xff] }
 0x1c9   :  { %v1813_v13 = vadd.f32 %v8076_v60, %v1812_v23  ;;  %v5763_v58 = vmul.f32 %v8077_v10, %v8077_v10  ;;  %v1337_v22 = vmul.f32 %v5208_v29, %v8078_v24  ;;  %v1433_v63 = vmul.f32 %v8079_v48, %v8079_v48  ;;  %v8084_v46 = vld [vmem:[#allocation379_spill] sm:$0xff]  ;;  %v8086_v10 = vld [vmem:[#allocation152_spill] sm:$0xff] }
 0x1ca   :  { %vm8081_vm10 = vcmp.eq.f32.partialorder %v8080_v39, 1.0  ;;  %v5775_v27 = vmul.f32 %v8082_v35, %v8082_v35  ;;  %v1622_v3 = vmul.f32 %v1526_v2, %v1072_v33  ;;  %v1716_v53 = vadd.f32 %v1715_v54, %v1620_v30  ;;  %v8089_v39 = vld [vmem:[#allocation246_spill] sm:$0xff] }
 0x1cb   :  { %v1527_v14 = vsel %vm8081_vm10, %v1431_v7, %v1335_v37  ;;  %v1814_v23 = vadd.f32 %v8083_v11, %v1813_v13  ;;  %v1078_v55 = vmul.f32 0.6931472, %v5540_v25  ;;  %v1338_v29 = vmul.f32 %v5210_v4, %v8084_v46  ;;  %v8088_v7 = vld [vmem:[#allocation429_spill] sm:$0xff]  ;;  %v8090_v30 = vld [vmem:[#allocation498_spill] sm:$0xff]  ;;  %v8091_v25 = vld [vmem:[#allocation380_spill] sm:$0xff] }
 0x1cc   :  { %v1434_v60 = vmul.f32 %v8085_v21, %v8085_v21  ;;  %vm8087_vm0 = vcmp.eq.f32.partialorder %v8086_v10, 1.0  ;;  %2100 = vlog2.f32 %v8088_v7  ;;  %v1623_v24 = vmul.f32 %v1527_v14, %v1074_v62  ;;  %v8092_v4 = vld [vmem:[#allocation55_spill] sm:$0xff]  ;;  %v8093_v35 = vld [vmem:[#allocation154_spill] sm:$0xff]  ;;  %v8097_v21 = vld [vmem:[#allocation381_spill] sm:$0xff] }
 0x1cd   :  { %v1528_v37 = vsel %vm8087_vm0, %v1432_v41, %v1336_v52  ;;  %v1717_v48 = vadd.f32 %v1716_v53, %v1621_v59  ;;  %v1815_v33 = vadd.f32 %v8089_v39, %v1814_v23  ;;  %v5789_v2 = vmul.f32 %v8090_v30, %v8090_v30  ;;  %v5797_v52 = vpop.eup %2096  ;;  %v8095_v14 = vld [vmem:[#allocation247_spill] sm:$0xff]  ;;  %v8096_v23 = vld [vmem:[#allocation500_spill] sm:$0xff] }
 0x1ce   :  { %v1339_v54 = vmul.f32 %v5214_v56, %v8091_v25  ;;  %v1435_v13 = vmul.f32 %v8092_v4, %v8092_v4  ;;  %vm8094_vm6 = vcmp.eq.f32.partialorder %v8093_v35, 1.0  ;;  %v1080_v62 = vmul.f32 0.6931472, %v5570_v36  ;;  %v8098_v56 = vld [vmem:[#allocation173_spill] sm:$0xff]  ;;  %v8099_v7 = vld [vmem:[#allocation56_spill] sm:$0xff]  ;;  %v8100_v30 = vld [vmem:[#allocation155_spill] sm:$0xff] }
 0x1cf   :  { %v1529_v11 = vsel %vm8094_vm6, %v1433_v63, %v1337_v22  ;;  %v1624_v41 = vmul.f32 %v1528_v37, %v1076_v38  ;;  %v1718_v59 = vadd.f32 %v1717_v48, %v1622_v3  ;;  %v1816_v53 = vadd.f32 %v8095_v14, %v1815_v33  ;;  %v8102_v3 = vld [vmem:[#allocation248_spill] sm:$0xff]  ;;  %v8103_v48 = vld [vmem:[#allocation430_spill] sm:$0xff]  ;;  %v8105_v25 = vld [vmem:[#allocation517_spill] sm:$0xff] }
 0x1d0   :  { %v5803_v46 = vmul.f32 %v8096_v23, %v8096_v23  ;;  %v1340_v10 = vmul.f32 %v8098_v56, %v8097_v21  ;;  %v1436_v39 = vmul.f32 %v8099_v7, %v8099_v7  ;;  %vm8101_vm10 = vcmp.eq.f32.partialorder %v8100_v30, 1.0  ;;  %v8104_v33 = vld [vmem:[#allocation382_spill] sm:$0xff]  ;;  %v8106_v35 = vld [vmem:[#allocation57_spill] sm:$0xff] }
 0x1d1   :  { %v1530_v22 = vsel %vm8101_vm10, %v1434_v60, %v1338_v29  ;;  %v1082_v63 = vmul.f32 0.6931472, %v5600_v12  ;;  %v1625_v36 = vmul.f32 %v1529_v11, %v1078_v55  ;;  %v1719_v38 = vadd.f32 %v1718_v59, %v1623_v24  ;;  %v8107_v23 = vld [vmem:[#allocation158_spill] sm:$0xff]  ;;  %v8109_v55 = vld [vmem:[#allocation249_spill] sm:$0xff] }
 0x1d2   :  { %v1817_v37 = vadd.f32 %v8102_v3, %v1816_v53  ;;  %2102 = vlog2.f32 %v8103_v48  ;;  %v1341_v4 = vmul.f32 %v8105_v25, %v8104_v33  ;;  %v1437_v14 = vmul.f32 %v8106_v35, %v8106_v35  ;;  %v2099_v56 = vpop.eup %2098  ;;  %v8110_v11 = vld [vmem:[#allocation141_spill] sm:$0xff]  ;;  %v8111_v53 = vld [vmem:[#allocation383_spill] sm:$0xff]  ;;  %v8112_v30 = vld [vmem:[#allocation58_spill] sm:$0xff] }
 0x1d3   :  { %vm8108_vm0 = vcmp.eq.f32.partialorder %v8107_v23, 1.0  ;;  %v1084_v29 = vmul.f32 0.6931472, %v5630_v20  ;;  %v1626_v60 = vmul.f32 %v1530_v22, %v1080_v62  ;;  %v1720_v12 = vadd.f32 %v1719_v38, %v1624_v41  ;;  %v8113_v48 = vld [vmem:[#allocation159_spill] sm:$0xff]  ;;  %v8115_v41 = vld [vmem:[#allocation252_spill] sm:$0xff]  ;;  %v8118_v25 = vld [vmem:[#allocation174_spill] sm:$0xff] }
 0x1d4   :  { %v1531_v21 = vsel %vm8108_vm0, %v1435_v13, %v1339_v54  ;;  %v1818_v24 = vadd.f32 %v8109_v55, %v1817_v37  ;;  %v5824_v59 = vmul.f32 %v8110_v11, %v8110_v11  ;;  %v1342_v7 = vmul.f32 %v5228_v9, %v8111_v53  ;;  %v8116_v38 = vld [vmem:[#allocation503_spill] sm:$0xff]  ;;  %v8117_v33 = vld [vmem:[#allocation384_spill] sm:$0xff]  ;;  %v8120_v55 = vld [vmem:[#allocation161_spill] sm:$0xff] }
 0x1d5   :  { %v1438_v3 = vmul.f32 %v8112_v30, %v8112_v30  ;;  %vm8114_vm6 = vcmp.eq.f32.partialorder %v8113_v48, 1.0  ;;  %v1086_v13 = vmul.f32 0.6931472, %v5660_v0  ;;  %v1627_v20 = vmul.f32 %v1531_v21, %v1082_v63  ;;  %v8119_v9 = vld [vmem:[#allocation59_spill] sm:$0xff]  ;;  %v8125_v30 = vld [vmem:[#allocation60_spill] sm:$0xff] }
 0x1d6   :  { %v1532_v54 = vsel %vm8114_vm6, %v1436_v39, %v1340_v10  ;;  %v1721_v62 = vadd.f32 %v1720_v12, %v1625_v36  ;;  %v1819_v22 = vadd.f32 %v8115_v41, %v1818_v24  ;;  %v5836_v37 = vmul.f32 %v8116_v38, %v8116_v38  ;;  %v2101_v10 = vpop.eup %2100  ;;  %v8122_v36 = vld [vmem:[#allocation253_spill] sm:$0xff]  ;;  %v8123_v12 = vld [vmem:[#allocation431_spill] sm:$0xff]  ;;  %v8126_v41 = vld [vmem:[#allocation162_spill] sm:$0xff] }
 0x1d7   :  { %v1343_v35 = vmul.f32 %v8118_v25, %v8117_v33  ;;  %v1439_v23 = vmul.f32 %v8119_v9, %v8119_v9  ;;  %vm8121_vm10 = vcmp.eq.f32.partialorder %v8120_v55, 1.0  ;;  %v1088_v0 = vmul.f32 0.6931472, %v5688_v51  ;;  %v8124_v24 = vld [vmem:[#allocation385_spill] sm:$0xff]  ;;  %v8128_v51 = vld [vmem:[#allocation254_spill] sm:$0xff]  ;;  %v8133_v55 = vld [vmem:[#allocation163_spill] sm:$0xff] }
 0x1d8   :  { %v1533_v11 = vsel %vm8121_vm10, %v1437_v14, %v1341_v4  ;;  %v1628_v39 = vmul.f32 %v1532_v54, %v1084_v29  ;;  %v1722_v63 = vadd.f32 %v1721_v62, %v1626_v60  ;;  %v1820_v21 = vadd.f32 %v8122_v36, %v1819_v22  ;;  %v8129_v60 = vld [vmem:[#allocation505_spill] sm:$0xff]  ;;  %v8131_v22 = vld [vmem:[#allocation518_spill] sm:$0xff] }
 0x1d9   :  { %2104 = vlog2.f32 %v8123_v12  ;;  %v1344_v53 = vmul.f32 %v5239_v40, %v8124_v24  ;;  %v1440_v48 = vmul.f32 %v8125_v30, %v8125_v30  ;;  %vm8127_vm0 = vcmp.eq.f32.partialorder %v8126_v41, 1.0  ;;  %v8130_v62 = vld [vmem:[#allocation341_spill] sm:$0xff]  ;;  %v8138_v24 = vld [vmem:[#allocation62_spill] sm:$0xff]  ;;  %v8139_v41 = vld [vmem:[#allocation164_spill] sm:$0xff] }
 0x1da   :  { %v1534_v38 = vsel %vm8127_vm0, %v1438_v3, %v1342_v7  ;;  %v1090_v4 = vmul.f32 0.6931472, %v5716_v42  ;;  %v1629_v14 = vmul.f32 %v1533_v11, %v1086_v13  ;;  %v1723_v33 = vadd.f32 %v1722_v63, %v1627_v20  ;;  %v8132_v40 = vld [vmem:[#allocation61_spill] sm:$0xff]  ;;  %v8135_v13 = vld [vmem:[#allocation255_spill] sm:$0xff]  ;;  %v8136_v63 = vld [vmem:[#allocation432_spill] sm:$0xff] }
 0x1db   :  { %v1821_v29 = vadd.f32 %v8128_v51, %v1820_v21  ;;  %v5857_v54 = vmul.f32 %v8129_v60, %v8129_v60  ;;  %v1345_v25 = vmul.f32 %v8131_v22, %v8130_v62  ;;  %v1441_v9 = vmul.f32 %v8132_v40, %v8132_v40  ;;  %v8137_v21 = vld [vmem:[#allocation386_spill] sm:$0xff]  ;;  %v8145_v62 = vld [vmem:[#allocation63_spill] sm:$0xff] }
 0x1dc   :  { %vm8134_vm6 = vcmp.eq.f32.partialorder %v8133_v55, 1.0  ;;  %v1092_v7 = vmul.f32 0.6931472, %v5744_v16  ;;  %v1630_v42 = vmul.f32 %v1534_v38, %v1088_v0  ;;  %v1724_v3 = vadd.f32 %v1723_v33, %v1628_v39  ;;  %v2103_v11 = vpop.eup %2102  ;;  %v8141_v0 = vld [vmem:[#allocation258_spill] sm:$0xff]  ;;  %v8142_v38 = vld [vmem:[#allocation433_spill] sm:$0xff]  ;;  %v8143_v33 = vld [vmem:[#allocation387_spill] sm:$0xff] }
 0x1dd   :  { %v1535_v36 = vsel %vm8134_vm6, %v1439_v23, %v1343_v35  ;;  %v1822_v20 = vadd.f32 %v8135_v13, %v1821_v29  ;;  %2106 = vlog2.f32 %v8136_v63  ;;  %v1346_v12 = vmul.f32 %v5251_v26, %v8137_v21  ;;  %v8144_v29 = vld [vmem:[#allocation179_spill] sm:$0xff]  ;;  %v8151_v13 = vld [vmem:[#allocation64_spill] sm:$0xff] }
 0x1de   :  { %v1442_v30 = vmul.f32 %v8138_v24, %v8138_v24  ;;  %vm8140_vm10 = vcmp.eq.f32.partialorder %v8139_v41, 1.0  ;;  %v1094_v35 = vmul.f32 0.6931472, %v5771_v18  ;;  %v1631_v23 = vmul.f32 %v1535_v36, %v1090_v4  ;;  %v8146_v22 = vld [vmem:[#allocation167_spill] sm:$0xff]  ;;  %v8150_v36 = vld [vmem:[#allocation388_spill] sm:$0xff] }
 0x1df   :  { %v1536_v51 = vsel %vm8140_vm10, %v1440_v48, %v1344_v53  ;;  %v1725_v16 = vadd.f32 %v1724_v3, %v1629_v14  ;;  %v1823_v39 = vadd.f32 %v8141_v0, %v1822_v20  ;;  %2108 = vlog2.f32 %v8142_v38  ;;  %v8148_v18 = vld [vmem:[#allocation259_spill] sm:$0xff]  ;;  %v8149_v14 = vld [vmem:[#allocation434_spill] sm:$0xff]  ;;  %v8152_v63 = vld [vmem:[#allocation168_spill] sm:$0xff] }
 0x1e0   :  { %v1347_v60 = vmul.f32 %v8144_v29, %v8143_v33  ;;  %v1443_v26 = vmul.f32 %v8145_v62, %v8145_v62  ;;  %vm8147_vm0 = vcmp.eq.f32.partialorder %v8146_v22, 1.0  ;;  %v1096_v55 = vmul.f32 0.6931472, %v5797_v52  ;;  %v8159_v38 = vld [vmem:[#allocation169_spill] sm:$0xff] }
 0x1e1   :  { %v1537_v40 = vsel %vm8147_vm0, %v1441_v9, %v1345_v25  ;;  %v1632_v53 = vmul.f32 %v1536_v51, %v1092_v7  ;;  %v1726_v48 = vadd.f32 %v1725_v16, %v1630_v42  ;;  %v1824_v4 = vadd.f32 %v8148_v18, %v1823_v39  ;;  %v8154_v9 = vld [vmem:[#allocation260_spill] sm:$0xff]  ;;  %v8155_v42 = vld [vmem:[#allocation435_spill] sm:$0xff]  ;;  %v8156_v51 = vld [vmem:[#allocation389_spill] sm:$0xff] }
 0x1e2   :  { %2110 = vlog2.f32 %v8149_v14  ;;  %v1348_v3 = vmul.f32 %v5262_v47, %v8150_v36  ;;  %v1444_v20 = vmul.f32 %v8151_v13, %v8151_v13  ;;  %vm8153_vm6 = vcmp.eq.f32.partialorder %v8152_v63, 1.0  ;;  %v8157_v16 = vld [vmem:[#allocation180_spill] sm:$0xff]  ;;  %v8158_v39 = vld [vmem:[#allocation65_spill] sm:$0xff]  ;;  %v8165_v18 = vld [vmem:[#allocation170_spill] sm:$0xff] }
 0x1e3   :  { %v1538_v21 = vsel %vm8153_vm6, %v1442_v30, %v1346_v12  ;;  %v1098_v24 = vmul.f32 0.6931472, %v2099_v56  ;;  %v1633_v41 = vmul.f32 %v1537_v40, %v1094_v35  ;;  %v1727_v25 = vadd.f32 %v1726_v48, %v1631_v23  ;;  %v2105_v7 = vpop.eup %2104  ;;  %v8161_v56 = vld [vmem:[#allocation261_spill] sm:$0xff]  ;;  %v8162_v35 = vld [vmem:[#allocation436_spill] sm:$0xff]  ;;  %v8163_v23 = vld [vmem:[#allocation390_spill] sm:$0xff] }
 0x1e4   :  { %v1825_v52 = vadd.f32 %v8154_v9, %v1824_v4  ;;  %2112 = vlog2.f32 %v8155_v42  ;;  %v1349_v0 = vmul.f32 %v8157_v16, %v8156_v51  ;;  %v1445_v47 = vmul.f32 %v8158_v39, %v8158_v39  ;;  %v8164_v40 = vld [vmem:[#allocation66_spill] sm:$0xff]  ;;  %v8170_v63 = vld [vmem:[#allocation181_spill] sm:$0xff]  ;;  %v8172_v9 = vld [vmem:[#allocation175_spill] sm:$0xff] }
 0x1e5   :  { %vm8160_vm10 = vcmp.eq.f32.partialorder %v8159_v38, 1.0  ;;  %v1100_v29 = vmul.f32 0.6931472, %v2101_v10  ;;  %v1634_v62 = vmul.f32 %v1538_v21, %v1096_v55  ;;  %v1728_v12 = vadd.f32 %v1727_v25, %v1632_v53  ;;  %v8168_v55 = vld [vmem:[#allocation437_spill] sm:$0xff]  ;;  %v8169_v53 = vld [vmem:[#allocation391_spill] sm:$0xff]  ;;  %v8176_v16 = vld [vmem:[#allocation392_spill] sm:$0xff] }
 0x1e6   :  { %v1539_v33 = vsel %vm8160_vm10, %v1443_v26, %v1347_v60  ;;  %v1826_v30 = vadd.f32 %v8161_v56, %v1825_v52  ;;  %2114 = vlog2.f32 %v8162_v35  ;;  %v1350_v22 = vmul.f32 %v5273_v43, %v8163_v23  ;;  %v8167_v60 = vld [vmem:[#allocation264_spill] sm:$0xff]  ;;  %v8171_v25 = vld [vmem:[#allocation67_spill] sm:$0xff]  ;;  %v8182_v23 = vld [vmem:[#allocation393_spill] sm:$0xff] }
 0x1e7   :  { %v1446_v48 = vmul.f32 %v8164_v40, %v8164_v40  ;;  %vm8166_vm0 = vcmp.eq.f32.partialorder %v8165_v18, 1.0  ;;  %v1102_v14 = vmul.f32 0.6931472, %v2103_v11  ;;  %v1635_v36 = vmul.f32 %v1539_v33, %v1098_v24  ;;  %v2107_v26 = vpop.eup %2106  ;;  %v8174_v11 = vld [vmem:[#allocation265_spill] sm:$0xff]  ;;  %v8177_v38 = vld [vmem:[#allocation68_spill] sm:$0xff] }
 0x1e8   :  { %v1540_v4 = vsel %vm8166_vm0, %v1444_v20, %v1348_v3  ;;  %v1729_v13 = vadd.f32 %v1728_v12, %v1633_v41  ;;  %v1827_v10 = vadd.f32 %v8167_v60, %v1826_v30  ;;  %2116 = vlog2.f32 %v8168_v55  ;;  %v8175_v41 = vld [vmem:[#allocation438_spill] sm:$0xff]  ;;  %v8178_v12 = vld [vmem:[#allocation176_spill] sm:$0xff]  ;;  %v8183_v18 = vld [vmem:[#allocation69_spill] sm:$0xff] }
 0x1e9   :  { %v1351_v21 = vmul.f32 %v8170_v63, %v8169_v53  ;;  %v1447_v43 = vmul.f32 %v8171_v25, %v8171_v25  ;;  %vm8173_vm6 = vcmp.eq.f32.partialorder %v8172_v9, 1.0  ;;  %v1104_v42 = vmul.f32 0.6931472, %v2105_v7  ;;  %v2109_v24 = vpop.eup %2108  ;;  %v8180_v7 = vld [vmem:[#allocation266_spill] sm:$0xff] }
 0x1ea   :  { %v1541_v52 = vsel %vm8173_vm6, %v1445_v47, %v1349_v0  ;;  %v1636_v51 = vmul.f32 %v1540_v4, %v1100_v29  ;;  %v1730_v3 = vadd.f32 %v1729_v13, %v1634_v62  ;;  %v1828_v20 = vadd.f32 %v8174_v11, %v1827_v10  ;;  %v8181_v62 = vld [vmem:[#allocation439_spill] sm:$0xff]  ;;  %v8184_v4 = vld [vmem:[#allocation177_spill] sm:$0xff]  ;;  %v8188_v55 = vld [vmem:[#allocation394_spill] sm:$0xff] }
 0x1eb   :  { %2118 = vlog2.f32 %v8175_v41  ;;  %v1352_v39 = vmul.f32 %v5284_v32, %v8176_v16  ;;  %v1448_v33 = vmul.f32 %v8177_v38, %v8177_v38  ;;  %vm8179_vm10 = vcmp.eq.f32.partialorder %v8178_v12, 1.0  ;;  %v8189_v53 = vld [vmem:[#allocation182_spill] sm:$0xff]  ;;  %v8196_v16 = vld [vmem:[#allocation71_spill] sm:$0xff] }
 0x1ec   :  { %v1542_v56 = vsel %vm8179_vm10, %v1446_v48, %v1350_v22  ;;  %v1106_v30 = vmul.f32 0.6931472, %v2107_v26  ;;  %v1637_v35 = vmul.f32 %v1541_v52, %v1102_v14  ;;  %v1731_v0 = vadd.f32 %v1730_v3, %v1635_v36  ;;  %v2111_v29 = vpop.eup %2110  ;;  %v8186_v48 = vld [vmem:[#allocation267_spill] sm:$0xff]  ;;  %v8187_v26 = vld [vmem:[#allocation440_spill] sm:$0xff]  ;;  %v8190_v25 = vld [vmem:[#allocation70_spill] sm:$0xff] }
 0x1ed   :  { %v1829_v47 = vadd.f32 %v8180_v7, %v1828_v20  ;;  %2120 = vlog2.f32 %v8181_v62  ;;  %v1353_v40 = vmul.f32 %v5291_v5, %v8182_v23  ;;  %v1449_v32 = vmul.f32 %v8183_v18, %v8183_v18  ;;  %v8191_v9 = vld [vmem:[#allocation178_spill] sm:$0xff]  ;;  %v8194_v20 = vld [vmem:[#allocation441_spill] sm:$0xff]  ;;  %v8197_v12 = vld [vmem:[#allocation183_spill] sm:$0xff] }
 0x1ee   :  { %vm8185_vm0 = vcmp.eq.f32.partialorder %v8184_v4, 1.0  ;;  %v1108_v60 = vmul.f32 0.6931472, %v2109_v24  ;;  %v1638_v10 = vmul.f32 %v1542_v56, %v1104_v42  ;;  %v1732_v22 = vadd.f32 %v1731_v0, %v1636_v51  ;;  %v2113_v36 = vpop.eup %2112  ;;  %v8195_v24 = vld [vmem:[#allocation395_spill] sm:$0xff]  ;;  %v8202_v23 = vld [vmem:[#allocation72_spill] sm:$0xff] }
 0x1ef   :  { %v1543_v13 = vsel %vm8185_vm0, %v1447_v43, %v1351_v21  ;;  %v1830_v14 = vadd.f32 %v8186_v48, %v1829_v47  ;;  %2122 = vlog2.f32 %v8187_v26  ;;  %v1354_v63 = vmul.f32 %v8189_v53, %v8188_v55  ;;  %v8193_v43 = vld [vmem:[#allocation270_spill] sm:$0xff]  ;;  %v8203_v18 = vld [vmem:[#allocation184_spill] sm:$0xff]  ;;  %v8206_v48 = vld [vmem:[#allocation443_spill] sm:$0xff] }
 0x1f0   :  { %v1450_v5 = vmul.f32 %v8190_v25, %v8190_v25  ;;  %vm8192_vm6 = vcmp.eq.f32.partialorder %v8191_v9, 1.0  ;;  %v1110_v3 = vmul.f32 0.6931472, %v2111_v29  ;;  %v1639_v11 = vmul.f32 %v1543_v13, %v1106_v30  ;;  %v2115_v51 = vpop.eup %2114  ;;  %v8200_v47 = vld [vmem:[#allocation442_spill] sm:$0xff]  ;;  %v8201_v29 = vld [vmem:[#allocation396_spill] sm:$0xff]  ;;  %v8209_v55 = vld [vmem:[#allocation73_spill] sm:$0xff] }
 0x1f1   :  { %v1544_v52 = vsel %vm8192_vm6, %v1448_v33, %v1352_v39  ;;  %v1733_v21 = vadd.f32 %v1732_v22, %v1637_v35  ;;  %v1831_v42 = vadd.f32 %v8193_v43, %v1830_v14  ;;  %2124 = vlog2.f32 %v8194_v20  ;;  %v8199_v33 = vld [vmem:[#allocation271_spill] sm:$0xff]  ;;  %v8207_v14 = vld [vmem:[#allocation397_spill] sm:$0xff]  ;;  %v8214_v43 = vld [vmem:[#allocation398_spill] sm:$0xff] }
 0x1f2   :  { %v1355_v41 = vmul.f32 %v5302_v1, %v8195_v24  ;;  %v1451_v38 = vmul.f32 %v8196_v16, %v8196_v16  ;;  %vm8198_vm10 = vcmp.eq.f32.partialorder %v8197_v12, 1.0  ;;  %v1112_v0 = vmul.f32 0.6931472, %v2113_v36  ;;  %v2117_v35 = vpop.eup %2116  ;;  %v8208_v36 = vld [vmem:[#allocation187_spill] sm:$0xff]  ;;  %v8210_v53 = vld [vmem:[#allocation185_spill] sm:$0xff]  ;;  %v8216_v20 = vld [vmem:[#allocation74_spill] sm:$0xff] }
 0x1f3   :  { %v1545_v56 = vsel %vm8198_vm10, %v1449_v32, %v1353_v40  ;;  %v1640_v7 = vmul.f32 %v1544_v52, %v1108_v60  ;;  %v1734_v39 = vadd.f32 %v1733_v21, %v1638_v10  ;;  %v1832_v30 = vadd.f32 %v8199_v33, %v1831_v42  ;;  %v8205_v32 = vld [vmem:[#allocation272_spill] sm:$0xff]  ;;  %v8217_v16 = vld [vmem:[#allocation186_spill] sm:$0xff]  ;;  %v8220_v33 = vld [vmem:[#allocation445_spill] sm:$0xff] }
 0x1f4   :  { %2126 = vlog2.f32 %v8200_v47  ;;  %v1356_v62 = vmul.f32 %v5306_v44, %v8201_v29  ;;  %v1452_v1 = vmul.f32 %v8202_v23, %v8202_v23  ;;  %vm8204_vm0 = vcmp.eq.f32.partialorder %v8203_v18, 1.0  ;;  %v8213_v21 = vld [vmem:[#allocation444_spill] sm:$0xff]  ;;  %v8223_v29 = vld [vmem:[#allocation75_spill] sm:$0xff] }
 0x1f5   :  { %v1546_v4 = vsel %vm8204_vm0, %v1450_v5, %v1354_v63  ;;  %v1114_v13 = vmul.f32 0.6931472, %v2115_v51  ;;  %v1641_v22 = vmul.f32 %v1545_v56, %v1110_v3  ;;  %v1735_v40 = vadd.f32 %v1734_v39, %v1639_v11  ;;  %v2119_v10 = vpop.eup %2118  ;;  %v8212_v5 = vld [vmem:[#allocation273_spill] sm:$0xff]  ;;  %v8215_v42 = vld [vmem:[#allocation24_spill] sm:$0xff] }
 0x1f6   :  { %v1833_v60 = vadd.f32 %v8205_v32, %v1832_v30  ;;  %2128 = vlog2.f32 %v8206_v48  ;;  %v1357_v26 = vmul.f32 %v8208_v36, %v8207_v14  ;;  %v1453_v44 = vmul.f32 %v8209_v55, %v8209_v55  ;;  %v8221_v30 = vld [vmem:[#allocation399_spill] sm:$0xff]  ;;  %v8224_v18 = vld [vmem:[#allocation188_spill] sm:$0xff] }
 0x1f7   :  { %vm8211_vm6 = vcmp.eq.f32.partialorder %v8210_v53, 1.0  ;;  %v1116_v9 = vmul.f32 0.6931472, %v2117_v35  ;;  %v1642_v52 = vmul.f32 %v1546_v4, %v1112_v0  ;;  %v1736_v63 = vadd.f32 %v1735_v40, %v1640_v7  ;;  %v2121_v11 = vpop.eup %2120  ;;  %v8222_v35 = vld [vmem:[#allocation25_spill] sm:$0xff]  ;;  %v8229_v48 = vld [vmem:[#allocation519_spill] sm:$0xff]  ;;  %v8230_v36 = vld [vmem:[#allocation76_spill] sm:$0xff] }
 0x1f8   :  { %v1547_v25 = vsel %vm8211_vm6, %v1451_v38, %v1355_v41  ;;  %v1834_v3 = vadd.f32 %v8212_v5, %v1833_v60  ;;  %2130 = vlog2.f32 %v8213_v21  ;;  %v1358_v51 = vmul.f32 %v8215_v42, %v8214_v43  ;;  %v8219_v38 = vld [vmem:[#allocation274_spill] sm:$0xff]  ;;  %v8231_v53 = vld [vmem:[#allocation189_spill] sm:$0xff] }
 0x1f9   :  { %v1454_v24 = vmul.f32 %v8216_v20, %v8216_v20  ;;  %vm8218_vm10 = vcmp.eq.f32.partialorder %v8217_v16, 1.0  ;;  %v1118_v56 = vmul.f32 0.6931472, %v2119_v10  ;;  %v1643_v39 = vmul.f32 %v1547_v25, %v1114_v13  ;;  %v2123_v7 = vpop.eup %2122  ;;  %v8227_v60 = vld [vmem:[#allocation446_spill] sm:$0xff]  ;;  %v8228_v10 = vld [vmem:[#allocation400_spill] sm:$0xff]  ;;  %v8237_v42 = vld [vmem:[#allocation77_spill] sm:$0xff] }
 0x1fa   :  { %v1548_v12 = vsel %vm8218_vm10, %v1452_v1, %v1356_v62  ;;  %v1737_v41 = vadd.f32 %v1736_v63, %v1641_v22  ;;  %v1835_v0 = vadd.f32 %v8219_v38, %v1834_v3  ;;  %2132 = vlog2.f32 %v8220_v33  ;;  %v8226_v1 = vld [vmem:[#allocation275_spill] sm:$0xff]  ;;  %v8236_v21 = vld [vmem:[#allocation26_spill] sm:$0xff]  ;;  %v8243_v33 = vld [vmem:[#allocation520_spill] sm:$0xff] }
 0x1fb   :  { %v1359_v47 = vmul.f32 %v8222_v35, %v8221_v30  ;;  %v1455_v23 = vmul.f32 %v8223_v29, %v8223_v29  ;;  %vm8225_vm0 = vcmp.eq.f32.partialorder %v8224_v18, 1.0  ;;  %v1120_v40 = vmul.f32 0.6931472, %v2121_v11  ;;  %v2125_v22 = vpop.eup %2124  ;;  %v8234_v3 = vld [vmem:[#allocation447_spill] sm:$0xff]  ;;  %v8235_v11 = vld [vmem:[#allocation401_spill] sm:$0xff]  ;;  %v8238_v16 = vld [vmem:[#allocation190_spill] sm:$0xff] }
 0x1fc   :  { %v1549_v4 = vsel %vm8225_vm0, %v1453_v44, %v1357_v26  ;;  %v1644_v32 = vmul.f32 %v1548_v12, %v1116_v9  ;;  %v1738_v62 = vadd.f32 %v1737_v41, %v1642_v52  ;;  %v1836_v13 = vadd.f32 %v8226_v1, %v1835_v0  ;;  %v8233_v44 = vld [vmem:[#allocation276_spill] sm:$0xff]  ;;  %v8244_v35 = vld [vmem:[#allocation78_spill] sm:$0xff]  ;;  %v8245_v18 = vld [vmem:[#allocation191_spill] sm:$0xff] }
 0x1fd   :  { %2134 = vlog2.f32 %v8227_v60  ;;  %v1360_v14 = vmul.f32 %v8229_v48, %v8228_v10  ;;  %v1456_v55 = vmul.f32 %v8230_v36, %v8230_v36  ;;  %vm8232_vm6 = vcmp.eq.f32.partialorder %v8231_v53, 1.0  ;;  %v8241_v0 = vld [vmem:[#allocation448_spill] sm:$0xff]  ;;  %v8250_v60 = vld [vmem:[#allocation326_spill] sm:$0xff]  ;;  %v8251_v48 = vld [vmem:[#allocation79_spill] sm:$0xff] }
 0x1fe   :  { %v1550_v25 = vsel %vm8232_vm6, %v1454_v24, %v1358_v51  ;;  %v1122_v63 = vmul.f32 0.6931472, %v2123_v7  ;;  %v1645_v5 = vmul.f32 %v1549_v4, %v1118_v56  ;;  %v1739_v26 = vadd.f32 %v1738_v62, %v1643_v39  ;;  %v2127_v52 = vpop.eup %2126  ;;  %v8240_v24 = vld [vmem:[#allocation277_spill] sm:$0xff]  ;;  %v8242_v7 = vld [vmem:[#allocation402_spill] sm:$0xff]  ;;  %v8252_v53 = vld [vmem:[#allocation192_spill] sm:$0xff] }
 0x1ff   :  { %v1837_v9 = vadd.f32 %v8233_v44, %v1836_v13  ;;  %2136 = vlog2.f32 %v8234_v3  ;;  %v1361_v43 = vmul.f32 %v8236_v21, %v8235_v11  ;;  %v1457_v20 = vmul.f32 %v8237_v42, %v8237_v42  ;;  %v8248_v13 = vld [vmem:[#allocation449_spill] sm:$0xff]  ;;  %v8257_v3 = vld [vmem:[#allocation14_spill] sm:$0xff]  ;;  %v8258_v21 = vld [vmem:[#allocation80_spill] sm:$0xff] }
 0x200   :  { %vm8239_vm10 = vcmp.eq.f32.partialorder %v8238_v16, 1.0  ;;  %v1124_v41 = vmul.f32 0.6931472, %v2125_v22  ;;  %v1646_v38 = vmul.f32 %v1550_v25, %v1120_v40  ;;  %v1740_v51 = vadd.f32 %v1739_v26, %v1644_v32  ;;  %v2129_v39 = vpop.eup %2128  ;;  %v8249_v22 = vld [vmem:[#allocation403_spill] sm:$0xff]  ;;  %v8259_v16 = vld [vmem:[#allocation193_spill] sm:$0xff] }
 0x201   :  { %v1551_v12 = vsel %vm8239_vm10, %v1455_v23, %v1359_v47  ;;  %v1838_v56 = vadd.f32 %v8240_v24, %v1837_v9  ;;  %2138 = vlog2.f32 %v8241_v0  ;;  %v1362_v30 = vmul.f32 %v8243_v33, %v8242_v7  ;;  %v8247_v23 = vld [vmem:[#allocation278_spill] sm:$0xff]  ;;  %v8264_v0 = vld [vmem:[#allocation15_spill] sm:$0xff]  ;;  %v8265_v33 = vld [vmem:[#allocation81_spill] sm:$0xff] }
 0x202   :  { %v1458_v29 = vmul.f32 %v8244_v35, %v8244_v35  ;;  %vm8246_vm0 = vcmp.eq.f32.partialorder %v8245_v18, 1.0  ;;  %v1126_v62 = vmul.f32 0.6931472, %v2127_v52  ;;  %v1647_v1 = vmul.f32 %v1551_v12, %v1122_v63  ;;  %v2131_v32 = vpop.eup %2130  ;;  %v8255_v9 = vld [vmem:[#allocation450_spill] sm:$0xff]  ;;  %v8256_v52 = vld [vmem:[#allocation404_spill] sm:$0xff] }
 0x203   :  { %v1552_v4 = vsel %vm8246_vm0, %v1456_v55, %v1360_v14  ;;  %v1741_v47 = vadd.f32 %v1740_v51, %v1645_v5  ;;  %v1839_v40 = vadd.f32 %v8247_v23, %v1838_v56  ;;  %2140 = vlog2.f32 %v8248_v13  ;;  %v8254_v55 = vld [vmem:[#allocation279_spill] sm:$0xff]  ;;  %v8266_v18 = vld [vmem:[#allocation194_spill] sm:$0xff] }
 0x204   :  { %v1363_v10 = vmul.f32 %v8250_v60, %v8249_v22  ;;  %v1459_v36 = vmul.f32 %v8251_v48, %v8251_v48  ;;  %vm8253_vm6 = vcmp.eq.f32.partialorder %v8252_v53, 1.0  ;;  %v1128_v26 = vmul.f32 0.6931472, %v2129_v39  ;;  %v2133_v5 = vpop.eup %2132  ;;  %v8262_v56 = vld [vmem:[#allocation451_spill] sm:$0xff]  ;;  %v8263_v39 = vld [vmem:[#allocation405_spill] sm:$0xff]  ;;  %v8271_v13 = vld [vmem:[#allocation30_spill] sm:$0xff] }
 0x205   :  { %v1553_v25 = vsel %vm8253_vm6, %v1457_v20, %v1361_v43  ;;  %v1648_v44 = vmul.f32 %v1552_v4, %v1124_v41  ;;  %v1742_v14 = vadd.f32 %v1741_v47, %v1646_v38  ;;  %v1840_v63 = vadd.f32 %v8254_v55, %v1839_v40  ;;  %v8261_v20 = vld [vmem:[#allocation280_spill] sm:$0xff]  ;;  %v8272_v60 = vld [vmem:[#allocation82_spill] sm:$0xff]  ;;  %v8273_v53 = vld [vmem:[#allocation195_spill] sm:$0xff] }
 0x206   :  { %2142 = vlog2.f32 %v8255_v9  ;;  %v1364_v11 = vmul.f32 %v8257_v3, %v8256_v52  ;;  %v1460_v42 = vmul.f32 %v8258_v21, %v8258_v21  ;;  %vm8260_vm10 = vcmp.eq.f32.partialorder %v8259_v16, 1.0  ;;  %v8269_v40 = vld [vmem:[#allocation452_spill] sm:$0xff]  ;;  %v8278_v52 = vld [vmem:[#allocation83_spill] sm:$0xff] }
 0x207   :  { %v1554_v12 = vsel %vm8260_vm10, %v1458_v29, %v1362_v30  ;;  %v1130_v51 = vmul.f32 0.6931472, %v2131_v32  ;;  %v1649_v24 = vmul.f32 %v1553_v25, %v1126_v62  ;;  %v1743_v43 = vadd.f32 %v1742_v14, %v1647_v1  ;;  %v2135_v38 = vpop.eup %2134  ;;  %v8268_v29 = vld [vmem:[#allocation281_spill] sm:$0xff]  ;;  %v8270_v32 = vld [vmem:[#allocation406_spill] sm:$0xff] }
 0x208   :  { %v1841_v41 = vadd.f32 %v8261_v20, %v1840_v63  ;;  %2144 = vlog2.f32 %v8262_v56  ;;  %v1365_v7 = vmul.f32 %v8264_v0, %v8263_v39  ;;  %v1461_v35 = vmul.f32 %v8265_v33, %v8265_v33  ;;  %v8276_v63 = vld [vmem:[#allocation453_spill] sm:$0xff]  ;;  %v8281_v20 = vld [vmem:[#allocation454_spill] sm:$0xff]  ;;  %v8283_v56 = vld [vmem:[#allocation84_spill] sm:$0xff] }
 0x209   :  { %vm8267_vm0 = vcmp.eq.f32.partialorder %v8266_v18, 1.0  ;;  %v1132_v47 = vmul.f32 0.6931472, %v2133_v5  ;;  %v1650_v23 = vmul.f32 %v1554_v12, %v1128_v26  ;;  %v1744_v30 = vadd.f32 %v1743_v43, %v1648_v44  ;;  %v2137_v1 = vpop.eup %2136  ;;  %v8277_v5 = vld [vmem:[#allocation407_spill] sm:$0xff]  ;;  %v8284_v39 = vld [vmem:[#allocation197_spill] sm:$0xff] }
 0x20a   :  { %v1555_v4 = vsel %vm8267_vm0, %v1459_v36, %v1363_v10  ;;  %v1842_v62 = vadd.f32 %v8268_v29, %v1841_v41  ;;  %2146 = vlog2.f32 %v8269_v40  ;;  %v1366_v22 = vmul.f32 %v8271_v13, %v8270_v32  ;;  %v8275_v36 = vld [vmem:[#allocation282_spill] sm:$0xff]  ;;  %v8289_v29 = vld [vmem:[#allocation31_spill] sm:$0xff] }
 0x20b   :  { %v1462_v48 = vmul.f32 %v8272_v60, %v8272_v60  ;;  %vm8274_vm6 = vcmp.eq.f32.partialorder %v8273_v53, 1.0  ;;  %v1134_v14 = vmul.f32 0.6931472, %v2135_v38  ;;  %v1651_v55 = vmul.f32 %v1555_v4, %v1130_v51  ;;  %v2139_v44 = vpop.eup %2138  ;;  %v8282_v41 = vld [vmem:[#allocation342_spill] sm:$0xff] }
 0x20c   :  { %v1556_v25 = vsel %vm8274_vm6, %v1460_v42, %v1364_v11  ;;  %v1745_v10 = vadd.f32 %v1744_v30, %v1649_v24  ;;  %v1843_v26 = vadd.f32 %v8275_v36, %v1842_v62  ;;  %2148 = vlog2.f32 %v8276_v63  ;;  %v8280_v42 = vld [vmem:[#allocation283_spill] sm:$0xff]  ;;  %v8291_v40 = vld [vmem:[#allocation198_spill] sm:$0xff] }
 0x20d   :  { %v1367_v9 = vmul.f32 %v5378_v57, %v8277_v5  ;;  %v1463_v3 = vmul.f32 %v8278_v52, %v8278_v52  ;;  %v1557_v16 = vsel %vm309_vm8, %v1461_v35, %v1365_v7  ;;  %v1136_v12 = vmul.f32 0.6931472, %v2137_v1  ;;  %v2141_v24 = vpop.eup %2140  ;;  %v8286_v35 = vld [vmem:[#allocation284_spill] sm:$0xff]  ;;  %v8288_v30 = vld [vmem:[#allocation343_spill] sm:$0xff]  ;;  %v8290_v1 = vld [vmem:[#allocation85_spill] sm:$0xff] }
 0x20e   :  { %v1652_v43 = vmul.f32 %v1556_v25, %v1132_v47  ;;  %v1746_v11 = vadd.f32 %v1745_v10, %v1650_v23  ;;  %v1844_v51 = vadd.f32 %v8280_v42, %v1843_v26  ;;  %2150 = vlog2.f32 %v8281_v20  ;;  %v8287_v23 = vld [vmem:[#allocation455_spill] sm:$0xff]  ;;  %v8296_v36 = vld [vmem:[#allocation86_spill] sm:$0xff] }
 0x20f   :  { %v1368_v38 = vmul.f32 %v5393_v50, %v8282_v41  ;;  %v1464_v57 = vmul.f32 %v8283_v56, %v8283_v56  ;;  %vm8285_vm10 = vcmp.eq.f32.partialorder %v8284_v39, 1.0  ;;  %v1138_v33 = vmul.f32 0.6931472, %v2139_v44  ;;  %v8297_v44 = vld [vmem:[#allocation199_spill] sm:$0xff] }
 0x210   :  { %v1558_v0 = vsel %vm8285_vm10, %v1462_v48, %v1366_v22  ;;  %v1653_v18 = vmul.f32 %v1557_v16, %v1134_v14  ;;  %v1747_v7 = vadd.f32 %v1746_v11, %v1651_v55  ;;  %v1845_v4 = vadd.f32 %v8286_v35, %v1844_v51  ;;  %v2143_v47 = vpop.eup %2142  ;;  %v8293_v48 = vld [vmem:[#allocation285_spill] sm:$0xff]  ;;  %v8294_v14 = vld [vmem:[#allocation456_spill] sm:$0xff]  ;;  %v8302_v11 = vld [vmem:[#allocation327_spill] sm:$0xff] }
 0x211   :  { %2152 = vlog2.f32 %v8287_v23  ;;  %v1369_v62 = vmul.f32 %v8289_v29, %v8288_v30  ;;  %v1465_v50 = vmul.f32 %v8290_v1, %v8290_v1  ;;  %vm8292_vm8 = vcmp.eq.f32.partialorder %v8291_v40, 1.0  ;;  %v8295_v55 = vld [vmem:[#allocation344_spill] sm:$0xff]  ;;  %v8303_v51 = vld [vmem:[#allocation87_spill] sm:$0xff]  ;;  %v8311_v23 = vld [vmem:[#allocation205_spill] sm:$0xff] }
 0x212   :  { %v1559_v32 = vsel %vm8292_vm8, %v1463_v3, %v1367_v9  ;;  %v1140_v13 = vmul.f32 0.6931472, %v2141_v24  ;;  %v1654_v60 = vmul.f32 %v1558_v0, %v1136_v12  ;;  %v1748_v22 = vadd.f32 %v1747_v7, %v1652_v43  ;;  %v2145_v25 = vpop.eup %2144  ;;  %v8299_v3 = vld [vmem:[#allocation286_spill] sm:$0xff]  ;;  %v8301_v43 = vld [vmem:[#allocation345_spill] sm:$0xff]  ;;  %v8304_v24 = vld [vmem:[#allocation204_spill] sm:$0xff] }
 0x213   :  { %v1846_v53 = vadd.f32 %v8293_v48, %v1845_v4  ;;  %2154 = vlog2.f32 %v8294_v14  ;;  %v1370_v10 = vmul.f32 %v5401_v15, %v8295_v55  ;;  %v1466_v26 = vmul.f32 %v8296_v36, %v8296_v36  ;;  %v8300_v12 = vld [vmem:[#allocation458_spill] sm:$0xff]  ;;  %v8309_v7 = vld [vmem:[#allocation16_spill] sm:$0xff] }
 0x214   :  { %vm8298_vm0 = vcmp.eq.f32.partialorder %v8297_v44, 1.0  ;;  %v1142_v5 = vmul.f32 0.6931472, %v2143_v47  ;;  %v1655_v52 = vmul.f32 %v1559_v32, %v1138_v33  ;;  %v1749_v9 = vadd.f32 %v1748_v22, %v1653_v18  ;;  %v2147_v16 = vpop.eup %2146  ;;  %v8307_v33 = vld [vmem:[#allocation460_spill] sm:$0xff]  ;;  %v8308_v18 = vld [vmem:[#allocation346_spill] sm:$0xff] }
 0x215   :  { %v1560_v63 = vsel %vm8298_vm0, %v1464_v57, %v1368_v38  ;;  %v1847_v21 = vadd.f32 %v8299_v3, %v1846_v53  ;;  %2156 = vlog2.f32 %v8300_v12  ;;  %v1371_v42 = vmul.f32 %v8302_v11, %v8301_v43  ;;  %v8306_v57 = vld [vmem:[#allocation287_spill] sm:$0xff]  ;;  %v8310_v4 = vld [vmem:[#allocation88_spill] sm:$0xff]  ;;  %v8317_v53 = vld [vmem:[#allocation89_spill] sm:$0xff] }
 0x216   :  { %v1467_v15 = vmul.f32 %v8303_v51, %v8303_v51  ;;  %vm8305_vm6 = vcmp.eq.f32.partialorder %v8304_v24, 1.0  ;;  %v1144_v41 = vmul.f32 0.6931472, %v2145_v25  ;;  %v1656_v56 = vmul.f32 %v1560_v63, %v1140_v13  ;;  %v2149_v0 = vpop.eup %2148  ;;  %v8314_v13 = vld [vmem:[#allocation462_spill] sm:$0xff]  ;;  %v8316_v22 = vld [vmem:[#allocation32_spill] sm:$0xff]  ;;  %v8323_v3 = vld [vmem:[#allocation17_spill] sm:$0xff] }
 0x217   :  { %v1561_v20 = vsel %vm8305_vm6, %v1465_v50, %v1369_v62  ;;  %v1750_v38 = vadd.f32 %v1749_v9, %v1654_v60  ;;  %v1848_v39 = vadd.f32 %v8306_v57, %v1847_v21  ;;  %2158 = vlog2.f32 %v8307_v33  ;;  %v8313_v50 = vld [vmem:[#allocation288_spill] sm:$0xff]  ;;  %v8315_v60 = vld [vmem:[#allocation347_spill] sm:$0xff]  ;;  %v8318_v14 = vld [vmem:[#allocation206_spill] sm:$0xff] }
 0x218   :  { %v1372_v35 = vmul.f32 %v8309_v7, %v8308_v18  ;;  %v1468_v47 = vmul.f32 %v8310_v4, %v8310_v4  ;;  %vm8312_vm10 = vcmp.eq.f32.partialorder %v8311_v23, 1.0  ;;  %v1146_v29 = vmul.f32 0.6931472, %v2147_v16  ;;  %v2151_v32 = vpop.eup %2150  ;;  %v8322_v9 = vld [vmem:[#allocation348_spill] sm:$0xff]  ;;  %v8324_v16 = vld [vmem:[#allocation90_spill] sm:$0xff]  ;;  %v8325_v43 = vld [vmem:[#allocation207_spill] sm:$0xff] }
 0x219   :  { %v1562_v30 = vsel %vm8312_vm10, %v1466_v26, %v1370_v10  ;;  %v1657_v1 = vmul.f32 %v1561_v20, %v1142_v5  ;;  %v1751_v62 = vadd.f32 %v1750_v38, %v1655_v52  ;;  %v1849_v40 = vadd.f32 %v8313_v50, %v1848_v39  ;;  %v8320_v26 = vld [vmem:[#allocation289_spill] sm:$0xff]  ;;  %v8321_v52 = vld [vmem:[#allocation464_spill] sm:$0xff]  ;;  %v8330_v57 = vld [vmem:[#allocation107_spill] sm:$0xff] }
 0x21a   :  { %2160 = vlog2.f32 %v8314_v13  ;;  %v1373_v48 = vmul.f32 %v8316_v22, %v8315_v60  ;;  %v1469_v25 = vmul.f32 %v8317_v53, %v8317_v53  ;;  %vm8319_vm8 = vcmp.eq.f32.partialorder %v8318_v14, 1.0  ;;  %v8329_v38 = vld [vmem:[#allocation349_spill] sm:$0xff]  ;;  %v8332_v18 = vld [vmem:[#allocation212_spill] sm:$0xff]  ;;  %v8337_v50 = vld [vmem:[#allocation111_spill] sm:$0xff] }
 0x21b   :  { %v1563_v55 = vsel %vm8319_vm8, %v1467_v15, %v1371_v42  ;;  %v1148_v36 = vmul.f32 0.6931472, %v2149_v0  ;;  %v1658_v44 = vmul.f32 %v1562_v30, %v1144_v41  ;;  %v1752_v10 = vadd.f32 %v1751_v62, %v1656_v56  ;;  %v2153_v5 = vpop.eup %2152  ;;  %v8327_v15 = vld [vmem:[#allocation290_spill] sm:$0xff]  ;;  %v8331_v0 = vld [vmem:[#allocation91_spill] sm:$0xff]  ;;  %v8339_v60 = vld [vmem:[#allocation213_spill] sm:$0xff] }
 0x21c   :  { %v1850_v63 = vadd.f32 %v8320_v26, %v1849_v40  ;;  %2162 = vlog2.f32 %v8321_v52  ;;  %v1374_v21 = vmul.f32 %v8323_v3, %v8322_v9  ;;  %v1470_v12 = vmul.f32 %v8324_v16, %v8324_v16  ;;  %v8328_v56 = vld [vmem:[#allocation466_spill] sm:$0xff]  ;;  %v8344_v26 = vld [vmem:[#allocation36_spill] sm:$0xff] }
 0x21d   :  { %vm8326_vm0 = vcmp.eq.f32.partialorder %v8325_v43, 1.0  ;;  %v1150_v51 = vmul.f32 0.6931472, %v2151_v32  ;;  %v1659_v24 = vmul.f32 %v1563_v55, %v1146_v29  ;;  %v1753_v42 = vadd.f32 %v1752_v10, %v1657_v1  ;;  %v2155_v41 = vpop.eup %2154  ;;  %v8335_v1 = vld [vmem:[#allocation468_spill] sm:$0xff]  ;;  %v8336_v62 = vld [vmem:[#allocation350_spill] sm:$0xff]  ;;  %v8343_v10 = vld [vmem:[#allocation351_spill] sm:$0xff] }
 0x21e   :  { %v1564_v11 = vsel %vm8326_vm0, %v1468_v47, %v1372_v35  ;;  %v1851_v20 = vadd.f32 %v8327_v15, %v1850_v63  ;;  %2164 = vlog2.f32 %v8328_v56  ;;  %v1375_v39 = vmul.f32 %v8330_v57, %v8329_v38  ;;  %v8334_v47 = vld [vmem:[#allocation291_spill] sm:$0xff]  ;;  %v8338_v32 = vld [vmem:[#allocation92_spill] sm:$0xff]  ;;  %v8346_v9 = vld [vmem:[#allocation214_spill] sm:$0xff] }
 0x21f   :  { %v1471_v33 = vmul.f32 %v8331_v0, %v8331_v0  ;;  %vm8333_vm6 = vcmp.eq.f32.partialorder %v8332_v18, 1.0  ;;  %v1152_v4 = vmul.f32 0.6931472, %v2153_v5  ;;  %v1660_v23 = vmul.f32 %v1564_v11, %v1148_v36  ;;  %v2157_v29 = vpop.eup %2156  ;;  %v8345_v5 = vld [vmem:[#allocation93_spill] sm:$0xff]  ;;  %v8351_v15 = vld [vmem:[#allocation328_spill] sm:$0xff]  ;;  %v8353_v38 = vld [vmem:[#allocation215_spill] sm:$0xff] }
 0x220   :  { %v1565_v7 = vsel %vm8333_vm6, %v1469_v25, %v1373_v48  ;;  %v1754_v35 = vadd.f32 %v1753_v42, %v1658_v44  ;;  %v1852_v30 = vadd.f32 %v8334_v47, %v1851_v20  ;;  %2166 = vlog2.f32 %v8335_v1  ;;  %v8341_v25 = vld [vmem:[#allocation292_spill] sm:$0xff]  ;;  %v8342_v44 = vld [vmem:[#allocation470_spill] sm:$0xff] }
 0x221   :  { %v1376_v40 = vmul.f32 %v8337_v50, %v8336_v62  ;;  %v1472_v13 = vmul.f32 %v8338_v32, %v8338_v32  ;;  %vm8340_vm10 = vcmp.eq.f32.partialorder %v8339_v60, 1.0  ;;  %v1154_v53 = vmul.f32 0.6931472, %v2155_v41  ;;  %v2159_v36 = vpop.eup %2158  ;;  %v8350_v42 = vld [vmem:[#allocation352_spill] sm:$0xff]  ;;  %v8352_v41 = vld [vmem:[#allocation94_spill] sm:$0xff] }
 0x222   :  { %v1566_v22 = vsel %vm8340_vm10, %v1470_v12, %v1374_v21  ;;  %v1661_v14 = vmul.f32 %v1565_v7, %v1150_v51  ;;  %v1755_v48 = vadd.f32 %v1754_v35, %v1659_v24  ;;  %v1853_v55 = vadd.f32 %v8341_v25, %v1852_v30  ;;  %v8348_v12 = vld [vmem:[#allocation293_spill] sm:$0xff]  ;;  %v8349_v24 = vld [vmem:[#allocation472_spill] sm:$0xff]  ;;  %v8358_v30 = vld [vmem:[#allocation95_spill] sm:$0xff] }
 0x223   :  { %2168 = vlog2.f32 %v8342_v44  ;;  %v1377_v63 = vmul.f32 %v8344_v26, %v8343_v10  ;;  %v1473_v52 = vmul.f32 %v8345_v5, %v8345_v5  ;;  %vm8347_vm8 = vcmp.eq.f32.partialorder %v8346_v9, 1.0  ;;  %v8357_v35 = vld [vmem:[#allocation353_spill] sm:$0xff]  ;;  %v8359_v1 = vld [vmem:[#allocation220_spill] sm:$0xff] }
 0x224   :  { %v1567_v3 = vsel %vm8347_vm8, %v1471_v33, %v1375_v39  ;;  %v1156_v16 = vmul.f32 0.6931472, %v2157_v29  ;;  %v1662_v43 = vmul.f32 %v1566_v22, %v1152_v4  ;;  %v1756_v21 = vadd.f32 %v1755_v48, %v1660_v23  ;;  %v2161_v51 = vpop.eup %2160  ;;  %v8355_v33 = vld [vmem:[#allocation294_spill] sm:$0xff]  ;;  %v8368_v5 = vld [vmem:[#allocation296_spill] sm:$0xff] }
 0x225   :  { %v1854_v11 = vadd.f32 %v8348_v12, %v1853_v55  ;;  %2170 = vlog2.f32 %v8349_v24  ;;  %v1378_v20 = vmul.f32 %v8351_v15, %v8350_v42  ;;  %v1474_v56 = vmul.f32 %v8352_v41, %v8352_v41  ;;  %v8356_v23 = vld [vmem:[#allocation474_spill] sm:$0xff]  ;;  %v8365_v55 = vld [vmem:[#allocation96_spill] sm:$0xff] }
 0x226   :  { %vm8354_vm0 = vcmp.eq.f32.partialorder %v8353_v38, 1.0  ;;  %v1158_v0 = vmul.f32 0.6931472, %v2159_v36  ;;  %v1663_v18 = vmul.f32 %v1567_v3, %v1154_v53  ;;  %v1757_v39 = vadd.f32 %v1756_v21, %v1661_v14  ;;  %v2163_v4 = vpop.eup %2162  ;;  %v8362_v53 = vld [vmem:[#allocation476_spill] sm:$0xff]  ;;  %v8363_v14 = vld [vmem:[#allocation354_spill] sm:$0xff]  ;;  %v8366_v36 = vld [vmem:[#allocation221_spill] sm:$0xff] }
 0x227   :  { %v1568_v57 = vsel %vm8354_vm0, %v1472_v13, %v1376_v40  ;;  %v1855_v7 = vadd.f32 %v8355_v33, %v1854_v11  ;;  %2172 = vlog2.f32 %v8356_v23  ;;  %v1379_v47 = vmul.f32 %v5532_v45, %v8357_v35  ;;  %v8361_v13 = vld [vmem:[#allocation295_spill] sm:$0xff]  ;;  %v8364_v48 = vld [vmem:[#allocation18_spill] sm:$0xff]  ;;  %v8371_v21 = vld [vmem:[#allocation97_spill] sm:$0xff] }
 0x228   :  { %v1475_v29 = vmul.f32 %v8358_v30, %v8358_v30  ;;  %vm8360_vm6 = vcmp.eq.f32.partialorder %v8359_v1, 1.0  ;;  %v1160_v50 = vmul.f32 0.6931472, %v2161_v51  ;;  %v1664_v32 = vmul.f32 %v1568_v57, %v1156_v16  ;;  %v2165_v22 = vpop.eup %2164  ;;  %v8369_v3 = vld [vmem:[#allocation478_spill] sm:$0xff]  ;;  %v8370_v16 = vld [vmem:[#allocation355_spill] sm:$0xff]  ;;  %v8375_v38 = vld [vmem:[#allocation480_spill] sm:$0xff] }
 0x229   :  { %v1569_v62 = vsel %vm8360_vm6, %v1473_v52, %v1377_v63  ;;  %v1758_v40 = vadd.f32 %v1757_v39, %v1662_v43  ;;  %v1856_v60 = vadd.f32 %v8361_v13, %v1855_v7  ;;  %2174 = vlog2.f32 %v8362_v53  ;;  %v8372_v11 = vld [vmem:[#allocation222_spill] sm:$0xff]  ;;  %v8376_v57 = vld [vmem:[#allocation356_spill] sm:$0xff]  ;;  %v8379_v33 = vld [vmem:[#allocation223_spill] sm:$0xff] }
 0x22a   :  { %v1380_v25 = vmul.f32 %v8364_v48, %v8363_v14  ;;  %v1476_v45 = vmul.f32 %v8365_v55, %v8365_v55  ;;  %vm8367_vm10 = vcmp.eq.f32.partialorder %v8366_v36, 1.0  ;;  %v1162_v10 = vmul.f32 0.6931472, %v2163_v4  ;;  %v2167_v9 = vpop.eup %2166  ;;  %v8378_v39 = vld [vmem:[#allocation98_spill] sm:$0xff]  ;;  %v8386_v48 = vld [vmem:[#allocation299_spill] sm:$0xff] }
 0x22b   :  { %v1570_v44 = vsel %vm8367_vm10, %v1474_v56, %v1378_v20  ;;  %v1665_v26 = vmul.f32 %v1569_v62, %v1158_v0  ;;  %v1759_v63 = vadd.f32 %v1758_v40, %v1663_v18  ;;  %v1857_v52 = vadd.f32 %v8368_v5, %v1856_v60  ;;  %v8374_v20 = vld [vmem:[#allocation297_spill] sm:$0xff]  ;;  %v8377_v0 = vld [vmem:[#allocation115_spill] sm:$0xff]  ;;  %v8382_v1 = vld [vmem:[#allocation482_spill] sm:$0xff] }
 0x22c   :  { %2176 = vlog2.f32 %v8369_v3  ;;  %v1381_v43 = vmul.f32 %v5562_v31, %v8370_v16  ;;  %v1477_v12 = vmul.f32 %v8371_v21, %v8371_v21  ;;  %vm8373_vm8 = vcmp.eq.f32.partialorder %v8372_v11, 1.0  ;;  %v8383_v62 = vld [vmem:[#allocation357_spill] sm:$0xff]  ;;  %v8388_v36 = vld [vmem:[#allocation358_spill] sm:$0xff]  ;;  %v8393_v16 = vld [vmem:[#allocation300_spill] sm:$0xff] }
 0x22d   :  { %v1571_v51 = vsel %vm8373_vm8, %v1475_v29, %v1379_v47  ;;  %v1164_v24 = vmul.f32 0.6931472, %v2165_v22  ;;  %v1666_v42 = vmul.f32 %v1570_v44, %v1160_v50  ;;  %v1760_v15 = vadd.f32 %v1759_v63, %v1664_v32  ;;  %v2169_v56 = vpop.eup %2168  ;;  %v8381_v47 = vld [vmem:[#allocation298_spill] sm:$0xff]  ;;  %v8384_v32 = vld [vmem:[#allocation99_spill] sm:$0xff]  ;;  %v8389_v44 = vld [vmem:[#allocation37_spill] sm:$0xff] }
 0x22e   :  { %v1858_v41 = vadd.f32 %v8374_v20, %v1857_v52  ;;  %2178 = vlog2.f32 %v8375_v38  ;;  %v1382_v18 = vmul.f32 %v8377_v0, %v8376_v57  ;;  %v1478_v31 = vmul.f32 %v8378_v39, %v8378_v39  ;;  %v8391_v63 = vld [vmem:[#allocation229_spill] sm:$0xff]  ;;  %v8395_v11 = vld [vmem:[#allocation359_spill] sm:$0xff]  ;;  %v8400_v39 = vld [vmem:[#allocation488_spill] sm:$0xff] }
 0x22f   :  { %vm8380_vm0 = vcmp.eq.f32.partialorder %v8379_v33, 1.0  ;;  %v1166_v4 = vmul.f32 0.6931472, %v2167_v9  ;;  %v1667_v23 = vmul.f32 %v1571_v51, %v1162_v10  ;;  %v1761_v35 = vadd.f32 %v1760_v15, %v1665_v26  ;;  %v2171_v29 = vpop.eup %2170  ;;  %v8390_v26 = vld [vmem:[#allocation100_spill] sm:$0xff]  ;;  %v8397_v15 = vld [vmem:[#allocation230_spill] sm:$0xff]  ;;  %v8399_v57 = vld [vmem:[#allocation301_spill] sm:$0xff] }
 0x230   :  { %v1572_v7 = vsel %vm8380_vm0, %v1476_v45, %v1380_v25  ;;  %v1859_v30 = vadd.f32 %v8381_v47, %v1858_v41  ;;  %2180 = vlog2.f32 %v8382_v1  ;;  %v1383_v50 = vmul.f32 %v5592_v6, %v8383_v62  ;;  %v8387_v45 = vld [vmem:[#allocation484_spill] sm:$0xff]  ;;  %v8402_v33 = vld [vmem:[#allocation329_spill] sm:$0xff]  ;;  %v8406_v1 = vld [vmem:[#allocation302_spill] sm:$0xff] }
 0x231   :  { %v1479_v40 = vmul.f32 %v8384_v32, %v8384_v32  ;;  %v1573_v60 = vsel %vm325_vm11, %v1477_v12, %v1381_v43  ;;  %v1168_v22 = vmul.f32 0.6931472, %v2169_v56  ;;  %v1668_v53 = vmul.f32 %v1572_v7, %v1164_v24  ;;  %v2173_v55 = vpop.eup %2172  ;;  %v8394_v12 = vld [vmem:[#allocation486_spill] sm:$0xff]  ;;  %v8396_v24 = vld [vmem:[#allocation101_spill] sm:$0xff] }
 0x232   :  { %v1762_v14 = vadd.f32 %v1761_v35, %v1666_v42  ;;  %v1860_v25 = vadd.f32 %v8386_v48, %v1859_v30  ;;  %2182 = vlog2.f32 %v8387_v45  ;;  %v1384_v10 = vmul.f32 %v8389_v44, %v8388_v36  ;;  %v8407_v32 = vld [vmem:[#allocation490_spill] sm:$0xff]  ;;  %v8411_v45 = vld [vmem:[#allocation303_spill] sm:$0xff] }
 0x233   :  { %v1480_v6 = vmul.f32 %v8390_v26, %v8390_v26  ;;  %vm8392_vm6 = vcmp.eq.f32.partialorder %v8391_v63, 1.0  ;;  %v1170_v52 = vmul.f32 0.6931472, %v2171_v29  ;;  %v1669_v9 = vmul.f32 %v1573_v60, %v1166_v4  ;;  %v2175_v21 = vpop.eup %2174  ;;  %v8403_v4 = vld [vmem:[#allocation102_spill] sm:$0xff]  ;;  %v8409_v60 = vld [vmem:[#allocation103_spill] sm:$0xff] }
 0x234   :  { %v1574_v5 = vsel %vm8392_vm6, %v1478_v31, %v1382_v18  ;;  %v1763_v3 = vadd.f32 %v1762_v14, %v1667_v23  ;;  %v1861_v43 = vadd.f32 %v8393_v16, %v1860_v25  ;;  %2184 = vlog2.f32 %v8394_v12  ;;  %v8401_v31 = vld [vmem:[#allocation408_spill] sm:$0xff]  ;;  %v8404_v23 = vld [vmem:[#allocation231_spill] sm:$0xff]  ;;  %v8413_v26 = vld [vmem:[#allocation410_spill] sm:$0xff] }
 0x235   :  { %v1385_v51 = vmul.f32 %v5622_v8, %v8395_v11  ;;  %v1481_v42 = vmul.f32 %v8396_v24, %v8396_v24  ;;  %vm8398_vm11 = vcmp.eq.f32.partialorder %v8397_v15, 1.0  ;;  %v1172_v41 = vmul.f32 0.6931472, %v2173_v55  ;;  %v8419_v24 = vld [vmem:[#allocation360_spill] sm:$0xff]  ;;  %v8420_v15 = vld [vmem:[#allocation105_spill] sm:$0xff] }
 0x236   :  { %v1575_v20 = vsel %vm8398_vm11, %v1479_v40, %v1383_v50  ;;  %v1670_v56 = vmul.f32 %v1574_v5, %v1168_v22  ;;  %v1764_v38 = vadd.f32 %v1763_v3, %v1668_v53  ;;  %v1862_v0 = vadd.f32 %v8399_v57, %v1861_v43  ;;  %v2177_v18 = vpop.eup %2176  ;;  %v8408_v40 = vld [vmem:[#allocation409_spill] sm:$0xff]  ;;  %v8415_v5 = vld [vmem:[#allocation104_spill] sm:$0xff] }
 0x237   :  { %2186 = vlog2.f32 %v8400_v39  ;;  %v1386_v7 = vmul.f32 %v8402_v33, %v8401_v31  ;;  %v1482_v8 = vmul.f32 %v8403_v4, %v8403_v4  ;;  %vm8405_vm10 = vcmp.eq.f32.partialorder %v8404_v23, 1.0  ;;  %v8424_v33 = vld [vmem:[#allocation496_spill] sm:$0xff]  ;;  %v8427_v23 = vld [vmem:[#allocation106_spill] sm:$0xff] }
 0x238   :  { %v1576_v35 = vsel %vm8405_vm10, %v1480_v6, %v1384_v10  ;;  %v1174_v47 = vmul.f32 0.6931472, %v2175_v21  ;;  %v1671_v30 = vmul.f32 %v1575_v20, %v1170_v52  ;;  %v1765_v29 = vadd.f32 %v1764_v38, %v1669_v9  ;;  %v2179_v50 = vpop.eup %2178  ;;  %v8412_v10 = vld [vmem:[#allocation492_spill] sm:$0xff]  ;;  %v8414_v6 = vld [vmem:[#allocation19_spill] sm:$0xff] }
 0x239   :  { %v1863_v62 = vadd.f32 %v8406_v1, %v1862_v0  ;;  %2188 = vlog2.f32 %v8407_v32  ;;  %v1387_v13 = vmul.f32 %v5652_v34, %v8408_v40  ;;  %v1483_v22 = vmul.f32 %v8409_v60, %v8409_v60  ;;  %v8417_v21 = vld [vmem:[#allocation304_spill] sm:$0xff]  ;;  %v8431_v40 = vld [vmem:[#allocation497_spill] sm:$0xff] }
 0x23a   :  { %v1577_v14 = vsel %vm329_vm1, %v1481_v42, %v1385_v51  ;;  %v1176_v48 = vmul.f32 0.6931472, %v2177_v18  ;;  %v1672_v25 = vmul.f32 %v1576_v35, %v1172_v41  ;;  %v1766_v55 = vadd.f32 %v1765_v29, %v1670_v56  ;;  %v2181_v44 = vpop.eup %2180  ;;  %v8418_v51 = vld [vmem:[#allocation494_spill] sm:$0xff]  ;;  %v8423_v18 = vld [vmem:[#allocation305_spill] sm:$0xff]  ;;  %v8426_v4 = vld [vmem:[#allocation116_spill] sm:$0xff] }
 0x23b   :  { %v1864_v36 = vadd.f32 %v8411_v45, %v1863_v62  ;;  %2190 = vlog2.f32 %v8412_v10  ;;  %v1388_v63 = vmul.f32 %v8414_v6, %v8413_v26  ;;  %v1484_v34 = vmul.f32 %v8415_v5, %v8415_v5  ;;  %v8421_v41 = vld [vmem:[#allocation238_spill] sm:$0xff]  ;;  %v8428_v35 = vld [vmem:[#allocation239_spill] sm:$0xff]  ;;  %v8438_v5 = vld [vmem:[#allocation109_spill] sm:$0xff] }
 0x23c   :  { %v1578_v9 = vsel %vm330_vm14, %v1482_v8, %v1386_v7  ;;  %v1178_v3 = vmul.f32 0.6931472, %v2179_v50  ;;  %v1673_v16 = vmul.f32 %v1577_v14, %v1174_v47  ;;  %v1767_v43 = vadd.f32 %v1766_v55, %v1671_v30  ;;  %v2183_v11 = vpop.eup %2182  ;;  %v8425_v7 = vld [vmem:[#allocation361_spill] sm:$0xff]  ;;  %v8430_v62 = vld [vmem:[#allocation306_spill] sm:$0xff]  ;;  %v8436_v26 = vld [vmem:[#allocation499_spill] sm:$0xff] }
 0x23d   :  { %v1865_v12 = vadd.f32 %v8417_v21, %v1864_v36  ;;  %2192 = vlog2.f32 %v8418_v51  ;;  %v1389_v42 = vmul.f32 %v5680_v49, %v8419_v24  ;;  %v1485_v20 = vmul.f32 %v8420_v15, %v8420_v15  ;;  %v8435_v36 = vld [vmem:[#allocation307_spill] sm:$0xff]  ;;  %v8442_v51 = vld [vmem:[#allocation364_spill] sm:$0xff]  ;;  %v8444_v15 = vld [vmem:[#allocation250_spill] sm:$0xff] }
 0x23e   :  { %vm8422_vm1 = vcmp.eq.f32.partialorder %v8421_v41, 1.0  ;;  %v1180_v38 = vmul.f32 0.6931472, %v2181_v44  ;;  %v1674_v57 = vmul.f32 %v1578_v9, %v1176_v48  ;;  %v1768_v0 = vadd.f32 %v1767_v43, %v1672_v25  ;;  %v2185_v31 = vpop.eup %2184  ;;  %v8437_v6 = vld [vmem:[#allocation363_spill] sm:$0xff]  ;;  %v8440_v43 = vld [vmem:[#allocation308_spill] sm:$0xff] }
 0x23f   :  { %v1579_v56 = vsel %vm8422_vm1, %v1483_v22, %v1387_v13  ;;  %v1866_v39 = vadd.f32 %v8423_v18, %v1865_v12  ;;  %2194 = vlog2.f32 %v8424_v33  ;;  %v1390_v8 = vmul.f32 %v8426_v4, %v8425_v7  ;;  %v8432_v13 = vld [vmem:[#allocation362_spill] sm:$0xff]  ;;  %v8433_v22 = vld [vmem:[#allocation108_spill] sm:$0xff]  ;;  %v8450_v4 = vld [vmem:[#allocation251_spill] sm:$0xff] }
 0x240   :  { %v1486_v49 = vmul.f32 %v8427_v23, %v8427_v23  ;;  %vm8429_vm14 = vcmp.eq.f32.partialorder %v8428_v35, 1.0  ;;  %v1182_v30 = vmul.f32 0.6931472, %v2183_v11  ;;  %v1675_v29 = vmul.f32 %v1579_v56, %v1178_v3  ;;  %v8441_v11 = vld [vmem:[#allocation501_spill] sm:$0xff]  ;;  %v8449_v7 = vld [vmem:[#allocation112_spill] sm:$0xff]  ;;  %v8457_v14 = vld [vmem:[#allocation311_spill] sm:$0xff] }
 0x241   :  { %v1580_v47 = vsel %vm8429_vm14, %v1484_v34, %v1388_v63  ;;  %v1769_v1 = vadd.f32 %v1768_v0, %v1673_v16  ;;  %v1867_v50 = vadd.f32 %v8430_v62, %v1866_v39  ;;  %v2187_v32 = vpop.eup %2186  ;;  %2196 = vlog2.f32 %v8431_v40  ;;  %v8447_v39 = vld [vmem:[#allocation502_spill] sm:$0xff]  ;;  %v8454_v62 = vld [vmem:[#allocation412_spill] sm:$0xff] }
 0x242   :  { %v1391_v60 = vmul.f32 %v5708_v28, %v8432_v13  ;;  %v1487_v53 = vmul.f32 %v8433_v22, %v8433_v22  ;;  %v1581_v48 = vsel %vm333_vm7, %v1485_v20, %v1389_v42  ;;  %v1184_v25 = vmul.f32 0.6931472, %v2185_v31  ;;  %v8443_v42 = vld [vmem:[#allocation110_spill] sm:$0xff]  ;;  %v8448_v31 = vld [vmem:[#allocation411_spill] sm:$0xff] }
 0x243   :  { %v1676_v55 = vmul.f32 %v1580_v47, %v1180_v38  ;;  %v1770_v45 = vadd.f32 %v1769_v1, %v1674_v57  ;;  %v1868_v44 = vadd.f32 %v8435_v36, %v1867_v50  ;;  %v2189_v10 = vpop.eup %2188  ;;  %2198 = vlog2.f32 %v8436_v26  ;;  %v8446_v57 = vld [vmem:[#allocation309_spill] sm:$0xff]  ;;  %v8452_v47 = vld [vmem:[#allocation310_spill] sm:$0xff]  ;;  %v8453_v1 = vld [vmem:[#allocation504_spill] sm:$0xff] }
 0x244   :  { %v1392_v63 = vmul.f32 %v5720_v17, %v8437_v6  ;;  %v1488_v28 = vmul.f32 %v8438_v5, %v8438_v5  ;;  %v1582_v52 = vsel %vm334_vm5, %v1486_v49, %v1390_v8  ;;  %v1186_v9 = vmul.f32 0.6931472, %v2187_v32  ;;  %v8455_v32 = vld [vmem:[#allocation113_spill] sm:$0xff] }
 0x245   :  { %v1677_v3 = vmul.f32 %v1581_v48, %v1182_v30  ;;  %v1771_v16 = vadd.f32 %v1770_v45, %v1675_v29  ;;  %v1869_v21 = vadd.f32 %v8440_v43, %v1868_v44  ;;  %v2191_v12 = vpop.eup %2190  ;;  %2200 = vlog2.f32 %v8441_v11  ;;  %v8459_v45 = vld [vmem:[#allocation413_spill] sm:$0xff]  ;;  %v8460_v44 = vld [vmem:[#allocation114_spill] sm:$0xff] }
 0x246   :  { %v1393_v24 = vmul.f32 %v5736_v19, %v8442_v51  ;;  %v1489_v17 = vmul.f32 %v8443_v42, %v8443_v42  ;;  %vm8445_vm7 = vcmp.eq.f32.partialorder %v8444_v15, 1.0  ;;  %v1188_v41 = vmul.f32 0.6931472, %v2189_v10  ;;  %v8465_v43 = vld [vmem:[#allocation117_spill] sm:$0xff] }
 0x247   :  { %v1583_v20 = vsel %vm8445_vm7, %v1487_v53, %v1391_v60  ;;  %v1678_v56 = vmul.f32 %v1582_v52, %v1184_v25  ;;  %v1772_v38 = vadd.f32 %v1771_v16, %v1676_v55  ;;  %v1870_v0 = vadd.f32 %v8446_v57, %v1869_v21  ;;  %v2193_v18 = vpop.eup %2192  ;;  %v8458_v55 = vld [vmem:[#allocation506_spill] sm:$0xff]  ;;  %v8468_v42 = vld [vmem:[#allocation313_spill] sm:$0xff]  ;;  %v8472_v57 = vld [vmem:[#allocation263_spill] sm:$0xff] }
 0x248   :  { %2202 = vlog2.f32 %v8447_v39  ;;  %v1394_v33 = vmul.f32 %v5748_v61, %v8448_v31  ;;  %v1490_v19 = vmul.f32 %v8449_v7, %v8449_v7  ;;  %vm8451_vm5 = vcmp.eq.f32.partialorder %v8450_v4, 1.0  ;;  %v8466_v21 = vld [vmem:[#allocation262_spill] sm:$0xff]  ;;  %v8475_v4 = vld [vmem:[#allocation508_spill] sm:$0xff] }
 0x249   :  { %v1584_v8 = vsel %vm8451_vm5, %v1488_v28, %v1392_v63  ;;  %v1190_v23 = vmul.f32 0.6931472, %v2191_v12  ;;  %v1679_v49 = vmul.f32 %v1583_v20, %v1186_v9  ;;  %v1773_v35 = vadd.f32 %v1772_v38, %v1677_v3  ;;  %v2195_v29 = vpop.eup %2194  ;;  %v8462_v28 = vld [vmem:[#allocation312_spill] sm:$0xff]  ;;  %v8463_v9 = vld [vmem:[#allocation145_spill] sm:$0xff]  ;;  %v8469_v20 = vld [vmem:[#allocation507_spill] sm:$0xff] }
 0x24a   :  { %v1871_v30 = vadd.f32 %v8452_v47, %v1870_v0  ;;  %2204 = vlog2.f32 %v8453_v1  ;;  %v1395_v50 = vmul.f32 %v5763_v58, %v8454_v62  ;;  %v1491_v61 = vmul.f32 %v8455_v32, %v8455_v32  ;;  %v8464_v3 = vld [vmem:[#allocation365_spill] sm:$0xff]  ;;  %v8471_v38 = vld [vmem:[#allocation118_spill] sm:$0xff]  ;;  %v8479_v62 = vld [vmem:[#allocation315_spill] sm:$0xff] }
 0x24b   :  { %v1585_v13 = vsel %vm337_vm15, %v1489_v17, %v1393_v24  ;;  %v1192_v60 = vmul.f32 0.6931472, %v2193_v18  ;;  %v1680_v22 = vmul.f32 %v1584_v8, %v1188_v41  ;;  %v1774_v53 = vadd.f32 %v1773_v35, %v1678_v56  ;;  %v2197_v25 = vpop.eup %2196  ;;  %v8470_v41 = vld [vmem:[#allocation414_spill] sm:$0xff]  ;;  %v8476_v8 = vld [vmem:[#allocation415_spill] sm:$0xff] }
 0x24c   :  { %v1872_v48 = vadd.f32 %v8457_v14, %v1871_v30  ;;  %2206 = vlog2.f32 %v8458_v55  ;;  %v1396_v36 = vmul.f32 %v5775_v27, %v8459_v45  ;;  %v1492_v58 = vmul.f32 %v8460_v44, %v8460_v44  ;;  %v8483_v45 = vld [vmem:[#allocation316_spill] sm:$0xff] }
 0x24d   :  { %v1586_v26 = vsel %vm338_vm13, %v1490_v19, %v1394_v33  ;;  %v1194_v6 = vmul.f32 0.6931472, %v2195_v29  ;;  %v1681_v63 = vmul.f32 %v1585_v13, %v1190_v23  ;;  %v1775_v5 = vadd.f32 %v1774_v53, %v1679_v49  ;;  %v2199_v52 = vpop.eup %2198  ;;  %v8474_v33 = vld [vmem:[#allocation314_spill] sm:$0xff]  ;;  %v8477_v49 = vld [vmem:[#allocation119_spill] sm:$0xff] }
 0x24e   :  { %v1873_v34 = vadd.f32 %v8462_v28, %v1872_v48  ;;  %2208 = vlog2.f32 %v8463_v9  ;;  %v1397_v16 = vmul.f32 %v5789_v2, %v8464_v3  ;;  %v1493_v27 = vmul.f32 %v8465_v43, %v8465_v43  ;;  %v8480_v13 = vld [vmem:[#allocation366_spill] sm:$0xff]  ;;  %v8488_v3 = vld [vmem:[#allocation317_spill] sm:$0xff] }
 0x24f   :  { %vm8467_vm15 = vcmp.eq.f32.partialorder %v8466_v21, 1.0  ;;  %v1196_v11 = vmul.f32 0.6931472, %v2197_v25  ;;  %v1682_v51 = vmul.f32 %v1586_v26, %v1192_v60  ;;  %v1776_v24 = vadd.f32 %v1775_v5, %v1680_v22  ;;  %v2201_v15 = vpop.eup %2200  ;;  %v8481_v22 = vld [vmem:[#allocation123_spill] sm:$0xff]  ;;  %v8484_v26 = vld [vmem:[#allocation416_spill] sm:$0xff] }
 0x250   :  { %v1587_v12 = vsel %vm8467_vm15, %v1491_v61, %v1395_v50  ;;  %v1874_v17 = vadd.f32 %v8468_v42, %v1873_v34  ;;  %2210 = vlog2.f32 %v8469_v20  ;;  %v1398_v56 = vmul.f32 %v5803_v46, %v8470_v41  ;;  %v2310_v61 = vld [vmem:[#allocation2 + $0x2e8] sm:$0xff]  ;;  %v8486_v5 = vld [vmem:[#allocation320_spill] sm:$0xff]  ;;  %v8493_v41 = vld [vmem:[#allocation318_spill] sm:$0xff] }
 0x251   :  { %v1494_v2 = vmul.f32 %v8471_v38, %v8471_v38  ;;  %vm8473_vm13 = vcmp.eq.f32.partialorder %v8472_v57, 1.0  ;;  %v1198_v18 = vmul.f32 0.6931472, %v2199_v52  ;;  %v1683_v39 = vmul.f32 %v1587_v12, %v1194_v6  ;;  %v8489_v12 = vld [vmem:[#allocation417_spill] sm:$0xff] }
 0x252   :  { %v1588_v0 = vsel %vm8473_vm13, %v1492_v58, %v1396_v36  ;;  %v1777_v31 = vadd.f32 %v1776_v24, %v1681_v63  ;;  %v1875_v7 = vadd.f32 %v8474_v33, %v1874_v17  ;;  %v2203_v19 = vpop.eup %2202  ;;  %2212 = vlog2.f32 %v8475_v4  ;;  %v2311_v58 = vld [vmem:[#allocation2 + $0x2f0] sm:$0xff]  ;;  %v8485_v63 = vld [vmem:[#allocation124_spill] sm:$0xff] }
 0x253   :  { %v1399_v23 = vmul.f32 %v5824_v59, %v8476_v8  ;;  %v1495_v46 = vmul.f32 %v8477_v49, %v8477_v49  ;;  %v1589_v47 = vsel %vm341_vm9, %v1493_v27, %v1397_v16  ;;  %v1200_v30 = vmul.f32 0.6931472, %v2201_v15  ;;  %v2312_v27 = vld [vmem:[#allocation2 + $0x2f8] sm:$0xff]  ;;  %v8498_v33 = vld [vmem:[#allocation322_spill] sm:$0xff] }
 0x254   :  { %v1684_v29 = vmul.f32 %v1588_v0, %v1196_v11  ;;  %v1778_v1 = vadd.f32 %v1777_v31, %v1682_v51  ;;  %v1876_v50 = vadd.f32 %v8479_v62, %v1875_v7  ;;  %v2205_v32 = vpop.eup %2204  ;;  %v1306_v40 = vmul.f32 %v2310_v61, %v2310_v61  ;;  %v8490_v51 = vld [vmem:[#allocation128_spill] sm:$0xff]  ;;  %v8496_v0 = vld [vmem:[#allocation418_spill] sm:$0xff] }
 0x255   :  { %v1400_v60 = vmul.f32 %v5836_v37, %v8480_v13  ;;  %v1496_v59 = vmul.f32 %v8481_v22, %v8481_v22  ;;  %v1590_v14 = vsel %vm342_vm12, %v1494_v2, %v1398_v56  ;;  %v1202_v48 = vmul.f32 0.6931472, %v2203_v19 }
 0x256   :  { %v1685_v25 = vmul.f32 %v1589_v47, %v1198_v18  ;;  %v1779_v55 = vadd.f32 %v1778_v1, %v1683_v39  ;;  %v1877_v36 = vadd.f32 %v8483_v45, %v1876_v50  ;;  %v2207_v44 = vpop.eup %2206  ;;  %v1307_v10 = vmul.f32 %v2311_v58, %v2311_v58  ;;  %v8497_v39 = vld [vmem:[#allocation129_spill] sm:$0xff]  ;;  %v8502_v47 = vld [vmem:[#allocation419_spill] sm:$0xff] }
 0x257   :  { %v1401_v6 = vmul.f32 %v5857_v54, %v8484_v26  ;;  %v1497_v37 = vmul.f32 %v8485_v63, %v8485_v63  ;;  %vm8487_vm9 = vcmp.eq.f32.partialorder %v8486_v5, 1.0  ;;  %v1204_v34 = vmul.f32 0.6931472, %v2205_v32  ;;  %v8491_v54 = vld [vmem:[#allocation321_spill] sm:$0xff] }
 0x258   :  { %v1591_v28 = vsel %vm8487_vm9, %v1495_v46, %v1399_v23  ;;  %v1686_v52 = vmul.f32 %v1590_v14, %v1200_v30  ;;  %v1780_v9 = vadd.f32 %v1779_v55, %v1684_v29  ;;  %v1878_v16 = vadd.f32 %v8488_v3, %v1877_v36  ;;  %v2209_v43 = vpop.eup %2208  ;;  %vm8495_vm8 = vmmov %vm8487_vm9  ;;  %v8500_v23 = vld [vmem:[#allocation319_spill] sm:$0xff]  ;;  %v8503_v29 = vld [vmem:[#allocation133_spill] sm:$0xff] }
 0x259   :  { %v1308_v21 = vmul.f32 %v2312_v27, %v2312_v27  ;;  %v1402_v11 = vmul.f32 %v1306_v40, %v8489_v12  ;;  %v1498_v24 = vmul.f32 %v8490_v51, %v8490_v51  ;;  %vm8492_vm12 = vcmp.eq.f32.partialorder %v8491_v54, 1.0 }
 0x25a   :  { %v1592_v42 = vsel %vm8492_vm12, %v1496_v59, %v1400_v60  ;;  %v1206_v17 = vmul.f32 0.6931472, %v2207_v44  ;;  %v1687_v15 = vmul.f32 %v1591_v28, %v1202_v48  ;;  %v1781_v20 = vadd.f32 %v1780_v9, %v1685_v25  ;;  %v2211_v38 = vpop.eup %2210  ;;  %vm8501_vm6 = vmmov %vm8492_vm12 }
 0x25b   :  { %v1879_v56 = vadd.f32 %v8493_v41, %v1878_v16  ;;  %v8494_v2 = vmov 0.0   ;;  %v1403_v18 = vmul.f32 %v1307_v10, %v8496_v0  ;;  %v1499_v31 = vmul.f32 %v8497_v39, %v8497_v39 }
 0x25c   :  { %v2009_v57 = vsel %vm8495_vm8, 1.0, %v8494_v2  ;;  %vm8499_vm0 = vcmp.eq.f32.partialorder %v8498_v33, 1.0  ;;  %v1208_v19 = vmul.f32 0.6931472, %v2209_v43  ;;  %v1688_v4 = vmul.f32 %v1592_v42, %v1204_v34  ;;  %v2213_v46 = vpop.eup %2212 }
 0x25d   :  { %v1593_v7 = vsel %vm8499_vm0, %v1497_v37, %v1401_v6  ;;  %v1782_v8 = vadd.f32 %v1781_v20, %v1686_v52  ;;  %v1880_v49 = vadd.f32 %v8500_v23, %v1879_v56  ;;  %v2010_v35 = vsel %vm8501_vm6, 1.0, %v8494_v2  ;;  %vm8505_vm11 = vmmov %vm8499_vm0 }
 0x25e   :  { %v1404_v30 = vmul.f32 %v1308_v21, %v8502_v47  ;;  %v1500_v1 = vmul.f32 %v8503_v29, %v8503_v29  ;;  %v1594_v50 = vsel %vm346_vm3, %v1498_v24, %v1402_v11  ;;  %v1210_v32 = vmul.f32 0.6931472, %v2211_v38 }
 0x25f   :  { %v1689_v61 = vmul.f32 %v1593_v7, %v1206_v17  ;;  %v1783_v40 = vadd.f32 %v1782_v8, %v1687_v15  ;;  %v1881_v13 = vadd.f32 %v2009_v57, %v1880_v49  ;;  %v2011_v60 = vsel %vm8505_vm11, 1.0, %v8494_v2 }
 0x260   :  { %v1595_v59 = vsel %vm347_vm4, %v1499_v31, %v1403_v18  ;;  %v1212_v53 = vmul.f32 0.6931472, %v2213_v46  ;;  %v1690_v14 = vmul.f32 %v1594_v50, %v1208_v19  ;;  %v2012_v55 = vsel %vm346_vm3, 1.0, %v8494_v2 }
 0x261   :  { %v1784_v48 = vadd.f32 %v1783_v40, %v1688_v4  ;;  %v1882_v25 = vadd.f32 %v2010_v35, %v1881_v13  ;;  %v1596_v36 = vsel %vm348_vm2, %v1500_v1, %v1404_v30  ;;  %v1691_v44 = vmul.f32 %v1595_v59, %v1210_v32 }
 0x262   :  { %v2013_v26 = vsel %vm347_vm4, 1.0, %v8494_v2  ;;  %v1692_v6 = vmul.f32 %v1596_v36, %v1212_v53  ;;  %v2014_v5 = vsel %vm348_vm2, 1.0, %v8494_v2 }
 0x263   :  { %v1785_v58 = vadd.f32 %v1784_v48, %v1689_v61  ;;  %v1883_v10 = vadd.f32 %v2011_v60, %v1882_v25 }
 0x265   :  { %v1786_v63 = vadd.f32 %v1785_v58, %v1690_v14  ;;  %v1884_v37 = vadd.f32 %v2012_v55, %v1883_v10 }
 0x267   :  { %v1787_v28 = vadd.f32 %v1786_v63, %v1691_v44  ;;  %v1885_v34 = vadd.f32 %v2013_v26, %v1884_v37 }
 0x269   :  { %v1788_v52 = vadd.f32 %v1787_v28, %v1692_v6  ;;  %v1886_v9 = vadd.f32 %v2014_v5, %v1885_v34 }
 0x26b   :  { %1790 = vst [vmem:[#allocation7] sm:$0xff] %v1788_v52  ;;  %1888 = vst [vmem:[#allocation8] sm:$0xff] %v1886_v9 }
 0x26c   :  { %2368 = shalt.err (!%p2365_p6)
}
 0x26d   :  { %s2369_s16 = scalar_lea.hbm %s6380_s2, 128 }
 0x26e   :  { %p2370_p7 = scmp.ne.s32.totalorder %s6380_s2, %s2369_s16  ;;  %p2373_p8 = scmp.lt.u32.totalorder %s2369_s16, %s6380_s2 }
 0x270   :  { %p2375_p9 = pnand %p2373_p8, %p2370_p7 }
 0x272   :  { %2378 = shalt.err (!%p2375_p9)
}
 0x273   :  { %1898 = dma.vmem_to_hbm [thread:$0]  %s1896_s10, 128, %s6380_s2, [#allocation4]  }
 0x274   :  { %s2379_s23 = scalar_lea.vmem %s1906_s12, 128  ;;  %p2384_p11 = scmp.lt.s32.totalorder %s1906_s12, %s1906_s12 }
 0x275   :  { %p2380_p10 = scmp.ne.s32.totalorder %s1906_s12, %s2379_s23  ;;  %p2385_p12 = scmp.lt.s32.totalorder %s2379_s23, %s2379_s23 }
 0x277   :  { %p2386_p13 = por %p2385_p12, %p2384_p11 }
 0x279   :  { %p2387_p0 = pnand %p2386_p13, %p2380_p10 }
 0x27b   :  { %2390 = shalt.err (!%p2387_p0)
}
 0x27c   :  { %s2391_s26 = scalar_lea.hbm %s6381_s3, 128 }
 0x27d   :  { %p2392_p1 = scmp.ne.s32.totalorder %s6381_s3, %s2391_s26  ;;  %p2395_p2 = scmp.lt.u32.totalorder %s2391_s26, %s6381_s3 }
 0x27f   :  { %p2397_p3 = pnand %p2395_p2, %p2392_p1 }
 0x281   :  { %2400 = shalt.err (!%p2397_p3)
}
 0x282   :  { %1908 = dma.vmem_to_hbm [thread:$0]  %s1906_s12, 128, %s6381_s3, [#allocation9]  }
 0x283   :  { %2405 = dma.done.wait [#allocation4], 128  }
 0x284   :  { %2406 = vsyncadd [#allocation4], 4294967168 }
 0x285   :  { %2407 = dma.done.wait [#allocation9], 128  }
 0x286   :  { %2408 = vsyncadd [#allocation9], 4294967168 }
 0x287   :  { %1915 = vsyncpa [#allocation3], 1 }
 0x288   :  { %1916 = vsyncpa [#allocation6], 1 }
 0x289   :  { %1917 = vsyncpa [#allocation4], 1 }
 0x28a   :  { %1918 = vsyncpa [#allocation9], 1 }

</bundles_post_ra>
